<compile_context>
chip_gen: v7x
topology: tpu7x:2x2x1
jax: 0.10.0
libtpu: 0.0.40
codegen_flags: <defaults>
</compile_context>

<pallas_src>
import math

import jax
import jax.numpy as jnp
from jax.experimental import pallas as pl
from jax.experimental.pallas import tpu as pltpu

LEAKY_SLOPE = 0.01   # nn.LeakyReLU() default negative_slope
LN_EPS = 1e-5        # nn.LayerNorm default eps
_HIGHEST = jax.lax.Precision.HIGHEST


# ----------------------------------------------------------------------------
# Fused BandSelectBlock kernel (one grid step = Bblk batch elements)
# ----------------------------------------------------------------------------
def _make_band_select_kernel(C, N, R, Cx, Nx, Bblk):
    H2 = 2 * C
    inv_c = 1.0 / float(C)
    NT = (((1,), (1,)), ((), ()))        # contract the last dim of both operands

    def kernel(*refs):
        x_ref = refs[0]                  # (Bblk, C, N)
        band_refs = refs[1:1 + R]        # R x (Bblk, Cx, Nx)
        w_ref = refs[1 + R]              # (2C+1, 2C+R) packed weights/biases
        c_ref = refs[2 + R]              # (C, 3) = [gamma | beta | t_out]
        o_ref = refs[3 + R]              # (Bblk, Cx, Nx)

        # ---- unpack the packed parameter tiles once per grid step ----------
        wq = w_ref[0:C, 0:C]             # (C, C)  already scaled by t_attn/div
        wk = w_ref[0:C, C:H2]            # (C, C)
        w1t = w_ref[C:H2, 0:H2]          # (C, 2C)
        w2t = w_ref[0:H2, H2:H2 + R]     # (2C, R)
        b1 = w_ref[H2:H2 + 1, 0:H2]      # (1, 2C)
        b2 = w_ref[H2:H2 + 1, H2:H2 + R]  # (1, R)
        gamma = c_ref[:, 0:1]            # (C, 1)
        beta = c_ref[:, 1:2]
        tout = c_ref[:, 2:3]

        for bi in range(Bblk):           # Bblk is small and static
            x = x_ref[bi]                # (C, N): channels on sublanes, H*W on lanes

            # LayerNorm over channels, one-pass statistics.
            s1 = jnp.sum(x, axis=0, keepdims=True)       # (1, N)
            s2 = jnp.sum(x * x, axis=0, keepdims=True)   # (1, N)
            mean = s1 * inv_c
            var = jnp.maximum(s2 * inv_c - mean * mean, 0.0)
            y = (x - mean) * jax.lax.rsqrt(var + LN_EPS) * gamma + beta

            # Gram matrix: the single K = H*W matmul of the whole kernel.
            g = jax.lax.dot_general(y, y, NT, precision=_HIGHEST,
                                    preferred_element_type=jnp.float32)   # (C, C)
            # attn = (Wq * t/div) @ G @ Wk^T  (two tiny CxC matmuls), then floor.
            gk = jax.lax.dot_general(g, wk, NT, precision=_HIGHEST,
                                     preferred_element_type=jnp.float32)  # G @ Wk^T
            attn = jnp.floor(jnp.dot(wq, gk, precision=_HIGHEST,
                                     preferred_element_type=jnp.float32))

            # to_out MLP head: Linear -> (Dropout = id, eval mode) -> LeakyReLU -> Linear
            h = jnp.dot(attn, w1t, precision=_HIGHEST,
                        preferred_element_type=jnp.float32) + b1          # (C, 2C)
            h = jnp.where(h > 0, h, LEAKY_SLOPE * h)
            logits = jnp.dot(h, w2t, precision=_HIGHEST,
                             preferred_element_type=jnp.float32) + b2     # (C, R)

            # softmax over the band axis -> per-channel band weights.
            m = jnp.max(logits, axis=-1, keepdims=True)
            e = jnp.exp(logits - m)
            w = e / jnp.sum(e, axis=-1, keepdims=True)                    # (C, R)

            # Weighted sum over the band list + output temperature.
            acc = w[:, 0:1] * band_refs[0][bi]                            # (C, Nx)
            for r in range(1, R):
                acc = acc + w[:, r:r + 1] * band_refs[r][bi]
            o_ref[bi] = (acc + tout).astype(o_ref.dtype)

    return kernel


def _pick_block_batch(B, bytes_per_batch, target=8, vmem_budget=10 << 20):
    """Batch elements per grid step: large enough to amortize per-step overhead
    and enlarge DMAs, small enough that the double-buffered working set stays
    under v5e's 16 MiB scoped-VMEM default, with >= 2 grid steps when B >= 2 so
    the "parallel" batch axis can shard across a v7x megacore."""
    max_mem = max(1, int(vmem_budget // (2 * bytes_per_batch)))
    cap = max(1, min(target, max_mem, B))
    if B >= 2:
        cap = max(1, min(cap, B // 2))
    for d in range(cap, 0, -1):
        if B % d == 0:
            return d
    return 1


# ----------------------------------------------------------------------------
# Wrapper: matches BandSelectBlock.forward(input, x) semantics
#   input : (B, C, H, W)   NCHW
#   x     : list of R arrays, each (B, C, Hx, Wx)
#   returns (B, C, Hx, Wx)
# ----------------------------------------------------------------------------
def band_select_forward(input_nchw, x_list, params):
    B, C, H, W = input_nchw.shape
    N = H * W
    divisor = N // (64 * 64)
    if divisor == 0:
        # The PyTorch module floor-divides by (n // 4096); n < 4096 would be a
        # division by zero there as well.
        raise ValueError("BandSelectBlock requires H*W >= 64*64")

    R = len(x_list)
    _, Cx, Hx, Wx = x_list[0].shape
    Nx = Hx * Wx
    H2 = params["w1"].shape[0]
    if Cx != C or params["t_out"].size != Cx or H2 != 2 * C:
        raise ValueError("BandSelectBlock shape mismatch (needs Cx == dim and "
                         "t_out channels == dim)")

    # Flatten spatial dims onto the lane axis (free reshapes, row-major).
    x_flat = input_nchw.reshape(B, C, N)
    bands = [xb.reshape(B, Cx, Nx) for xb in x_list]      # no stack: no extra HBM pass

    # ---- pack the small parameters into two tiles (tiny glue) ---------------
    scale = (params["t_attn"].reshape(()) / float(divisor)).astype(jnp.float32)
    w_all = jnp.zeros((2 * C + 1, 2 * C + R), jnp.float32)
    w_all = w_all.at[0:C, 0:C].set(params["wq"] * scale)   # fold t_attn/div into Wq
    w_all = w_all.at[0:C, C:2 * C].set(params["wk"])
    w_all = w_all.at[C:2 * C, 0:2 * C].set(params["w1"].T)
    w_all = w_all.at[0:2 * C, 2 * C:].set(params["w2"].T)
    w_all = w_all.at[2 * C, 0:2 * C].set(params["b1"])
    w_all = w_all.at[2 * C, 2 * C:].set(params["b2"])
    cpar = jnp.stack([params["gamma"], params["beta"],
                      params["t_out"].reshape(C)], axis=1)  # (C, 3)

    bytes_per_batch = 4 * (C * N + (R + 1) * Cx * Nx)
    Bblk = _pick_block_batch(B, bytes_per_batch)
    grid = (B // Bblk,)

    kernel = _make_band_select_kernel(C, N, R, Cx, Nx, Bblk)

    in_specs = [pl.BlockSpec((Bblk, C, N), lambda b: (b, 0, 0))]
    in_specs += [pl.BlockSpec((Bblk, Cx, Nx), lambda b: (b, 0, 0))
                 for _ in range(R)]
    in_specs += [pl.BlockSpec((2 * C + 1, 2 * C + R), lambda b: (0, 0)),
                 pl.BlockSpec((C, 3), lambda b: (0, 0))]

    out_flat = pl.pallas_call(
        kernel,
        out_shape=jax.ShapeDtypeStruct((B, Cx, Nx), input_nchw.dtype),
        grid=grid,
        in_specs=in_specs,
        out_specs=pl.BlockSpec((Bblk, Cx, Nx), lambda b: (b, 0, 0)),
        compiler_params=pltpu.CompilerParams(
            dimension_semantics=("parallel",)),
    )(x_flat, *bands, w_all, cpar)

    return out_flat.reshape(B, Cx, Hx, Wx)


# ----------------------------------------------------------------------------
# Parameter init (PyTorch-like fan-in uniform; temperatures randomized so the
# forward path is fully exercised by the test)
# ----------------------------------------------------------------------------
def init_band_select_params(key, dim, num_res2blocks):
    h2 = dim * 2
    ks = jax.random.split(key, 10)

    def lin(k, out_f, in_f):
        bound = 1.0 / math.sqrt(in_f)
        return jax.random.uniform(k, (out_f, in_f), jnp.float32, -bound, bound)

    def vec(k, n, bound):
        return jax.random.uniform(k, (n,), jnp.float32, -bound, bound)

    return {
        "gamma": 1.0 + 0.1 * jax.random.normal(ks[0], (dim,), jnp.float32),
        "beta": 0.1 * jax.random.normal(ks[1], (dim,), jnp.float32),
        "wq": lin(ks[2], dim, dim),
        "wk": lin(ks[3], dim, dim),
        "t_attn": 1.0 + 0.1 * jax.random.normal(ks[4], (1, 1, 1), jnp.float32),
        "w1": lin(ks[5], h2, dim),
        "b1": vec(ks[6], h2, 1.0 / math.sqrt(dim)),
        "w2": lin(ks[7], num_res2blocks, h2),
        "b2": vec(ks[8], num_res2blocks, 1.0 / math.sqrt(h2)),
        "t_out": 0.1 * jax.random.normal(ks[9], (1, 8, 1, 1), jnp.float32),
    }


# ----------------------------------------------------------------------------
# Pure-JAX reference mirroring the PyTorch module (eval mode)
# ----------------------------------------------------------------------------
def _prefloor_attn(input_nchw, params):
    """Pre-floor attention logits (without the temperature), PyTorch op order."""
    B, C, H, W = input_nchw.shape
    N = H * W
    t = jnp.transpose(input_nchw.reshape(B, C, N), (0, 2, 1))        # (B, N, C)
    mean = jnp.mean(t, axis=-1, keepdims=True)
    var = jnp.mean((t - mean) ** 2, axis=-1, keepdims=True)
    y = (t - mean) * jax.lax.rsqrt(var + LN_EPS) * params["gamma"] + params["beta"]
    q = jnp.einsum("bnc,ic->bni", y, params["wq"], precision=_HIGHEST)
    k = jnp.einsum("bnc,jc->bnj", y, params["wk"], precision=_HIGHEST)
    attn = jnp.einsum("bni,bnj->bij", q, k, precision=_HIGHEST)       # (B, C, C)
    return attn / float(N // (64 * 64))


def band_select_ref(input_nchw, x_list, params):
    t_attn = params["t_attn"].reshape(())
    attn = jnp.floor(_prefloor_attn(input_nchw, params) * t_attn)
    h = jnp.einsum("bij,hj->bih", attn, params["w1"],
                   precision=_HIGHEST) + params["b1"]
    h = jnp.where(h > 0, h, LEAKY_SLOPE * h)
    logits = jnp.einsum("bih,rh->bir", h, params["w2"],
                        precision=_HIGHEST) + params["b2"]             # (B, C, R)
    w = jax.nn.softmax(logits, axis=-1)
    attn_w = jnp.transpose(w, (0, 2, 1))                               # (B, R, C)
    xs = jnp.stack(x_list, axis=1)                                     # (B, R, C, Hx, Wx)
    return jnp.sum(attn_w[..., None, None] * xs, axis=1) + params["t_out"]


def _pick_safe_attn_temperature(input_nchw, params, n_scales=1024):
    """Deterministically rescale t_attn so that no pre-floor attention value
    sits near an integer boundary; floor() then agrees between the fused kernel
    (Gram-matrix accumulation order) and the reference (q/k order) regardless
    of f32 reassociation noise."""
    raw = _prefloor_attn(input_nchw, params).reshape(-1)
    t0 = float(params["t_attn"].reshape(()))
    scales = 1.0 + 2e-4 * jnp.arange(n_scales, dtype=jnp.float32)
    vals = raw[None, :] * (t0 * scales)[:, None]
    dist = jnp.abs(vals - jnp.round(vals))
    best = int(jnp.argmax(jnp.min(dist, axis=1)))
    return jnp.full((1, 1, 1), t0 * float(scales[best]), jnp.float32)


# ----------------------------------------------------------------------------
if __name__ == "__main__":
    dim = 8                  # BandSelectBlock temperature is (1, 8, 1, 1) => dim = 8
    num_res2blocks = 4
    B, H, W = 4, 64, 64      # H*W >= 64*64 required by the module's floor division
    Hx = Wx = 16             # spatial size of the band tensors in x

    key = jax.random.PRNGKey(0)
    k_in, k_x, k_p = jax.random.split(key, 3)
    inp = jax.random.normal(k_in, (B, dim, H, W), jnp.float32)
    x_keys = jax.random.split(k_x, num_res2blocks)
    x_list = [jax.random.normal(k, (B, dim, Hx, Wx), jnp.float32) for k in x_keys]
    params = init_band_select_params(k_p, dim, num_res2blocks)
    # floor()-robust deterministic choice of the attention temperature.
    params["t_attn"] = _pick_safe_attn_temperature(inp, params)

    out = jax.jit(band_select_forward)(inp, x_list, params)
    jax.block_until_ready(out)

    ref = band_select_ref(inp, x_list, params)
    assert out.shape == (B, dim, Hx, Wx)
    max_err = float(jnp.max(jnp.abs(out - ref)))
    assert jnp.allclose(out, ref, atol=2e-3, rtol=2e-3), max_err

    print("KERNEL_OK")
</pallas_src>

<mosaic_0001>
module attributes {stable_mosaic.version = 11 : i64} {
  func.func @kernel(%arg0: i32, %arg1: memref<2x8x4096xf32, #tpu.memory_space<vmem>>, %arg2: memref<2x8x256xf32, #tpu.memory_space<vmem>>, %arg3: memref<2x8x256xf32, #tpu.memory_space<vmem>>, %arg4: memref<2x8x256xf32, #tpu.memory_space<vmem>>, %arg5: memref<2x8x256xf32, #tpu.memory_space<vmem>>, %arg6: memref<17x20xf32, #tpu.memory_space<vmem>>, %arg7: memref<8x3xf32, #tpu.memory_space<vmem>>, %arg8: memref<2x8x256xf32, #tpu.memory_space<vmem>>) attributes {dimension_semantics = [#tpu.dimension_semantics<parallel>], iteration_bounds = array<i64: 2>, scalar_prefetch = 0 : i64, scratch_operands = 0 : i64, tpu.core_type = #tpu.core_type<tc>, window_params = [{transform_indices = @transform_0, window_bounds = array<i64: 2, 8, 4096>}, {transform_indices = @transform_1, window_bounds = array<i64: 2, 8, 256>}, {transform_indices = @transform_2, window_bounds = array<i64: 2, 8, 256>}, {transform_indices = @transform_3, window_bounds = array<i64: 2, 8, 256>}, {transform_indices = @transform_4, window_bounds = array<i64: 2, 8, 256>}, {pipeline_mode = #tpu.pipeline_mode<synchronous>, transform_indices = @transform_5, window_bounds = array<i64: 17, 20>}, {pipeline_mode = #tpu.pipeline_mode<synchronous>, transform_indices = @transform_6, window_bounds = array<i64: 8, 3>}, {transform_indices = @transform_7, window_bounds = array<i64: 2, 8, 256>}]} {
    %c0 = arith.constant 0 : index
    %c0_0 = arith.constant 0 : index
    %0 = vector.load %arg6[%c0, %c0_0] : memref<17x20xf32, #tpu.memory_space<vmem>>, vector<8x8xf32>
    %c0_1 = arith.constant 0 : index
    %c8 = arith.constant 8 : index
    %1 = vector.load %arg6[%c0_1, %c8] : memref<17x20xf32, #tpu.memory_space<vmem>>, vector<8x8xf32>
    %c8_2 = arith.constant 8 : index
    %c0_3 = arith.constant 0 : index
    %2 = vector.load %arg6[%c8_2, %c0_3] : memref<17x20xf32, #tpu.memory_space<vmem>>, vector<8x16xf32>
    %c0_4 = arith.constant 0 : index
    %c16 = arith.constant 16 : index
    %3 = vector.load %arg6[%c0_4, %c16] : memref<17x20xf32, #tpu.memory_space<vmem>>, vector<16x4xf32>
    %c16_5 = arith.constant 16 : index
    %c0_6 = arith.constant 0 : index
    %4 = vector.load %arg6[%c16_5, %c0_6] : memref<17x20xf32, #tpu.memory_space<vmem>>, vector<1x16xf32>
    %c16_7 = arith.constant 16 : index
    %c16_8 = arith.constant 16 : index
    %5 = vector.load %arg6[%c16_7, %c16_8] : memref<17x20xf32, #tpu.memory_space<vmem>>, vector<1x4xf32>
    %c0_9 = arith.constant 0 : index
    %c0_10 = arith.constant 0 : index
    %6 = vector.load %arg7[%c0_9, %c0_10] : memref<8x3xf32, #tpu.memory_space<vmem>>, vector<8x1xf32>
    %c0_11 = arith.constant 0 : index
    %c1 = arith.constant 1 : index
    %7 = vector.load %arg7[%c0_11, %c1] : memref<8x3xf32, #tpu.memory_space<vmem>>, vector<8x1xf32>
    %c0_12 = arith.constant 0 : index
    %c2 = arith.constant 2 : index
    %8 = vector.load %arg7[%c0_12, %c2] : memref<8x3xf32, #tpu.memory_space<vmem>>, vector<8x1xf32>
    %c0_13 = arith.constant 0 : index
    %c0_14 = arith.constant 0 : index
    %c0_15 = arith.constant 0 : index
    %9 = vector.load %arg1[%c0_13, %c0_14, %c0_15] : memref<2x8x4096xf32, #tpu.memory_space<vmem>>, vector<1x8x4096xf32>
    %10 = vector.shape_cast %9 : vector<1x8x4096xf32> to vector<8x4096xf32>
    %cst = arith.constant dense<0.000000e+00> : vector<4096xf32>
    %11 = vector.multi_reduction <add>, %10, %cst [0] : vector<8x4096xf32> to vector<4096xf32>
    %12 = vector.shape_cast %11 : vector<4096xf32> to vector<1x4096xf32>
    %13 = arith.mulf %10, %10 : vector<8x4096xf32>
    %cst_16 = arith.constant dense<0.000000e+00> : vector<4096xf32>
    %14 = vector.multi_reduction <add>, %13, %cst_16 [0] : vector<8x4096xf32> to vector<4096xf32>
    %15 = vector.shape_cast %14 : vector<4096xf32> to vector<1x4096xf32>
    %cst_17 = arith.constant 1.250000e-01 : f32
    %16 = vector.broadcast %cst_17 : f32 to vector<1x4096xf32>
    %17 = arith.mulf %12, %16 : vector<1x4096xf32>
    %cst_18 = arith.constant 1.250000e-01 : f32
    %18 = vector.broadcast %cst_18 : f32 to vector<1x4096xf32>
    %19 = arith.mulf %15, %18 : vector<1x4096xf32>
    %20 = arith.mulf %17, %17 : vector<1x4096xf32>
    %21 = arith.subf %19, %20 : vector<1x4096xf32>
    %cst_19 = arith.constant 0.000000e+00 : f32
    %22 = vector.broadcast %cst_19 : f32 to vector<1x4096xf32>
    %23 = arith.maximumf %21, %22 : vector<1x4096xf32>
    %24 = vector.broadcast %17 : vector<1x4096xf32> to vector<8x4096xf32>
    %25 = arith.subf %10, %24 : vector<8x4096xf32>
    %cst_20 = arith.constant 9.99999974E-6 : f32
    %26 = vector.broadcast %cst_20 : f32 to vector<1x4096xf32>
    %27 = arith.addf %23, %26 : vector<1x4096xf32>
    %28 = math.rsqrt %27 : vector<1x4096xf32>
    %29 = vector.broadcast %28 : vector<1x4096xf32> to vector<8x4096xf32>
    %30 = arith.mulf %25, %29 : vector<8x4096xf32>
    %31 = vector.broadcast %6 : vector<8x1xf32> to vector<8x4096xf32>
    %32 = arith.mulf %30, %31 : vector<8x4096xf32>
    %33 = vector.broadcast %7 : vector<8x1xf32> to vector<8x4096xf32>
    %34 = arith.addf %32, %33 : vector<8x4096xf32>
    %cst_21 = arith.constant dense<0.000000e+00> : vector<8x8xf32>
    %35 = tpu.matmul %34, %34, %cst_21 {dimension_numbers = #tpu.dot_dimension_numbers<[1], [1], [0], [0], [0, 0, 1, 0], [], []>, precision = #tpu.contract_precision<fp32>} : vector<8x4096xf32>, vector<8x4096xf32>, vector<8x8xf32> -> vector<8x8xf32>
    %cst_22 = arith.constant dense<0.000000e+00> : vector<8x8xf32>
    %36 = tpu.matmul %35, %1, %cst_22 {dimension_numbers = #tpu.dot_dimension_numbers<[1], [1], [0], [0], [0, 0, 1, 0], [], []>, precision = #tpu.contract_precision<fp32>} : vector<8x8xf32>, vector<8x8xf32>, vector<8x8xf32> -> vector<8x8xf32>
    %cst_23 = arith.constant dense<0.000000e+00> : vector<8x8xf32>
    %37 = tpu.matmul %0, %36, %cst_23 {dimension_numbers = #tpu.dot_dimension_numbers<[1], [0], [0], [1], [0, 0, 1, 1], [], []>, precision = #tpu.contract_precision<fp32>} : vector<8x8xf32>, vector<8x8xf32>, vector<8x8xf32> -> vector<8x8xf32>
    %38 = math.floor %37 : vector<8x8xf32>
    %cst_24 = arith.constant dense<0.000000e+00> : vector<8x16xf32>
    %39 = tpu.matmul %38, %2, %cst_24 {dimension_numbers = #tpu.dot_dimension_numbers<[1], [0], [0], [1], [0, 0, 1, 1], [], []>, precision = #tpu.contract_precision<fp32>} : vector<8x8xf32>, vector<8x16xf32>, vector<8x16xf32> -> vector<8x16xf32>
    %40 = vector.broadcast %4 : vector<1x16xf32> to vector<8x16xf32>
    %41 = arith.addf %39, %40 : vector<8x16xf32>
    %cst_25 = arith.constant 0.000000e+00 : f32
    %42 = vector.broadcast %cst_25 : f32 to vector<8x16xf32>
    %43 = arith.cmpf ogt, %41, %42 : vector<8x16xf32>
    %cst_26 = arith.constant 0.00999999977 : f32
    %44 = vector.broadcast %cst_26 : f32 to vector<8x16xf32>
    %45 = arith.mulf %44, %41 : vector<8x16xf32>
    %46 = arith.select %43, %41, %45 : vector<8x16xi1>, vector<8x16xf32>
    %cst_27 = arith.constant dense<0.000000e+00> : vector<8x4xf32>
    %47 = tpu.matmul %46, %3, %cst_27 {dimension_numbers = #tpu.dot_dimension_numbers<[1], [0], [0], [1], [0, 0, 1, 1], [], []>, precision = #tpu.contract_precision<fp32>} : vector<8x16xf32>, vector<16x4xf32>, vector<8x4xf32> -> vector<8x4xf32>
    %48 = vector.broadcast %5 : vector<1x4xf32> to vector<8x4xf32>
    %49 = arith.addf %47, %48 : vector<8x4xf32>
    %cst_28 = arith.constant dense<0xFF800000> : vector<8xf32>
    %50 = vector.multi_reduction <maximumf>, %49, %cst_28 [1] : vector<8x4xf32> to vector<8xf32>
    %51 = vector.shape_cast %50 : vector<8xf32> to vector<8x1xf32>
    %52 = vector.broadcast %51 : vector<8x1xf32> to vector<8x4xf32>
    %53 = arith.subf %49, %52 : vector<8x4xf32>
    %54 = math.exp %53 : vector<8x4xf32>
    %cst_29 = arith.constant dense<0.000000e+00> : vector<8xf32>
    %55 = vector.multi_reduction <add>, %54, %cst_29 [1] : vector<8x4xf32> to vector<8xf32>
    %56 = vector.shape_cast %55 : vector<8xf32> to vector<8x1xf32>
    %57 = vector.broadcast %56 : vector<8x1xf32> to vector<8x4xf32>
    %58 = arith.divf %54, %57 : vector<8x4xf32>
    %59 = vector.extract_strided_slice %58 {offsets = [0, 0], sizes = [8, 1], strides = [1, 1]} : vector<8x4xf32> to vector<8x1xf32>
    %c0_30 = arith.constant 0 : index
    %c0_31 = arith.constant 0 : index
    %c0_32 = arith.constant 0 : index
    %60 = vector.load %arg2[%c0_30, %c0_31, %c0_32] : memref<2x8x256xf32, #tpu.memory_space<vmem>>, vector<1x8x256xf32>
    %61 = vector.shape_cast %60 : vector<1x8x256xf32> to vector<8x256xf32>
    %62 = vector.broadcast %59 : vector<8x1xf32> to vector<8x256xf32>
    %63 = arith.mulf %62, %61 : vector<8x256xf32>
    %64 = vector.extract_strided_slice %58 {offsets = [0, 1], sizes = [8, 1], strides = [1, 1]} : vector<8x4xf32> to vector<8x1xf32>
    %c0_33 = arith.constant 0 : index
    %c0_34 = arith.constant 0 : index
    %c0_35 = arith.constant 0 : index
    %65 = vector.load %arg3[%c0_33, %c0_34, %c0_35] : memref<2x8x256xf32, #tpu.memory_space<vmem>>, vector<1x8x256xf32>
    %66 = vector.shape_cast %65 : vector<1x8x256xf32> to vector<8x256xf32>
    %67 = vector.broadcast %64 : vector<8x1xf32> to vector<8x256xf32>
    %68 = arith.mulf %67, %66 : vector<8x256xf32>
    %69 = arith.addf %63, %68 : vector<8x256xf32>
    %70 = vector.extract_strided_slice %58 {offsets = [0, 2], sizes = [8, 1], strides = [1, 1]} : vector<8x4xf32> to vector<8x1xf32>
    %c0_36 = arith.constant 0 : index
    %c0_37 = arith.constant 0 : index
    %c0_38 = arith.constant 0 : index
    %71 = vector.load %arg4[%c0_36, %c0_37, %c0_38] : memref<2x8x256xf32, #tpu.memory_space<vmem>>, vector<1x8x256xf32>
    %72 = vector.shape_cast %71 : vector<1x8x256xf32> to vector<8x256xf32>
    %73 = vector.broadcast %70 : vector<8x1xf32> to vector<8x256xf32>
    %74 = arith.mulf %73, %72 : vector<8x256xf32>
    %75 = arith.addf %69, %74 : vector<8x256xf32>
    %76 = vector.extract_strided_slice %58 {offsets = [0, 3], sizes = [8, 1], strides = [1, 1]} : vector<8x4xf32> to vector<8x1xf32>
    %c0_39 = arith.constant 0 : index
    %c0_40 = arith.constant 0 : index
    %c0_41 = arith.constant 0 : index
    %77 = vector.load %arg5[%c0_39, %c0_40, %c0_41] : memref<2x8x256xf32, #tpu.memory_space<vmem>>, vector<1x8x256xf32>
    %78 = vector.shape_cast %77 : vector<1x8x256xf32> to vector<8x256xf32>
    %79 = vector.broadcast %76 : vector<8x1xf32> to vector<8x256xf32>
    %80 = arith.mulf %79, %78 : vector<8x256xf32>
    %81 = arith.addf %75, %80 : vector<8x256xf32>
    %82 = vector.broadcast %8 : vector<8x1xf32> to vector<8x256xf32>
    %83 = arith.addf %81, %82 : vector<8x256xf32>
    %c0_42 = arith.constant 0 : index
    %c0_43 = arith.constant 0 : index
    %c0_44 = arith.constant 0 : index
    %84 = vector.load %arg8[%c0_42, %c0_43, %c0_44] : memref<2x8x256xf32, #tpu.memory_space<vmem>>, vector<1x8x256xf32>
    %85 = vector.shape_cast %84 : vector<1x8x256xf32> to vector<8x256xf32>
    %86 = vector.shape_cast %83 : vector<8x256xf32> to vector<1x8x256xf32>
    tpu.vector_store %arg8[%c0_42, %c0_43, %c0_44], %86 {strides = array<i32>} : memref<2x8x256xf32, #tpu.memory_space<vmem>>, vector<1x8x256xf32>,
    %c1_45 = arith.constant 1 : index
    %c0_46 = arith.constant 0 : index
    %c0_47 = arith.constant 0 : index
    %87 = vector.load %arg1[%c1_45, %c0_46, %c0_47] : memref<2x8x4096xf32, #tpu.memory_space<vmem>>, vector<1x8x4096xf32>
    %88 = vector.shape_cast %87 : vector<1x8x4096xf32> to vector<8x4096xf32>
    %cst_48 = arith.constant dense<0.000000e+00> : vector<4096xf32>
    %89 = vector.multi_reduction <add>, %88, %cst_48 [0] : vector<8x4096xf32> to vector<4096xf32>
    %90 = vector.shape_cast %89 : vector<4096xf32> to vector<1x4096xf32>
    %91 = arith.mulf %88, %88 : vector<8x4096xf32>
    %cst_49 = arith.constant dense<0.000000e+00> : vector<4096xf32>
    %92 = vector.multi_reduction <add>, %91, %cst_49 [0] : vector<8x4096xf32> to vector<4096xf32>
    %93 = vector.shape_cast %92 : vector<4096xf32> to vector<1x4096xf32>
    %cst_50 = arith.constant 1.250000e-01 : f32
    %94 = vector.broadcast %cst_50 : f32 to vector<1x4096xf32>
    %95 = arith.mulf %90, %94 : vector<1x4096xf32>
    %cst_51 = arith.constant 1.250000e-01 : f32
    %96 = vector.broadcast %cst_51 : f32 to vector<1x4096xf32>
    %97 = arith.mulf %93, %96 : vector<1x4096xf32>
    %98 = arith.mulf %95, %95 : vector<1x4096xf32>
    %99 = arith.subf %97, %98 : vector<1x4096xf32>
    %cst_52 = arith.constant 0.000000e+00 : f32
    %100 = vector.broadcast %cst_52 : f32 to vector<1x4096xf32>
    %101 = arith.maximumf %99, %100 : vector<1x4096xf32>
    %102 = vector.broadcast %95 : vector<1x4096xf32> to vector<8x4096xf32>
    %103 = arith.subf %88, %102 : vector<8x4096xf32>
    %cst_53 = arith.constant 9.99999974E-6 : f32
    %104 = vector.broadcast %cst_53 : f32 to vector<1x4096xf32>
    %105 = arith.addf %101, %104 : vector<1x4096xf32>
    %106 = math.rsqrt %105 : vector<1x4096xf32>
    %107 = vector.broadcast %106 : vector<1x4096xf32> to vector<8x4096xf32>
    %108 = arith.mulf %103, %107 : vector<8x4096xf32>
    %109 = vector.broadcast %6 : vector<8x1xf32> to vector<8x4096xf32>
    %110 = arith.mulf %108, %109 : vector<8x4096xf32>
    %111 = vector.broadcast %7 : vector<8x1xf32> to vector<8x4096xf32>
    %112 = arith.addf %110, %111 : vector<8x4096xf32>
    %cst_54 = arith.constant dense<0.000000e+00> : vector<8x8xf32>
    %113 = tpu.matmul %112, %112, %cst_54 {dimension_numbers = #tpu.dot_dimension_numbers<[1], [1], [0], [0], [0, 0, 1, 0], [], []>, precision = #tpu.contract_precision<fp32>} : vector<8x4096xf32>, vector<8x4096xf32>, vector<8x8xf32> -> vector<8x8xf32>
    %cst_55 = arith.constant dense<0.000000e+00> : vector<8x8xf32>
    %114 = tpu.matmul %113, %1, %cst_55 {dimension_numbers = #tpu.dot_dimension_numbers<[1], [1], [0], [0], [0, 0, 1, 0], [], []>, precision = #tpu.contract_precision<fp32>} : vector<8x8xf32>, vector<8x8xf32>, vector<8x8xf32> -> vector<8x8xf32>
    %cst_56 = arith.constant dense<0.000000e+00> : vector<8x8xf32>
    %115 = tpu.matmul %0, %114, %cst_56 {dimension_numbers = #tpu.dot_dimension_numbers<[1], [0], [0], [1], [0, 0, 1, 1], [], []>, precision = #tpu.contract_precision<fp32>} : vector<8x8xf32>, vector<8x8xf32>, vector<8x8xf32> -> vector<8x8xf32>
    %116 = math.floor %115 : vector<8x8xf32>
    %cst_57 = arith.constant dense<0.000000e+00> : vector<8x16xf32>
    %117 = tpu.matmul %116, %2, %cst_57 {dimension_numbers = #tpu.dot_dimension_numbers<[1], [0], [0], [1], [0, 0, 1, 1], [], []>, precision = #tpu.contract_precision<fp32>} : vector<8x8xf32>, vector<8x16xf32>, vector<8x16xf32> -> vector<8x16xf32>
    %118 = vector.broadcast %4 : vector<1x16xf32> to vector<8x16xf32>
    %119 = arith.addf %117, %118 : vector<8x16xf32>
    %cst_58 = arith.constant 0.000000e+00 : f32
    %120 = vector.broadcast %cst_58 : f32 to vector<8x16xf32>
    %121 = arith.cmpf ogt, %119, %120 : vector<8x16xf32>
    %cst_59 = arith.constant 0.00999999977 : f32
    %122 = vector.broadcast %cst_59 : f32 to vector<8x16xf32>
    %123 = arith.mulf %122, %119 : vector<8x16xf32>
    %124 = arith.select %121, %119, %123 : vector<8x16xi1>, vector<8x16xf32>
    %cst_60 = arith.constant dense<0.000000e+00> : vector<8x4xf32>
    %125 = tpu.matmul %124, %3, %cst_60 {dimension_numbers = #tpu.dot_dimension_numbers<[1], [0], [0], [1], [0, 0, 1, 1], [], []>, precision = #tpu.contract_precision<fp32>} : vector<8x16xf32>, vector<16x4xf32>, vector<8x4xf32> -> vector<8x4xf32>
    %126 = vector.broadcast %5 : vector<1x4xf32> to vector<8x4xf32>
    %127 = arith.addf %125, %126 : vector<8x4xf32>
    %cst_61 = arith.constant dense<0xFF800000> : vector<8xf32>
    %128 = vector.multi_reduction <maximumf>, %127, %cst_61 [1] : vector<8x4xf32> to vector<8xf32>
    %129 = vector.shape_cast %128 : vector<8xf32> to vector<8x1xf32>
    %130 = vector.broadcast %129 : vector<8x1xf32> to vector<8x4xf32>
    %131 = arith.subf %127, %130 : vector<8x4xf32>
    %132 = math.exp %131 : vector<8x4xf32>
    %cst_62 = arith.constant dense<0.000000e+00> : vector<8xf32>
    %133 = vector.multi_reduction <add>, %132, %cst_62 [1] : vector<8x4xf32> to vector<8xf32>
    %134 = vector.shape_cast %133 : vector<8xf32> to vector<8x1xf32>
    %135 = vector.broadcast %134 : vector<8x1xf32> to vector<8x4xf32>
    %136 = arith.divf %132, %135 : vector<8x4xf32>
    %137 = vector.extract_strided_slice %136 {offsets = [0, 0], sizes = [8, 1], strides = [1, 1]} : vector<8x4xf32> to vector<8x1xf32>
    %c1_63 = arith.constant 1 : index
    %c0_64 = arith.constant 0 : index
    %c0_65 = arith.constant 0 : index
    %138 = vector.load %arg2[%c1_63, %c0_64, %c0_65] : memref<2x8x256xf32, #tpu.memory_space<vmem>>, vector<1x8x256xf32>
    %139 = vector.shape_cast %138 : vector<1x8x256xf32> to vector<8x256xf32>
    %140 = vector.broadcast %137 : vector<8x1xf32> to vector<8x256xf32>
    %141 = arith.mulf %140, %139 : vector<8x256xf32>
    %142 = vector.extract_strided_slice %136 {offsets = [0, 1], sizes = [8, 1], strides = [1, 1]} : vector<8x4xf32> to vector<8x1xf32>
    %c1_66 = arith.constant 1 : index
    %c0_67 = arith.constant 0 : index
    %c0_68 = arith.constant 0 : index
    %143 = vector.load %arg3[%c1_66, %c0_67, %c0_68] : memref<2x8x256xf32, #tpu.memory_space<vmem>>, vector<1x8x256xf32>
    %144 = vector.shape_cast %143 : vector<1x8x256xf32> to vector<8x256xf32>
    %145 = vector.broadcast %142 : vector<8x1xf32> to vector<8x256xf32>
    %146 = arith.mulf %145, %144 : vector<8x256xf32>
    %147 = arith.addf %141, %146 : vector<8x256xf32>
    %148 = vector.extract_strided_slice %136 {offsets = [0, 2], sizes = [8, 1], strides = [1, 1]} : vector<8x4xf32> to vector<8x1xf32>
    %c1_69 = arith.constant 1 : index
    %c0_70 = arith.constant 0 : index
    %c0_71 = arith.constant 0 : index
    %149 = vector.load %arg4[%c1_69, %c0_70, %c0_71] : memref<2x8x256xf32, #tpu.memory_space<vmem>>, vector<1x8x256xf32>
    %150 = vector.shape_cast %149 : vector<1x8x256xf32> to vector<8x256xf32>
    %151 = vector.broadcast %148 : vector<8x1xf32> to vector<8x256xf32>
    %152 = arith.mulf %151, %150 : vector<8x256xf32>
    %153 = arith.addf %147, %152 : vector<8x256xf32>
    %154 = vector.extract_strided_slice %136 {offsets = [0, 3], sizes = [8, 1], strides = [1, 1]} : vector<8x4xf32> to vector<8x1xf32>
    %c1_72 = arith.constant 1 : index
    %c0_73 = arith.constant 0 : index
    %c0_74 = arith.constant 0 : index
    %155 = vector.load %arg5[%c1_72, %c0_73, %c0_74] : memref<2x8x256xf32, #tpu.memory_space<vmem>>, vector<1x8x256xf32>
    %156 = vector.shape_cast %155 : vector<1x8x256xf32> to vector<8x256xf32>
    %157 = vector.broadcast %154 : vector<8x1xf32> to vector<8x256xf32>
    %158 = arith.mulf %157, %156 : vector<8x256xf32>
    %159 = arith.addf %153, %158 : vector<8x256xf32>
    %160 = vector.broadcast %8 : vector<8x1xf32> to vector<8x256xf32>
    %161 = arith.addf %159, %160 : vector<8x256xf32>
    %c1_75 = arith.constant 1 : index
    %c0_76 = arith.constant 0 : index
    %c0_77 = arith.constant 0 : index
    %162 = vector.load %arg8[%c1_75, %c0_76, %c0_77] : memref<2x8x256xf32, #tpu.memory_space<vmem>>, vector<1x8x256xf32>
    %163 = vector.shape_cast %162 : vector<1x8x256xf32> to vector<8x256xf32>
    %164 = vector.shape_cast %161 : vector<8x256xf32> to vector<1x8x256xf32>
    tpu.vector_store %arg8[%c1_75, %c0_76, %c0_77], %164 {strides = array<i32>} : memref<2x8x256xf32, #tpu.memory_space<vmem>>, vector<1x8x256xf32>,
    return
  }
  func.func @transform_0(%arg0: i32) -> (i32, i32, i32) {
    %c0_i32 = arith.constant 0 : i32
    %c0_i32_0 = arith.constant 0 : i32
    %c0_i32_1 = arith.constant 0 : i32
    return %arg0, %c0_i32, %c0_i32_0 : i32, i32, i32
  }
  func.func @transform_1(%arg0: i32) -> (i32, i32, i32) {
    %c0_i32 = arith.constant 0 : i32
    %c0_i32_0 = arith.constant 0 : i32
    %c0_i32_1 = arith.constant 0 : i32
    return %arg0, %c0_i32, %c0_i32_0 : i32, i32, i32
  }
  func.func @transform_2(%arg0: i32) -> (i32, i32, i32) {
    %c0_i32 = arith.constant 0 : i32
    %c0_i32_0 = arith.constant 0 : i32
    %c0_i32_1 = arith.constant 0 : i32
    return %arg0, %c0_i32, %c0_i32_0 : i32, i32, i32
  }
  func.func @transform_3(%arg0: i32) -> (i32, i32, i32) {
    %c0_i32 = arith.constant 0 : i32
    %c0_i32_0 = arith.constant 0 : i32
    %c0_i32_1 = arith.constant 0 : i32
    return %arg0, %c0_i32, %c0_i32_0 : i32, i32, i32
  }
  func.func @transform_4(%arg0: i32) -> (i32, i32, i32) {
    %c0_i32 = arith.constant 0 : i32
    %c0_i32_0 = arith.constant 0 : i32
    %c0_i32_1 = arith.constant 0 : i32
    return %arg0, %c0_i32, %c0_i32_0 : i32, i32, i32
  }
  func.func @transform_5(%arg0: i32) -> (i32, i32) {
    %c0_i32 = arith.constant 0 : i32
    %c0_i32_0 = arith.constant 0 : i32
    %c0_i32_1 = arith.constant 0 : i32
    return %c0_i32, %c0_i32_0 : i32, i32
  }
  func.func @transform_6(%arg0: i32) -> (i32, i32) {
    %c0_i32 = arith.constant 0 : i32
    %c0_i32_0 = arith.constant 0 : i32
    %c0_i32_1 = arith.constant 0 : i32
    return %c0_i32, %c0_i32_0 : i32, i32
  }
  func.func @transform_7(%arg0: i32) -> (i32, i32, i32) {
    %c0_i32 = arith.constant 0 : i32
    %c0_i32_0 = arith.constant 0 : i32
    %c0_i32_1 = arith.constant 0 : i32
    return %arg0, %c0_i32, %c0_i32_0 : i32, i32, i32
  }
}

</mosaic_0001>

<bundles_post_ra>
// kernel: band_select_forward.1
= control target key start
LH: loop header
LB: loop body
LE: loop exit
PB: predicated region body
PF: predicated region fallthrough
CT: control target
= control target key end

     0   :  { %s22143_s24 = smov 0   ;;  %s23712_s0 = inlined_call_operand.vmem [shape: f32[4,8,4096], index: 0, kind: input, shape index: {}]   ;;  %s23713_s1 = inlined_call_operand.vmem [shape: f32[4,8,256], index: 1, kind: input, shape index: {}]   ;;  %s23714_s2 = inlined_call_operand.vmem [shape: f32[4,8,256], index: 2, kind: input, shape index: {}]   ;;  %s23715_s3 = inlined_call_operand.vmem [shape: f32[4,8,256], index: 3, kind: input, shape index: {}]   ;;  %s23716_s4 = inlined_call_operand.vmem [shape: f32[4,8,256], index: 4, kind: input, shape index: {}]   ;;  %s23717_s5 = inlined_call_operand.vmem [shape: f32[17,20], index: 5, kind: input, shape index: {}]   ;;  %s23718_s6 = inlined_call_operand.vmem [shape: f32[8,3], index: 6, kind: input, shape index: {}]   ;;  %s23719_s7 = inlined_call_operand.vmem [shape: f32[4,8,256], index: 7, kind: output, shape index: {}]  }
   0x1 LB: > { %s20973_s25 = sadd.s32 4294967295, %s22092_s24   ;;  %p20977_p0 = scmp.ge.s32.totalorder %s22092_s24, 1  ;;  %s22092_s24 = sphi %s22143_s24, %s17_s24  }
   0x2   : > { %p287_p1 = scmp.lt.s32.totalorder %s22092_s24, 3 }
   0x4   : > { %p288_p2 = pnand %p20977_p0, %p287_p1 }
   0x5   : > { %v390_v0 = vld [vmem:[%s23718_s6] sm:$0xff] (!%p288_p2)  ;;  %v22094_v1 = vmov (!%p288_p2), 0   ;;  %v22095_v2 = vmov (!%p288_p2), 1   ;;  %s20978_s28 = sshll.u32 (!%p288_p2), %s20973_s25, 1  ;;  %s22096_s12 = smov (!%p288_p2), 120   ;;  %vm8755_vm0 = vcmask (!%p288_p2), 64512  }
   0x6   : > { %291 = sbr.rel (%p288_p2) target bundleno = 4460 (0x116c), region = 48  ;;  %21936 = vset.pattern.permute.xlu0 (!%p288_p2), %v22094_v1  ;;  %21939 = vset.pattern.permute.xlu1 (!%p288_p2), %v22095_v2  ;;  %p346_p3 = scmp.lt.s32.totalorder (!%p288_p2), %s20978_s28, 3  ;;  %vm22098_vm1 = vmmov (!%p288_p2), 0   ;;  %vm10123_vm3 = vcmask (!%p288_p2), 130048   ;;  %vm10586_vm4 = vcmask (!%p288_p2), 31744  }
   0x7   : > { %1129 = vperm.xlu0 (!%p288_p2), %21936, %v390_v0   ;;  %s22099_s17 = smov (!%p288_p2), 112  }
   0xb   : > { %21937 = vset.pattern.permute.xlu0 (!%p288_p2), %v22095_v2 }
   0xc   : > { %1165 = vperm.xlu0 (!%p288_p2), %21937, %v390_v0  }
   0xd   : > { %s23721_s28 = smov (!%p346_p3, %s20978_s28), 3 }
   0xe   : > { %s21041_s29 = sshll.u32 %s23721_s28, 8  ;;  %s23687_s22 = sshll.u32 %s23721_s28, 4 }
   0xf   : > { %s22164_s9 = scalar_lea.vmem %s23712_s0, %s21041_s29  ;;  %s357_s26 = scalar_lea.vmem %s23713_s1, %s23687_s22 }
  0x10   : > { %21938 = vset.pattern.permute.xlu0 %v22094_v1  ;;  %v22167_v3 = vld [vmem:[%s22164_s9 + $0x8] sm:$0xff]  ;;  %v22170_v4 = vld [vmem:[%s22164_s9] sm:$0xff]  ;;  %v22181_v37 = vld [vmem:[%s22164_s9 + $0x18] sm:$0xff]  ;;  %s364_s30 = scalar_lea.vmem %s23714_s2, %s23687_s22  ;;  %s371_s10 = scalar_lea.vmem %s23715_s3, %s23687_s22 }
  0x11   : > { %v429_v5 = vrot.slane %v22167_v3, 4  ;;  %v616_v6 = vmul.f32 %v22167_v3, %v22167_v3  ;;  %v423_v7 = vrot.slane %v22170_v4, 4  ;;  %v615_v8 = vmul.f32 %v22170_v4, %v22170_v4  ;;  %v22188_v46 = vld [vmem:[%s22164_s9 + $0x10] sm:$0xff]  ;;  %s385_s15 = scalar_lea.vmem %s23719_s7, %s23687_s22 }
  0x12   : > { %v441_v40 = vrot.slane %v22181_v37, 4  ;;  %v618_v41 = vmul.f32 %v22181_v37, %v22181_v37  ;;  %v435_v48 = vrot.slane %v22188_v46, 4  ;;  %v617_v49 = vmul.f32 %v22188_v46, %v22188_v46 }
  0x13   : > { %v430_v9 = vadd.f32 %v429_v5, %v22167_v3  ;;  %v653_v10 = vrot.slane %v616_v6, 4  ;;  %v424_v11 = vadd.f32 %v423_v7, %v22170_v4  ;;  %v647_v12 = vrot.slane %v615_v8, 4 }
  0x14   : > { %v442_v44 = vadd.f32 %v441_v40, %v22181_v37  ;;  %v665_v45 = vrot.slane %v618_v41, 4  ;;  %v436_v53 = vadd.f32 %v435_v48, %v22188_v46  ;;  %v659_v54 = vrot.slane %v617_v49, 4 }
  0x15   : > { %v431_v13 = vrot.slane %v430_v9, 2  ;;  %v654_v14 = vadd.f32 %v653_v10, %v616_v6  ;;  %v425_v15 = vrot.slane %v424_v11, 2  ;;  %v648_v16 = vadd.f32 %v647_v12, %v615_v8 }
  0x16   : > { %v443_v51 = vrot.slane %v442_v44, 2  ;;  %v666_v52 = vadd.f32 %v665_v45, %v618_v41  ;;  %v437_v57 = vrot.slane %v436_v53, 2  ;;  %v660_v58 = vadd.f32 %v659_v54, %v617_v49 }
  0x17   : > { %v432_v17 = vadd.f32 %v431_v13, %v430_v9  ;;  %v655_v18 = vrot.slane %v654_v14, 2  ;;  %v426_v19 = vadd.f32 %v425_v15, %v424_v11  ;;  %v649_v20 = vrot.slane %v648_v16, 2 }
  0x18   : > { %v444_v55 = vadd.f32 %v443_v51, %v442_v44  ;;  %v667_v56 = vrot.slane %v666_v52, 2  ;;  %v438_v61 = vadd.f32 %v437_v57, %v436_v53  ;;  %v661_v62 = vrot.slane %v660_v58, 2 }
  0x19   : > { %v433_v21 = vrot.slane %v432_v17, 1  ;;  %v656_v22 = vadd.f32 %v655_v18, %v654_v14  ;;  %v427_v23 = vrot.slane %v426_v19, 1  ;;  %v650_v24 = vadd.f32 %v649_v20, %v648_v16 }
  0x1a   : > { %v445_v59 = vrot.slane %v444_v55, 1  ;;  %v668_v60 = vadd.f32 %v667_v56, %v666_v52  ;;  %v439_v9 = vrot.slane %v438_v61, 1  ;;  %v662_v10 = vadd.f32 %v661_v62, %v660_v58 }
  0x1b   : > { %v434_v25 = vadd.f32 %v433_v21, %v432_v17  ;;  %v657_v26 = vrot.slane %v656_v22, 1  ;;  %v428_v27 = vadd.f32 %v427_v23, %v426_v19  ;;  %v651_v28 = vrot.slane %v650_v24, 1 }
  0x1c   : > { %v446_v63 = vadd.f32 %v445_v59, %v444_v55  ;;  %v669_v0 = vrot.slane %v668_v60, 1  ;;  %v440_v16 = vadd.f32 %v439_v9, %v438_v61  ;;  %v663_v17 = vrot.slane %v662_v10, 1 }
  0x1d   : > { %v658_v29 = vadd.f32 %v657_v26, %v656_v22  ;;  %v840_v30 = vmul.f32 0.125, %v434_v25  ;;  %v652_v31 = vadd.f32 %v651_v28, %v650_v24  ;;  %v839_v32 = vmul.f32 0.125, %v428_v27 }
  0x1e   : > { %v670_v11 = vadd.f32 %v669_v0, %v668_v60  ;;  %v842_v12 = vmul.f32 0.125, %v446_v63  ;;  %v664_v23 = vadd.f32 %v663_v17, %v662_v10  ;;  %v841_v24 = vmul.f32 0.125, %v440_v16 }
  0x1f   : > { %v872_v33 = vmul.f32 0.125, %v658_v29  ;;  %v904_v34 = vmul.f32 %v840_v30, %v840_v30  ;;  %v871_v35 = vmul.f32 0.125, %v652_v31  ;;  %v903_v36 = vmul.f32 %v839_v32, %v839_v32 }
  0x20   : > { %v1000_v6 = vsub.f32 %v22167_v3, %v840_v30  ;;  %v999_v7 = vsub.f32 %v22170_v4, %v839_v32  ;;  %v874_v18 = vmul.f32 0.125, %v670_v11  ;;  %v906_v19 = vmul.f32 %v842_v12, %v842_v12 }
  0x21   : > { %v936_v38 = vsub.f32 %v872_v33, %v904_v34  ;;  %v935_v39 = vsub.f32 %v871_v35, %v903_v36  ;;  %v873_v30 = vmul.f32 0.125, %v664_v23  ;;  %v905_v31 = vmul.f32 %v841_v24, %v841_v24 }
  0x22   : > { %v938_v25 = vsub.f32 %v874_v18, %v906_v19  ;;  %v1002_v51 = vsub.f32 %v22181_v37, %v842_v12  ;;  %v1001_v60 = vsub.f32 %v22188_v46, %v841_v24 }
  0x23   : > { %v968_v42 = vmax.f32 %v936_v38, 0.0  ;;  %v967_v43 = vmax.f32 %v935_v39, 0.0  ;;  %v937_v38 = vsub.f32 %v873_v30, %v905_v31 }
  0x24   : > { %v970_v32 = vmax.f32 %v938_v25, 0.0 }
  0x25   : > { %v1032_v47 = vadd.f32 1e-05, %v968_v42  ;;  %v1031_v50 = vadd.f32 1e-05, %v967_v43  ;;  %v969_v42 = vmax.f32 %v937_v38, 0.0  ;;  %v22214_v43 = vld [vmem:[%s22164_s9 + $0x28] sm:$0xff] }
  0x26   : > { %v1034_v39 = vadd.f32 1e-05, %v970_v32  ;;  %v453_v45 = vrot.slane %v22214_v43, 4 }
  0x27   : > { %21948 = vrsqrt.f32 %v1032_v47  ;;  %v1033_v44 = vadd.f32 1e-05, %v969_v42  ;;  %v620_v47 = vmul.f32 %v22214_v43, %v22214_v43 }
  0x28   : > { %21950 = vrsqrt.f32 %v1031_v50  ;;  %v454_v48 = vadd.f32 %v453_v45, %v22214_v43  ;;  %v22222_v50 = vld [vmem:[%s22164_s9 + $0x20] sm:$0xff]  ;;  %v22252_v45 = vld [vmem:[%s22164_s9 + $0x38] sm:$0xff] }
  0x29   : > { %21952 = vrsqrt.f32 %v1034_v39  ;;  %v677_v49 = vrot.slane %v620_v47, 4  ;;  %v447_v53 = vrot.slane %v22222_v50, 4  ;;  %v619_v54 = vmul.f32 %v22222_v50, %v22222_v50 }
  0x2a   : > { %21954 = vrsqrt.f32 %v1033_v44  ;;  %v455_v55 = vrot.slane %v454_v48, 2 }
  0x2b   : > { %v678_v56 = vadd.f32 %v677_v49, %v620_v47  ;;  %v448_v58 = vadd.f32 %v447_v53, %v22222_v50  ;;  %v671_v59 = vrot.slane %v619_v54, 4  ;;  %v465_v47 = vrot.slane %v22252_v45, 4 }
  0x2c   : > { %v456_v61 = vadd.f32 %v455_v55, %v454_v48  ;;  %v622_v48 = vmul.f32 %v22252_v45, %v22252_v45 }
  0x2d   : > { %v679_v62 = vrot.slane %v678_v56, 2  ;;  %v466_v49 = vadd.f32 %v465_v47, %v22252_v45  ;;  %v22290_v47 = vld [vmem:[%s22164_s9 + $0x48] sm:$0xff] }
  0x2f   : > { %v680_v9 = vadd.f32 %v679_v62, %v678_v56 }
  0x31   : > { %v21949_v5 = vpop.eup %21948 }
  0x32   : > { %v21951_v8 = vpop.eup %21950  ;;  %v1096_v14 = vmul.f32 %v21949_v5, %v1000_v6  ;;  %v449_v5 = vrot.slane %v448_v58, 2  ;;  %v672_v6 = vadd.f32 %v671_v59, %v619_v54 }
  0x33   : > { %v1095_v15 = vmul.f32 %v21951_v8, %v999_v7  ;;  %v21953_v52 = vpop.eup %21952  ;;  %v457_v8 = vrot.slane %v456_v61, 1 }
  0x34   : > { %v1098_v57 = vmul.f32 %v21953_v52, %v1002_v51  ;;  %v21955_v37 = vpop.eup %21954  ;;  %v450_v11 = vadd.f32 %v449_v5, %v448_v58  ;;  %v673_v46 = vrot.slane %v672_v6, 2  ;;  %v689_v51 = vrot.slane %v622_v48, 4  ;;  %v22260_v52 = vld [vmem:[%s22164_s9 + $0x30] sm:$0xff] }
  0x35   : > { %v1097_v7 = vmul.f32 %v21955_v37, %v1001_v60  ;;  %v459_v55 = vrot.slane %v22260_v52, 4  ;;  %v621_v56 = vmul.f32 %v22260_v52, %v22260_v52 }
  0x36   : > { %v451_v18 = vrot.slane %v450_v11, 1  ;;  %v674_v19 = vadd.f32 %v673_v46, %v672_v6  ;;  %v690_v58 = vadd.f32 %v689_v51, %v622_v48  ;;  %v477_v48 = vrot.slane %v22290_v47, 4 }
  0x37   : > { %v460_v60 = vadd.f32 %v459_v55, %v22260_v52 }
  0x38   : > { %v452_v23 = vadd.f32 %v451_v18, %v450_v11  ;;  %v675_v24 = vrot.slane %v674_v19, 1  ;;  %v478_v51 = vadd.f32 %v477_v48, %v22290_v47  ;;  %v22328_v48 = vld [vmem:[%s22164_s9 + $0x58] sm:$0xff] }
  0x39   : > { %v461_v6 = vrot.slane %v460_v60, 2 }
  0x3a   : > { %v676_v31 = vadd.f32 %v675_v24, %v674_v19  ;;  %v843_v32 = vmul.f32 0.125, %v452_v23 }
  0x3c   : > { %v907_v38 = vmul.f32 %v843_v32, %v843_v32  ;;  %v1003_v62 = vsub.f32 %v22222_v50, %v843_v32 }
  0x86   : > { %v22196_v13 = vpop.permute.xlu0 %1129 }
  0x87   : > { %v1133_v20 = vmul.f32 %v22196_v13, %v1096_v14  ;;  %v1132_v21 = vmul.f32 %v22196_v13, %v1095_v15  ;;  %v1135_v63 = vmul.f32 %v22196_v13, %v1098_v57  ;;  %v1134_v12 = vmul.f32 %v22196_v13, %v1097_v7 }
  0x88   : > { %v458_v14 = vadd.f32 %v457_v8, %v456_v61  ;;  %v681_v15 = vrot.slane %v680_v9, 1  ;;  %v467_v57 = vrot.slane %v466_v49, 2  ;;  %v683_v61 = vrot.slane %v621_v56, 4 }
  0x8a   : > { %v468_v37 = vadd.f32 %v467_v57, %v466_v49  ;;  %v684_v7 = vadd.f32 %v683_v61, %v621_v56  ;;  %v624_v49 = vmul.f32 %v22290_v47, %v22290_v47 }
  0x8b   : > { %v22200_v3 = vpop.permute.xlu0 %1165 }
  0x8c   : > { %v1169_v4 = vadd.f32 %v22200_v3, %v1133_v20  ;;  %v1168_v22 = vadd.f32 %v22200_v3, %v1132_v21  ;;  %v1171_v0 = vadd.f32 %v22200_v3, %v1135_v63  ;;  %v1170_v16 = vadd.f32 %v22200_v3, %v1134_v12 }
  0x8d   : > { %v682_v20 = vadd.f32 %v681_v15, %v680_v9  ;;  %v844_v21 = vmul.f32 0.125, %v458_v14  ;;  %v691_v63 = vrot.slane %v690_v58, 2  ;;  %v469_v9 = vrot.slane %v468_v37, 1 }
  0x8e   : > { %v22204_v26 = vand.u32 4294901760, %v1169_v4  ;;  %v22206_v27 = vand.u32 4294901760, %v1168_v22  ;;  %v22234_v10 = vand.u32 4294901760, %v1171_v0  ;;  %v462_v12 = vadd.f32 %v461_v6, %v460_v60 }
  0x8f   : > { %v876_v25 = vmul.f32 0.125, %v682_v20  ;;  %v1004_v53 = vsub.f32 %v22214_v43, %v844_v21  ;;  %v692_v11 = vadd.f32 %v691_v63, %v690_v58  ;;  %v685_v50 = vrot.slane %v684_v7, 2 }
  0x90   : > { %1201 = vmatprep.subr.mxu0 %v22204_v26  ;;  %v1267_v28 = vsub.f32 %v1169_v4, %v22204_v26  ;;  %v1273_v29 = vsub.f32 %v1168_v22, %v22206_v27  ;;  %v1739_v17 = vsub.f32 %v1171_v0, %v22234_v10  ;;  %v22241_v4 = vand.u32 4294901760, %v1170_v16 }
  0x91   : > { %1203 = vmatpush1.xpose.msra.mxu0 %v22206_v27  ;;  %v470_v15 = vadd.f32 %v469_v9, %v468_v37  ;;  %v463_v19 = vrot.slane %v462_v12, 1  ;;  %v686_v20 = vadd.f32 %v685_v50, %v684_v7 }
  0x92   : > { %v1268_v33 = vand.u32 4294901760, %v1267_v28  ;;  %v1274_v34 = vand.u32 4294901760, %v1273_v29  ;;  %v1740_v22 = vand.u32 4294901760, %v1739_v17 }
  0x94   : > { %v1269_v35 = vsub.f32 %v1267_v28, %v1268_v33  ;;  %v1275_v36 = vsub.f32 %v1273_v29, %v1274_v34  ;;  %v1741_v30 = vsub.f32 %v1739_v17, %v1740_v22 }
  0x96   : > { %v1270_v40 = vand.u32 4294901760, %v1269_v35  ;;  %v1276_v41 = vand.u32 4294901760, %v1275_v36  ;;  %v1742_v35 = vand.u32 4294901760, %v1741_v30  ;;  %v875_v36 = vmul.f32 0.125, %v676_v31 }
  0x98   : > { %1271 = vmatprep.mubr.f32.mxu0 %v1270_v40  ;;  %1287 = vmatprep.subr.mxu0 %v1270_v40  ;;  %v939_v40 = vsub.f32 %v875_v36, %v907_v38 }
  0x99   : > { %1277 = vmatmul.mubr.f32.vlgmr.msra.gmra.mrb[0].mxu0 %v1276_v41 }
  0x9a   : > { %1293 = vmatpush1.xpose.msra.mxu0 %v1276_v41  ;;  %1357 = vmatprep.mubr.f32.mxu0 %v22204_v26  ;;  %v971_v44 = vmax.f32 %v939_v40, 0.0 }
  0x9b   : > { %1366 = vmatprep.subr.mxu0 %v1267_v28 }
  0xa1   : > { %1359 = vmatmul.mubr.f32.vlgmr.msra.gmra.mrb[0].mxu0 %v22206_v27 }
  0xa2   : > { %1369 = vmatpush1.xpose.msra.mxu0 %v1273_v29  ;;  %1434 = vmatprep.mubr.f32.mxu0 %v1267_v28  ;;  %v908_v28 = vmul.f32 %v844_v21, %v844_v21 }
  0xa3   : > { %1443 = vmatprep.subr.mxu0 %v22204_v26 }
  0xa9   : > { %1437 = vmatmul.mubr.f32.vlgmr.msra.gmra.mrb[0].mxu0 %v1273_v29  ;;  %v1745_v29 = vsub.f32 %v1170_v16, %v22241_v4  ;;  %v693_v16 = vrot.slane %v692_v11, 1 }
  0xaa   : > { %1445 = vmatpush1.xpose.msra.mxu0 %v22206_v27  ;;  %1511 = vmatprep.mubr.f32.mxu0 %v1268_v33 }
  0xab   : > { %1523 = vmatprep.subr.mxu0 %v1268_v33  ;;  %v940_v33 = vsub.f32 %v876_v25, %v908_v28  ;;  %v694_v21 = vadd.f32 %v693_v16, %v692_v11  ;;  %v464_v25 = vadd.f32 %v463_v19, %v462_v12  ;;  %v687_v28 = vrot.slane %v686_v20, 1 }
  0xad   : > { %v972_v39 = vmax.f32 %v940_v33, 0.0  ;;  %v688_v33 = vadd.f32 %v687_v28, %v686_v20 }
  0xaf   : > { %v1036_v41 = vadd.f32 1e-05, %v972_v39  ;;  %v877_v39 = vmul.f32 0.125, %v688_v33 }
  0xb1   : > { %1515 = vmatmul.mubr.f32.vlgmr.msra.gmra.mrb[0].mxu0 %v1274_v34  ;;  %21956 = vrsqrt.f32 %v1036_v41 }
  0xb2   : > { %1527 = vmatpush1.xpose.msra.mxu0 %v1274_v34  ;;  %1591 = vmatprep.mubr.f32.mxu0 %v22204_v26  ;;  %v1746_v34 = vand.u32 4294901760, %v1745_v29 }
  0xb3   : > { %1599 = vmatprep.subr.mxu0 %v22204_v26 }
  0xb9   : > { %1593 = vmatmul.mubr.f32.vlgmr.msra.gmra.mrb[0].mxu0 %v22206_v27 }
  0xba   : > { %1601 = vmatpush1.xpose.msra.mxu0 %v22206_v27  ;;  %1665 = vmatprep.mubr.f32.mxu0 %v22204_v26  ;;  %v1747_v26 = vsub.f32 %v1745_v29, %v1746_v34 }
  0xbb   : > { %1673 = vmatprep.subr.mxu0 %v22234_v10  ;;  %v21957_v54 = vpop.eup %21956 }
  0xbc   : > { %v1748_v42 = vand.u32 4294901760, %v1747_v26  ;;  %v1100_v59 = vmul.f32 %v21957_v54, %v1004_v53  ;;  %v701_v53 = vrot.slane %v624_v49, 4  ;;  %v22298_v54 = vld [vmem:[%s22164_s9 + $0x40] sm:$0xff] }
  0xbd   : > { %v471_v57 = vrot.slane %v22298_v54, 4  ;;  %v623_v58 = vmul.f32 %v22298_v54, %v22298_v54 }
  0xbe   : > { %v1137_v0 = vmul.f32 %v22196_v13, %v1100_v59  ;;  %v479_v59 = vrot.slane %v478_v51, 2  ;;  %v702_v60 = vadd.f32 %v701_v53, %v624_v49  ;;  %v489_v49 = vrot.slane %v22328_v48, 4 }
  0xbf   : > { %v695_v37 = vrot.slane %v623_v58, 4 }
  0xc0   : > { %v1173_v5 = vadd.f32 %v22200_v3, %v1137_v0  ;;  %v703_v0 = vrot.slane %v702_v60, 2  ;;  %v490_v53 = vadd.f32 %v489_v49, %v22328_v48  ;;  %v22366_v49 = vld [vmem:[%s22164_s9 + $0x68] sm:$0xff] }
  0xc1   : > { %1667 = vmatmul.mubr.f32.vlgmr.msra.gmra.mrb[0].mxu0 %v22206_v27  ;;  %v1035_v27 = vadd.f32 1e-05, %v971_v44 }
  0xc2   : > { %1675 = vmatpush1.xpose.msra.mxu0 %v22241_v4  ;;  %1743 = vmatprep.mubr.f32.mxu0 %v1742_v35  ;;  %v22272_v46 = vand.u32 4294901760, %v1173_v5  ;;  %v704_v12 = vadd.f32 %v703_v0, %v702_v60 }
  0xc3   : > { %1759 = vmatprep.subr.mxu0 %v1742_v35  ;;  %21958 = vrsqrt.f32 %v1035_v27 }
  0xc4   : > { %v2211_v18 = vsub.f32 %v1173_v5, %v22272_v46 }
  0xc6   : > { %v2212_v24 = vand.u32 4294901760, %v2211_v18 }
  0xc8   : > { %v2213_v32 = vsub.f32 %v2211_v18, %v2212_v24 }
  0xc9   : > { %1749 = vmatmul.mubr.f32.vlgmr.msra.gmra.mrb[0].mxu0 %v1748_v42 }
  0xca   : > { %1765 = vmatpush1.xpose.msra.mxu0 %v1748_v42  ;;  %1829 = vmatprep.mubr.f32.mxu0 %v22234_v10  ;;  %v2214_v38 = vand.u32 4294901760, %v2213_v32 }
  0xcb   : > { %1838 = vmatprep.subr.mxu0 %v1739_v17 }
  0xcd   : > { %v21959_v43 = vpop.eup %21958 }
  0xce   : > { %v1099_v8 = vmul.f32 %v21959_v43, %v1003_v62  ;;  %v472_v62 = vadd.f32 %v471_v57, %v22298_v54  ;;  %v480_v43 = vadd.f32 %v479_v59, %v478_v51  ;;  %v626_v51 = vmul.f32 %v22328_v48, %v22328_v48 }
  0xd0   : > { %v1136_v14 = vmul.f32 %v22196_v13, %v1099_v8  ;;  %v473_v7 = vrot.slane %v472_v62, 2  ;;  %v696_v8 = vadd.f32 %v695_v37, %v623_v58  ;;  %v481_v11 = vrot.slane %v480_v43, 1 }
  0xd1   : > { %1831 = vmatmul.mubr.f32.vlgmr.msra.gmra.mrb[0].mxu0 %v22241_v4 }
  0xd2   : > { %1841 = vmatpush1.xpose.msra.mxu0 %v1745_v29  ;;  %1906 = vmatprep.mubr.f32.mxu0 %v1739_v17  ;;  %v1172_v17 = vadd.f32 %v22200_v3, %v1136_v14  ;;  %v474_v14 = vadd.f32 %v473_v7, %v472_v62  ;;  %v482_v16 = vadd.f32 %v481_v11, %v480_v43 }
  0xd3   : > { %1915 = vmatprep.subr.mxu0 %v22234_v10 }
  0xd4   : > { %v22279_v23 = vand.u32 4294901760, %v1172_v17  ;;  %v475_v20 = vrot.slane %v474_v14, 1 }
  0xd6   : > { %v2217_v31 = vsub.f32 %v1172_v17, %v22279_v23  ;;  %v705_v17 = vrot.slane %v704_v12, 1 }
  0xd8   : > { %v2218_v36 = vand.u32 4294901760, %v2217_v31 }
  0xd9   : > { %1909 = vmatmul.mubr.f32.vlgmr.msra.gmra.mrb[0].mxu0 %v1745_v29  ;;  %v878_v29 = vmul.f32 0.125, %v694_v21 }
  0xda   : > { %1917 = vmatpush1.xpose.msra.mxu0 %v22241_v4  ;;  %1983 = vmatprep.mubr.f32.mxu0 %v1740_v22 }
  0xdb   : > { %1995 = vmatprep.subr.mxu0 %v1740_v22  ;;  %v846_v22 = vmul.f32 0.125, %v470_v15 }
  0xdd   : > { %v910_v30 = vmul.f32 %v846_v22, %v846_v22  ;;  %v1006_v55 = vsub.f32 %v22252_v45, %v846_v22  ;;  %v706_v22 = vadd.f32 %v705_v17, %v704_v12 }
  0xdf   : > { %v942_v35 = vsub.f32 %v878_v29, %v910_v30  ;;  %v476_v29 = vadd.f32 %v475_v20, %v474_v14 }
  0xe1   : > { %1987 = vmatmul.mubr.f32.vlgmr.msra.gmra.mrb[0].mxu0 %v1746_v34  ;;  %v974_v40 = vmax.f32 %v942_v35, 0.0 }
  0xe2   : > { %1999 = vmatpush1.xpose.msra.mxu0 %v1746_v34  ;;  %2063 = vmatprep.mubr.f32.mxu0 %v22234_v10  ;;  %v845_v34 = vmul.f32 0.125, %v464_v25 }
  0xe3   : > { %2071 = vmatprep.subr.mxu0 %v22234_v10  ;;  %v1038_v42 = vadd.f32 1e-05, %v974_v40 }
  0xe4   : > { %v909_v26 = vmul.f32 %v845_v34, %v845_v34  ;;  %v1005_v63 = vsub.f32 %v22260_v52, %v845_v34  ;;  %v697_v52 = vrot.slane %v696_v8, 2 }
  0xe5   : > { %21960 = vrsqrt.f32 %v1038_v42 }
  0xe6   : > { %v941_v41 = vsub.f32 %v877_v39, %v909_v26  ;;  %v698_v21 = vadd.f32 %v697_v52, %v696_v8 }
  0xe8   : > { %v973_v27 = vmax.f32 %v941_v41, 0.0  ;;  %v699_v30 = vrot.slane %v698_v21, 1 }
  0xe9   : > { %2065 = vmatmul.mubr.f32.vlgmr.msra.gmra.mrb[0].mxu0 %v22241_v4 }
  0xea   : > { %2073 = vmatpush1.xpose.msra.mxu0 %v22241_v4  ;;  %2137 = vmatprep.mubr.f32.mxu0 %v22234_v10  ;;  %v2219_v10 = vsub.f32 %v2217_v31, %v2218_v36  ;;  %v700_v35 = vadd.f32 %v699_v30, %v698_v21 }
  0xeb   : > { %2145 = vmatprep.subr.mxu0 %v22272_v46 }
  0xec   : > { %v2220_v44 = vand.u32 4294901760, %v2219_v10  ;;  %v879_v40 = vmul.f32 0.125, %v700_v35 }
  0xef   : > { %v21961_v56 = vpop.eup %21960 }
  0xf0   : > { %v1102_v61 = vmul.f32 %v21961_v56, %v1006_v55  ;;  %v713_v55 = vrot.slane %v626_v51, 4  ;;  %v22336_v56 = vld [vmem:[%s22164_s9 + $0x50] sm:$0xff] }
  0xf1   : > { %2139 = vmatmul.mubr.f32.vlgmr.msra.gmra.mrb[0].mxu0 %v22241_v4  ;;  %v1037_v4 = vadd.f32 1e-05, %v973_v27  ;;  %v483_v59 = vrot.slane %v22336_v56, 4  ;;  %v625_v60 = vmul.f32 %v22336_v56, %v22336_v56 }
  0xf2   : > { %2147 = vmatpush1.xpose.msra.mxu0 %v22279_v23  ;;  %2215 = vmatprep.mubr.f32.mxu0 %v2214_v38  ;;  %v1139_v5 = vmul.f32 %v22196_v13, %v1102_v61  ;;  %v491_v61 = vrot.slane %v490_v53, 2  ;;  %v714_v62 = vadd.f32 %v713_v55, %v626_v51  ;;  %v501_v51 = vrot.slane %v22366_v49, 4 }
  0xf3   : > { %2231 = vmatprep.subr.mxu0 %v2214_v38  ;;  %21962 = vrsqrt.f32 %v1037_v4  ;;  %v707_v43 = vrot.slane %v625_v60, 4 }
  0xf4   : > { %v1175_v6 = vadd.f32 %v22200_v3, %v1139_v5  ;;  %v715_v5 = vrot.slane %v714_v62, 2  ;;  %v502_v55 = vadd.f32 %v501_v51, %v22366_v49  ;;  %v22404_v51 = vld [vmem:[%s22164_s9 + $0x78] sm:$0xff] }
  0xf6   : > { %v22310_v50 = vand.u32 4294901760, %v1175_v6  ;;  %v716_v14 = vadd.f32 %v715_v5, %v714_v62 }
  0xf8   : > { %v2683_v19 = vsub.f32 %v1175_v6, %v22310_v50 }
  0xf9   : > { %2221 = vmatmul.mubr.f32.vlgmr.msra.gmra.mrb[0].mxu0 %v2220_v44 }
  0xfa   : > { %2237 = vmatpush1.xpose.msra.mxu0 %v2220_v44  ;;  %2301 = vmatprep.mubr.f32.mxu0 %v22272_v46  ;;  %v2684_v28 = vand.u32 4294901760, %v2683_v19 }
  0xfb   : > { %2310 = vmatprep.subr.mxu0 %v2211_v18 }
  0xfc   : > { %v2685_v34 = vsub.f32 %v2683_v19, %v2684_v28 }
  0xfd   : > { %v21963_v45 = vpop.eup %21962 }
  0xfe   : > { %v1101_v9 = vmul.f32 %v21963_v45, %v1005_v63  ;;  %v2686_v26 = vand.u32 4294901760, %v2685_v34  ;;  %v484_v63 = vadd.f32 %v483_v59, %v22336_v56  ;;  %v492_v45 = vadd.f32 %v491_v61, %v490_v53 }
  0xff   : > { %v628_v53 = vmul.f32 %v22366_v49, %v22366_v49 }
 0x100   : > { %v1138_v15 = vmul.f32 %v22196_v13, %v1101_v9  ;;  %v485_v8 = vrot.slane %v484_v63, 2  ;;  %v708_v9 = vadd.f32 %v707_v43, %v625_v60  ;;  %v493_v12 = vrot.slane %v492_v45, 1 }
 0x101   : > { %2303 = vmatmul.mubr.f32.vlgmr.msra.gmra.mrb[0].mxu0 %v22279_v23 }
 0x102   : > { %2313 = vmatpush1.xpose.msra.mxu0 %v2217_v31  ;;  %2378 = vmatprep.mubr.f32.mxu0 %v2211_v18  ;;  %v1174_v18 = vadd.f32 %v22200_v3, %v1138_v15  ;;  %v486_v15 = vadd.f32 %v485_v8, %v484_v63  ;;  %v494_v17 = vadd.f32 %v493_v12, %v492_v45 }
 0x103   : > { %2387 = vmatprep.subr.mxu0 %v22272_v46 }
 0x104   : > { %v22317_v25 = vand.u32 4294901760, %v1174_v18  ;;  %v487_v21 = vrot.slane %v486_v15, 1 }
 0x106   : > { %v2689_v33 = vsub.f32 %v1174_v18, %v22317_v25  ;;  %v717_v18 = vrot.slane %v716_v14, 1 }
 0x108   : > { %v2690_v39 = vand.u32 4294901760, %v2689_v33 }
 0x109   : > { %2381 = vmatmul.mubr.f32.vlgmr.msra.gmra.mrb[0].mxu0 %v2217_v31  ;;  %v880_v31 = vmul.f32 0.125, %v706_v22 }
 0x10a   : > { %2389 = vmatpush1.xpose.msra.mxu0 %v22279_v23  ;;  %2455 = vmatprep.mubr.f32.mxu0 %v2212_v24 }
 0x10b   : > { %2467 = vmatprep.subr.mxu0 %v2212_v24  ;;  %v848_v24 = vmul.f32 0.125, %v482_v16 }
 0x10d   : > { %v912_v32 = vmul.f32 %v848_v24, %v848_v24  ;;  %v1008_v57 = vsub.f32 %v22290_v47, %v848_v24  ;;  %v718_v24 = vadd.f32 %v717_v18, %v716_v14 }
 0x10f   : > { %v944_v38 = vsub.f32 %v880_v31, %v912_v32  ;;  %v488_v31 = vadd.f32 %v487_v21, %v486_v15 }
 0x111   : > { %2459 = vmatmul.mubr.f32.vlgmr.msra.gmra.mrb[0].mxu0 %v2218_v36  ;;  %v976_v41 = vmax.f32 %v944_v38, 0.0 }
 0x112   : > { %2471 = vmatpush1.xpose.msra.mxu0 %v2218_v36  ;;  %2535 = vmatprep.mubr.f32.mxu0 %v22272_v46  ;;  %v847_v36 = vmul.f32 0.125, %v476_v29 }
 0x113   : > { %2543 = vmatprep.subr.mxu0 %v22272_v46  ;;  %v1040_v44 = vadd.f32 1e-05, %v976_v41 }
 0x114   : > { %v911_v10 = vmul.f32 %v847_v36, %v847_v36  ;;  %v1007_v0 = vsub.f32 %v22298_v54, %v847_v36  ;;  %v709_v54 = vrot.slane %v708_v9, 2 }
 0x115   : > { %21964 = vrsqrt.f32 %v1040_v44 }
 0x116   : > { %v943_v42 = vsub.f32 %v879_v40, %v911_v10  ;;  %v710_v22 = vadd.f32 %v709_v54, %v708_v9 }
 0x118   : > { %v975_v4 = vmax.f32 %v943_v42, 0.0  ;;  %v711_v32 = vrot.slane %v710_v22, 1 }
 0x119   : > { %2537 = vmatmul.mubr.f32.vlgmr.msra.gmra.mrb[0].mxu0 %v22279_v23 }
 0x11a   : > { %2545 = vmatpush1.xpose.msra.mxu0 %v22279_v23  ;;  %2609 = vmatprep.mubr.f32.mxu0 %v22272_v46  ;;  %v2691_v46 = vsub.f32 %v2689_v33, %v2690_v39  ;;  %v712_v38 = vadd.f32 %v711_v32, %v710_v22 }
 0x11b   : > { %2617 = vmatprep.subr.mxu0 %v22310_v50 }
 0x11c   : > { %v2692_v27 = vand.u32 4294901760, %v2691_v46  ;;  %v881_v41 = vmul.f32 0.125, %v712_v38 }
 0x11f   : > { %v21965_v58 = vpop.eup %21964 }
 0x120   : > { %v1104_v37 = vmul.f32 %v21965_v58, %v1008_v57  ;;  %v725_v57 = vrot.slane %v628_v53, 4  ;;  %v22374_v58 = vld [vmem:[%s22164_s9 + $0x60] sm:$0xff] }
 0x121   : > { %2611 = vmatmul.mubr.f32.vlgmr.msra.gmra.mrb[0].mxu0 %v22279_v23  ;;  %v1039_v23 = vadd.f32 1e-05, %v975_v4  ;;  %v495_v61 = vrot.slane %v22374_v58, 4  ;;  %v627_v62 = vmul.f32 %v22374_v58, %v22374_v58 }
 0x122   : > { %2619 = vmatpush1.xpose.msra.mxu0 %v22317_v25  ;;  %2687 = vmatprep.mubr.f32.mxu0 %v2686_v26  ;;  %v1141_v6 = vmul.f32 %v22196_v13, %v1104_v37  ;;  %v503_v37 = vrot.slane %v502_v55, 2  ;;  %v726_v63 = vadd.f32 %v725_v57, %v628_v53  ;;  %v513_v53 = vrot.slane %v22404_v51, 4 }
 0x123   : > { %2703 = vmatprep.subr.mxu0 %v2686_v26  ;;  %21966 = vrsqrt.f32 %v1039_v23  ;;  %v719_v45 = vrot.slane %v627_v62, 4 }
 0x124   : > { %v1177_v7 = vadd.f32 %v22200_v3, %v1141_v6  ;;  %v727_v6 = vrot.slane %v726_v63, 2  ;;  %v514_v57 = vadd.f32 %v513_v53, %v22404_v51  ;;  %v22442_v53 = vld [vmem:[%s22164_s9 + $0x88] sm:$0xff] }
 0x126   : > { %v22348_v52 = vand.u32 4294901760, %v1177_v7  ;;  %v728_v15 = vadd.f32 %v727_v6, %v726_v63 }
 0x128   : > { %v3155_v20 = vsub.f32 %v1177_v7, %v22348_v52 }
 0x129   : > { %2693 = vmatmul.mubr.f32.vlgmr.msra.gmra.mrb[0].mxu0 %v2692_v27 }
 0x12a   : > { %2709 = vmatpush1.xpose.msra.mxu0 %v2692_v27  ;;  %2773 = vmatprep.mubr.f32.mxu0 %v22310_v50  ;;  %v3156_v30 = vand.u32 4294901760, %v3155_v20 }
 0x12b   : > { %2782 = vmatprep.subr.mxu0 %v2683_v19 }
 0x12c   : > { %v3157_v36 = vsub.f32 %v3155_v20, %v3156_v30 }
 0x12d   : > { %v21967_v47 = vpop.eup %21966 }
 0x12e   : > { %v1103_v11 = vmul.f32 %v21967_v47, %v1007_v0  ;;  %v3158_v10 = vand.u32 4294901760, %v3157_v36  ;;  %v496_v0 = vadd.f32 %v495_v61, %v22374_v58  ;;  %v504_v47 = vadd.f32 %v503_v37, %v502_v55 }
 0x12f   : > { %v630_v55 = vmul.f32 %v22404_v51, %v22404_v51 }
 0x130   : > { %v1140_v16 = vmul.f32 %v22196_v13, %v1103_v11  ;;  %v497_v9 = vrot.slane %v496_v0, 2  ;;  %v720_v11 = vadd.f32 %v719_v45, %v627_v62  ;;  %v505_v14 = vrot.slane %v504_v47, 1 }
 0x131   : > { %2775 = vmatmul.mubr.f32.vlgmr.msra.gmra.mrb[0].mxu0 %v22317_v25 }
 0x132   : > { %2785 = vmatpush1.xpose.msra.mxu0 %v2689_v33  ;;  %2850 = vmatprep.mubr.f32.mxu0 %v2683_v19  ;;  %v1176_v19 = vadd.f32 %v22200_v3, %v1140_v16  ;;  %v498_v16 = vadd.f32 %v497_v9, %v496_v0  ;;  %v506_v18 = vadd.f32 %v505_v14, %v504_v47 }
 0x133   : > { %2859 = vmatprep.subr.mxu0 %v22310_v50 }
 0x134   : > { %v22355_v29 = vand.u32 4294901760, %v1176_v19  ;;  %v499_v22 = vrot.slane %v498_v16, 1 }
 0x136   : > { %v3161_v35 = vsub.f32 %v1176_v19, %v22355_v29  ;;  %v729_v19 = vrot.slane %v728_v15, 1 }
 0x138   : > { %v3162_v40 = vand.u32 4294901760, %v3161_v35 }
 0x139   : > { %2853 = vmatmul.mubr.f32.vlgmr.msra.gmra.mrb[0].mxu0 %v2689_v33  ;;  %v882_v33 = vmul.f32 0.125, %v718_v24 }
 0x13a   : > { %2861 = vmatpush1.xpose.msra.mxu0 %v22317_v25  ;;  %2927 = vmatprep.mubr.f32.mxu0 %v2684_v28 }
 0x13b   : > { %2939 = vmatprep.subr.mxu0 %v2684_v28  ;;  %v850_v28 = vmul.f32 0.125, %v494_v17 }
 0x13d   : > { %v914_v34 = vmul.f32 %v850_v28, %v850_v28  ;;  %v1010_v59 = vsub.f32 %v22328_v48, %v850_v28  ;;  %v730_v28 = vadd.f32 %v729_v19, %v728_v15 }
 0x13f   : > { %v946_v26 = vsub.f32 %v882_v33, %v914_v34  ;;  %v500_v33 = vadd.f32 %v499_v22, %v498_v16 }
 0x141   : > { %2931 = vmatmul.mubr.f32.vlgmr.msra.gmra.mrb[0].mxu0 %v2690_v39  ;;  %v978_v42 = vmax.f32 %v946_v26, 0.0 }
 0x142   : > { %2943 = vmatpush1.xpose.msra.mxu0 %v2690_v39  ;;  %3007 = vmatprep.mubr.f32.mxu0 %v22310_v50  ;;  %v849_v39 = vmul.f32 0.125, %v488_v31 }
 0x143   : > { %3015 = vmatprep.subr.mxu0 %v22310_v50  ;;  %v1042_v27 = vadd.f32 1e-05, %v978_v42 }
 0x144   : > { %v913_v46 = vmul.f32 %v849_v39, %v849_v39  ;;  %v1009_v5 = vsub.f32 %v22336_v56, %v849_v39  ;;  %v721_v56 = vrot.slane %v720_v11, 2 }
 0x145   : > { %21968 = vrsqrt.f32 %v1042_v27 }
 0x146   : > { %v945_v44 = vsub.f32 %v881_v41, %v913_v46  ;;  %v722_v24 = vadd.f32 %v721_v56, %v720_v11 }
 0x148   : > { %v977_v23 = vmax.f32 %v945_v44, 0.0  ;;  %v723_v34 = vrot.slane %v722_v24, 1 }
 0x149   : > { %3009 = vmatmul.mubr.f32.vlgmr.msra.gmra.mrb[0].mxu0 %v22317_v25 }
 0x14a   : > { %3017 = vmatpush1.xpose.msra.mxu0 %v22317_v25  ;;  %3081 = vmatprep.mubr.f32.mxu0 %v22310_v50  ;;  %v3163_v50 = vsub.f32 %v3161_v35, %v3162_v40  ;;  %v724_v26 = vadd.f32 %v723_v34, %v722_v24 }
 0x14b   : > { %3089 = vmatprep.subr.mxu0 %v22348_v52 }
 0x14c   : > { %v3164_v4 = vand.u32 4294901760, %v3163_v50  ;;  %v883_v42 = vmul.f32 0.125, %v724_v26 }
 0x14f   : > { %v21969_v60 = vpop.eup %21968 }
 0x150   : > { %v1106_v43 = vmul.f32 %v21969_v60, %v1010_v59  ;;  %v737_v59 = vrot.slane %v630_v55, 4  ;;  %v22412_v60 = vld [vmem:[%s22164_s9 + $0x70] sm:$0xff] }
 0x151   : > { %3083 = vmatmul.mubr.f32.vlgmr.msra.gmra.mrb[0].mxu0 %v22317_v25  ;;  %v1041_v25 = vadd.f32 1e-05, %v977_v23  ;;  %v507_v37 = vrot.slane %v22412_v60, 4  ;;  %v629_v63 = vmul.f32 %v22412_v60, %v22412_v60 }
 0x152   : > { %3091 = vmatpush1.xpose.msra.mxu0 %v22355_v29  ;;  %3159 = vmatprep.mubr.f32.mxu0 %v3158_v10  ;;  %v1143_v7 = vmul.f32 %v22196_v13, %v1106_v43  ;;  %v515_v43 = vrot.slane %v514_v57, 2  ;;  %v738_v0 = vadd.f32 %v737_v59, %v630_v55  ;;  %v525_v55 = vrot.slane %v22442_v53, 4 }
 0x153   : > { %3175 = vmatprep.subr.mxu0 %v3158_v10  ;;  %21970 = vrsqrt.f32 %v1041_v25  ;;  %v731_v47 = vrot.slane %v629_v63, 4 }
 0x154   : > { %v1179_v8 = vadd.f32 %v22200_v3, %v1143_v7  ;;  %v739_v7 = vrot.slane %v738_v0, 2  ;;  %v526_v59 = vadd.f32 %v525_v55, %v22442_v53  ;;  %v22480_v55 = vld [vmem:[%s22164_s9 + $0x98] sm:$0xff] }
 0x156   : > { %v22386_v54 = vand.u32 4294901760, %v1179_v8  ;;  %v740_v16 = vadd.f32 %v739_v7, %v738_v0 }
 0x158   : > { %v3627_v21 = vsub.f32 %v1179_v8, %v22386_v54 }
 0x159   : > { %3165 = vmatmul.mubr.f32.vlgmr.msra.gmra.mrb[0].mxu0 %v3164_v4 }
 0x15a   : > { %3181 = vmatpush1.xpose.msra.mxu0 %v3164_v4  ;;  %3245 = vmatprep.mubr.f32.mxu0 %v22348_v52  ;;  %v3628_v32 = vand.u32 4294901760, %v3627_v21 }
 0x15b   : > { %3254 = vmatprep.subr.mxu0 %v3155_v20 }
 0x15c   : > { %v3629_v39 = vsub.f32 %v3627_v21, %v3628_v32 }
 0x15d   : > { %v21971_v48 = vpop.eup %21970 }
 0x15e   : > { %v1105_v12 = vmul.f32 %v21971_v48, %v1009_v5  ;;  %v3630_v46 = vand.u32 4294901760, %v3629_v39  ;;  %v508_v5 = vadd.f32 %v507_v37, %v22412_v60  ;;  %v516_v48 = vadd.f32 %v515_v43, %v514_v57 }
 0x15f   : > { %v632_v57 = vmul.f32 %v22442_v53, %v22442_v53 }
 0x160   : > { %v1142_v17 = vmul.f32 %v22196_v13, %v1105_v12  ;;  %v509_v11 = vrot.slane %v508_v5, 2  ;;  %v732_v12 = vadd.f32 %v731_v47, %v629_v63  ;;  %v517_v15 = vrot.slane %v516_v48, 1 }
 0x161   : > { %3247 = vmatmul.mubr.f32.vlgmr.msra.gmra.mrb[0].mxu0 %v22355_v29 }
 0x162   : > { %3257 = vmatpush1.xpose.msra.mxu0 %v3161_v35  ;;  %3322 = vmatprep.mubr.f32.mxu0 %v3155_v20  ;;  %v1178_v20 = vadd.f32 %v22200_v3, %v1142_v17  ;;  %v510_v17 = vadd.f32 %v509_v11, %v508_v5  ;;  %v518_v19 = vadd.f32 %v517_v15, %v516_v48 }
 0x163   : > { %3331 = vmatprep.subr.mxu0 %v22348_v52 }
 0x164   : > { %v22393_v31 = vand.u32 4294901760, %v1178_v20  ;;  %v511_v24 = vrot.slane %v510_v17, 1 }
 0x166   : > { %v3633_v38 = vsub.f32 %v1178_v20, %v22393_v31  ;;  %v741_v20 = vrot.slane %v740_v16, 1 }
 0x168   : > { %v3634_v41 = vand.u32 4294901760, %v3633_v38 }
 0x169   : > { %3325 = vmatmul.mubr.f32.vlgmr.msra.gmra.mrb[0].mxu0 %v3161_v35  ;;  %v884_v35 = vmul.f32 0.125, %v730_v28 }
 0x16a   : > { %3333 = vmatpush1.xpose.msra.mxu0 %v22355_v29  ;;  %3399 = vmatprep.mubr.f32.mxu0 %v3156_v30 }
 0x16b   : > { %3411 = vmatprep.subr.mxu0 %v3156_v30  ;;  %v852_v30 = vmul.f32 0.125, %v506_v18 }
 0x16d   : > { %v916_v36 = vmul.f32 %v852_v30, %v852_v30  ;;  %v1012_v61 = vsub.f32 %v22366_v49, %v852_v30  ;;  %v742_v30 = vadd.f32 %v741_v20, %v740_v16 }
 0x16f   : > { %v948_v10 = vsub.f32 %v884_v35, %v916_v36  ;;  %v512_v35 = vadd.f32 %v511_v24, %v510_v17 }
 0x171   : > { %3403 = vmatmul.mubr.f32.vlgmr.msra.gmra.mrb[0].mxu0 %v3162_v40  ;;  %v980_v44 = vmax.f32 %v948_v10, 0.0 }
 0x172   : > { %3415 = vmatpush1.xpose.msra.mxu0 %v3162_v40  ;;  %3479 = vmatprep.mubr.f32.mxu0 %v22348_v52  ;;  %v851_v40 = vmul.f32 0.125, %v500_v33 }
 0x173   : > { %3487 = vmatprep.subr.mxu0 %v22348_v52  ;;  %v1044_v4 = vadd.f32 1e-05, %v980_v44 }
 0x174   : > { %v915_v50 = vmul.f32 %v851_v40, %v851_v40  ;;  %v1011_v6 = vsub.f32 %v22374_v58, %v851_v40  ;;  %v733_v58 = vrot.slane %v732_v12, 2 }
 0x175   : > { %21972 = vrsqrt.f32 %v1044_v4 }
 0x176   : > { %v947_v27 = vsub.f32 %v883_v42, %v915_v50  ;;  %v734_v28 = vadd.f32 %v733_v58, %v732_v12 }
 0x178   : > { %v979_v25 = vmax.f32 %v947_v27, 0.0  ;;  %v735_v36 = vrot.slane %v734_v28, 1 }
 0x179   : > { %3481 = vmatmul.mubr.f32.vlgmr.msra.gmra.mrb[0].mxu0 %v22355_v29 }
 0x17a   : > { %3489 = vmatpush1.xpose.msra.mxu0 %v22355_v29  ;;  %3553 = vmatprep.mubr.f32.mxu0 %v22348_v52  ;;  %v3635_v52 = vsub.f32 %v3633_v38, %v3634_v41  ;;  %v736_v10 = vadd.f32 %v735_v36, %v734_v28 }
 0x17b   : > { %3561 = vmatprep.subr.mxu0 %v22386_v54 }
 0x17c   : > { %v3636_v23 = vand.u32 4294901760, %v3635_v52  ;;  %v885_v44 = vmul.f32 0.125, %v736_v10 }
 0x17f   : > { %v21973_v62 = vpop.eup %21972 }
 0x180   : > { %v1108_v45 = vmul.f32 %v21973_v62, %v1012_v61  ;;  %v749_v61 = vrot.slane %v632_v57, 4  ;;  %v22450_v62 = vld [vmem:[%s22164_s9 + $0x80] sm:$0xff] }
 0x181   : > { %3555 = vmatmul.mubr.f32.vlgmr.msra.gmra.mrb[0].mxu0 %v22355_v29  ;;  %v1043_v29 = vadd.f32 1e-05, %v979_v25  ;;  %v519_v43 = vrot.slane %v22450_v62, 4  ;;  %v631_v0 = vmul.f32 %v22450_v62, %v22450_v62 }
 0x182   : > { %3563 = vmatpush1.xpose.msra.mxu0 %v22393_v31  ;;  %3631 = vmatprep.mubr.f32.mxu0 %v3630_v46  ;;  %v1145_v8 = vmul.f32 %v22196_v13, %v1108_v45  ;;  %v527_v45 = vrot.slane %v526_v59, 2  ;;  %v750_v5 = vadd.f32 %v749_v61, %v632_v57  ;;  %v537_v57 = vrot.slane %v22480_v55, 4 }
 0x183   : > { %3647 = vmatprep.subr.mxu0 %v3630_v46  ;;  %21974 = vrsqrt.f32 %v1043_v29  ;;  %v743_v48 = vrot.slane %v631_v0, 4 }
 0x184   : > { %v1181_v9 = vadd.f32 %v22200_v3, %v1145_v8  ;;  %v751_v8 = vrot.slane %v750_v5, 2  ;;  %v538_v61 = vadd.f32 %v537_v57, %v22480_v55  ;;  %v22518_v57 = vld [vmem:[%s22164_s9 + $0xa8] sm:$0xff] }
 0x186   : > { %v22424_v56 = vand.u32 4294901760, %v1181_v9  ;;  %v752_v17 = vadd.f32 %v751_v8, %v750_v5 }
 0x188   : > { %v4099_v22 = vsub.f32 %v1181_v9, %v22424_v56 }
 0x189   : > { %3637 = vmatmul.mubr.f32.vlgmr.msra.gmra.mrb[0].mxu0 %v3636_v23 }
 0x18a   : > { %3653 = vmatpush1.xpose.msra.mxu0 %v3636_v23  ;;  %3717 = vmatprep.mubr.f32.mxu0 %v22386_v54  ;;  %v4100_v34 = vand.u32 4294901760, %v4099_v22 }
 0x18b   : > { %3726 = vmatprep.subr.mxu0 %v3627_v21 }
 0x18c   : > { %v4101_v40 = vsub.f32 %v4099_v22, %v4100_v34 }
 0x18d   : > { %v21975_v49 = vpop.eup %21974 }
 0x18e   : > { %v1107_v14 = vmul.f32 %v21975_v49, %v1011_v6  ;;  %v4102_v50 = vand.u32 4294901760, %v4101_v40  ;;  %v520_v6 = vadd.f32 %v519_v43, %v22450_v62  ;;  %v528_v49 = vadd.f32 %v527_v45, %v526_v59 }
 0x18f   : > { %v634_v59 = vmul.f32 %v22480_v55, %v22480_v55 }
 0x190   : > { %v1144_v18 = vmul.f32 %v22196_v13, %v1107_v14  ;;  %v521_v12 = vrot.slane %v520_v6, 2  ;;  %v744_v14 = vadd.f32 %v743_v48, %v631_v0  ;;  %v529_v16 = vrot.slane %v528_v49, 1 }
 0x191   : > { %3719 = vmatmul.mubr.f32.vlgmr.msra.gmra.mrb[0].mxu0 %v22393_v31 }
 0x192   : > { %3729 = vmatpush1.xpose.msra.mxu0 %v3633_v38  ;;  %3794 = vmatprep.mubr.f32.mxu0 %v3627_v21  ;;  %v1180_v21 = vadd.f32 %v22200_v3, %v1144_v18  ;;  %v522_v18 = vadd.f32 %v521_v12, %v520_v6  ;;  %v530_v20 = vadd.f32 %v529_v16, %v528_v49 }
 0x193   : > { %3803 = vmatprep.subr.mxu0 %v22386_v54 }
 0x194   : > { %v22431_v33 = vand.u32 4294901760, %v1180_v21  ;;  %v523_v28 = vrot.slane %v522_v18, 1 }
 0x196   : > { %v4105_v26 = vsub.f32 %v1180_v21, %v22431_v33  ;;  %v753_v21 = vrot.slane %v752_v17, 1 }
 0x198   : > { %v4106_v42 = vand.u32 4294901760, %v4105_v26 }
 0x199   : > { %3797 = vmatmul.mubr.f32.vlgmr.msra.gmra.mrb[0].mxu0 %v3633_v38  ;;  %v886_v38 = vmul.f32 0.125, %v742_v30 }
 0x19a   : > { %3805 = vmatpush1.xpose.msra.mxu0 %v22393_v31  ;;  %3871 = vmatprep.mubr.f32.mxu0 %v3628_v32 }
 0x19b   : > { %3883 = vmatprep.subr.mxu0 %v3628_v32  ;;  %v854_v32 = vmul.f32 0.125, %v518_v19 }
 0x19d   : > { %v918_v39 = vmul.f32 %v854_v32, %v854_v32  ;;  %v1014_v37 = vsub.f32 %v22404_v51, %v854_v32  ;;  %v754_v32 = vadd.f32 %v753_v21, %v752_v17 }
 0x19f   : > { %v950_v46 = vsub.f32 %v886_v38, %v918_v39  ;;  %v524_v38 = vadd.f32 %v523_v28, %v522_v18 }
 0x1a1   : > { %3875 = vmatmul.mubr.f32.vlgmr.msra.gmra.mrb[0].mxu0 %v3634_v41  ;;  %v982_v27 = vmax.f32 %v950_v46, 0.0 }
 0x1a2   : > { %3887 = vmatpush1.xpose.msra.mxu0 %v3634_v41  ;;  %3951 = vmatprep.mubr.f32.mxu0 %v22386_v54  ;;  %v853_v41 = vmul.f32 0.125, %v512_v35 }
 0x1a3   : > { %3959 = vmatprep.subr.mxu0 %v22386_v54  ;;  %v1046_v23 = vadd.f32 1e-05, %v982_v27 }
 0x1a4   : > { %v917_v52 = vmul.f32 %v853_v41, %v853_v41  ;;  %v1013_v7 = vsub.f32 %v22412_v60, %v853_v41  ;;  %v745_v60 = vrot.slane %v744_v14, 2 }
 0x1a5   : > { %21976 = vrsqrt.f32 %v1046_v23 }
 0x1a6   : > { %v949_v4 = vsub.f32 %v885_v44, %v917_v52  ;;  %v746_v30 = vadd.f32 %v745_v60, %v744_v14 }
 0x1a8   : > { %v981_v29 = vmax.f32 %v949_v4, 0.0  ;;  %v747_v39 = vrot.slane %v746_v30, 1 }
 0x1a9   : > { %3953 = vmatmul.mubr.f32.vlgmr.msra.gmra.mrb[0].mxu0 %v22393_v31 }
 0x1aa   : > { %3961 = vmatpush1.xpose.msra.mxu0 %v22393_v31  ;;  %4025 = vmatprep.mubr.f32.mxu0 %v22386_v54  ;;  %v4107_v54 = vsub.f32 %v4105_v26, %v4106_v42  ;;  %v748_v46 = vadd.f32 %v747_v39, %v746_v30 }
 0x1ab   : > { %4033 = vmatprep.subr.mxu0 %v22424_v56 }
 0x1ac   : > { %v4108_v25 = vand.u32 4294901760, %v4107_v54  ;;  %v887_v27 = vmul.f32 0.125, %v748_v46 }
 0x1af   : > { %v21977_v63 = vpop.eup %21976 }
 0x1b0   : > { %v1110_v47 = vmul.f32 %v21977_v63, %v1014_v37  ;;  %v761_v37 = vrot.slane %v634_v59, 4  ;;  %v22488_v63 = vld [vmem:[%s22164_s9 + $0x90] sm:$0xff] }
 0x1b1   : > { %4027 = vmatmul.mubr.f32.vlgmr.msra.gmra.mrb[0].mxu0 %v22393_v31  ;;  %v1045_v31 = vadd.f32 1e-05, %v981_v29  ;;  %v531_v45 = vrot.slane %v22488_v63, 4  ;;  %v633_v5 = vmul.f32 %v22488_v63, %v22488_v63 }
 0x1b2   : > { %4035 = vmatpush1.xpose.msra.mxu0 %v22431_v33  ;;  %4103 = vmatprep.mubr.f32.mxu0 %v4102_v50  ;;  %v1147_v9 = vmul.f32 %v22196_v13, %v1110_v47  ;;  %v539_v47 = vrot.slane %v538_v61, 2  ;;  %v762_v6 = vadd.f32 %v761_v37, %v634_v59  ;;  %v549_v59 = vrot.slane %v22518_v57, 4 }
 0x1b3   : > { %4119 = vmatprep.subr.mxu0 %v4102_v50  ;;  %21978 = vrsqrt.f32 %v1045_v31  ;;  %v755_v49 = vrot.slane %v633_v5, 4 }
 0x1b4   : > { %v1183_v11 = vadd.f32 %v22200_v3, %v1147_v9  ;;  %v763_v9 = vrot.slane %v762_v6, 2  ;;  %v550_v37 = vadd.f32 %v549_v59, %v22518_v57  ;;  %v22556_v59 = vld [vmem:[%s22164_s9 + $0xb8] sm:$0xff] }
 0x1b6   : > { %v22462_v58 = vand.u32 4294901760, %v1183_v11  ;;  %v764_v18 = vadd.f32 %v763_v9, %v762_v6 }
 0x1b8   : > { %v4571_v24 = vsub.f32 %v1183_v11, %v22462_v58 }
 0x1b9   : > { %4109 = vmatmul.mubr.f32.vlgmr.msra.gmra.mrb[0].mxu0 %v4108_v25 }
 0x1ba   : > { %4125 = vmatpush1.xpose.msra.mxu0 %v4108_v25  ;;  %4189 = vmatprep.mubr.f32.mxu0 %v22424_v56  ;;  %v4572_v36 = vand.u32 4294901760, %v4571_v24 }
 0x1bb   : > { %4198 = vmatprep.subr.mxu0 %v4099_v22 }
 0x1bc   : > { %v4573_v41 = vsub.f32 %v4571_v24, %v4572_v36 }
 0x1bd   : > { %v21979_v51 = vpop.eup %21978 }
 0x1be   : > { %v1109_v15 = vmul.f32 %v21979_v51, %v1013_v7  ;;  %v4574_v52 = vand.u32 4294901760, %v4573_v41  ;;  %v532_v7 = vadd.f32 %v531_v45, %v22488_v63  ;;  %v540_v51 = vadd.f32 %v539_v47, %v538_v61 }
 0x1bf   : > { %v636_v61 = vmul.f32 %v22518_v57, %v22518_v57 }
 0x1c0   : > { %v1146_v19 = vmul.f32 %v22196_v13, %v1109_v15  ;;  %v533_v14 = vrot.slane %v532_v7, 2  ;;  %v756_v15 = vadd.f32 %v755_v49, %v633_v5  ;;  %v541_v17 = vrot.slane %v540_v51, 1 }
 0x1c1   : > { %4191 = vmatmul.mubr.f32.vlgmr.msra.gmra.mrb[0].mxu0 %v22431_v33 }
 0x1c2   : > { %4201 = vmatpush1.xpose.msra.mxu0 %v4105_v26  ;;  %4266 = vmatprep.mubr.f32.mxu0 %v4099_v22  ;;  %v1182_v22 = vadd.f32 %v22200_v3, %v1146_v19  ;;  %v534_v19 = vadd.f32 %v533_v14, %v532_v7  ;;  %v542_v21 = vadd.f32 %v541_v17, %v540_v51 }
 0x1c3   : > { %4275 = vmatprep.subr.mxu0 %v22424_v56 }
 0x1c4   : > { %v22469_v35 = vand.u32 4294901760, %v1182_v22  ;;  %v535_v30 = vrot.slane %v534_v19, 1 }
 0x1c6   : > { %v4577_v10 = vsub.f32 %v1182_v22, %v22469_v35  ;;  %v765_v22 = vrot.slane %v764_v18, 1 }
 0x1c8   : > { %v4578_v44 = vand.u32 4294901760, %v4577_v10 }
 0x1c9   : > { %4269 = vmatmul.mubr.f32.vlgmr.msra.gmra.mrb[0].mxu0 %v4105_v26  ;;  %v888_v26 = vmul.f32 0.125, %v754_v32 }
 0x1ca   : > { %4277 = vmatpush1.xpose.msra.mxu0 %v22431_v33  ;;  %4343 = vmatprep.mubr.f32.mxu0 %v4100_v34 }
 0x1cb   : > { %4355 = vmatprep.subr.mxu0 %v4100_v34  ;;  %v856_v34 = vmul.f32 0.125, %v530_v20 }
 0x1cd   : > { %v920_v40 = vmul.f32 %v856_v34, %v856_v34  ;;  %v1016_v43 = vsub.f32 %v22442_v53, %v856_v34  ;;  %v766_v34 = vadd.f32 %v765_v22, %v764_v18 }
 0x1cf   : > { %v952_v50 = vsub.f32 %v888_v26, %v920_v40  ;;  %v536_v26 = vadd.f32 %v535_v30, %v534_v19 }
 0x1d1   : > { %4347 = vmatmul.mubr.f32.vlgmr.msra.gmra.mrb[0].mxu0 %v4106_v42  ;;  %v984_v4 = vmax.f32 %v952_v50, 0.0 }
 0x1d2   : > { %4359 = vmatpush1.xpose.msra.mxu0 %v4106_v42  ;;  %4423 = vmatprep.mubr.f32.mxu0 %v22424_v56  ;;  %v855_v42 = vmul.f32 0.125, %v524_v38 }
 0x1d3   : > { %4431 = vmatprep.subr.mxu0 %v22424_v56  ;;  %v1048_v25 = vadd.f32 1e-05, %v984_v4 }
 0x1d4   : > { %v919_v54 = vmul.f32 %v855_v42, %v855_v42  ;;  %v1015_v8 = vsub.f32 %v22450_v62, %v855_v42  ;;  %v757_v62 = vrot.slane %v756_v15, 2 }
 0x1d5   : > { %21980 = vrsqrt.f32 %v1048_v25 }
 0x1d6   : > { %v951_v23 = vsub.f32 %v887_v27, %v919_v54  ;;  %v758_v32 = vadd.f32 %v757_v62, %v756_v15 }
 0x1d8   : > { %v983_v31 = vmax.f32 %v951_v23, 0.0  ;;  %v759_v40 = vrot.slane %v758_v32, 1 }
 0x1d9   : > { %4425 = vmatmul.mubr.f32.vlgmr.msra.gmra.mrb[0].mxu0 %v22431_v33 }
 0x1da   : > { %4433 = vmatpush1.xpose.msra.mxu0 %v22431_v33  ;;  %4497 = vmatprep.mubr.f32.mxu0 %v22424_v56  ;;  %v4579_v56 = vsub.f32 %v4577_v10, %v4578_v44  ;;  %v760_v50 = vadd.f32 %v759_v40, %v758_v32 }
 0x1db   : > { %4505 = vmatprep.subr.mxu0 %v22462_v58 }
 0x1dc   : > { %v4580_v29 = vand.u32 4294901760, %v4579_v56  ;;  %v889_v4 = vmul.f32 0.125, %v760_v50 }
 0x1df   : > { %v21981_v0 = vpop.eup %21980 }
 0x1e0   : > { %v1112_v48 = vmul.f32 %v21981_v0, %v1016_v43  ;;  %v773_v43 = vrot.slane %v636_v61, 4  ;;  %v22526_v0 = vld [vmem:[%s22164_s9 + $0xa0] sm:$0xff] }
 0x1e1   : > { %4499 = vmatmul.mubr.f32.vlgmr.msra.gmra.mrb[0].mxu0 %v22431_v33  ;;  %v1047_v33 = vadd.f32 1e-05, %v983_v31  ;;  %v543_v47 = vrot.slane %v22526_v0, 4  ;;  %v635_v6 = vmul.f32 %v22526_v0, %v22526_v0 }
 0x1e2   : > { %4507 = vmatpush1.xpose.msra.mxu0 %v22469_v35  ;;  %4575 = vmatprep.mubr.f32.mxu0 %v4574_v52  ;;  %v1149_v11 = vmul.f32 %v22196_v13, %v1112_v48  ;;  %v551_v48 = vrot.slane %v550_v37, 2  ;;  %v774_v7 = vadd.f32 %v773_v43, %v636_v61  ;;  %v561_v61 = vrot.slane %v22556_v59, 4 }
 0x1e3   : > { %4591 = vmatprep.subr.mxu0 %v4574_v52  ;;  %21982 = vrsqrt.f32 %v1047_v33  ;;  %v767_v51 = vrot.slane %v635_v6, 4 }
 0x1e4   : > { %v1185_v12 = vadd.f32 %v22200_v3, %v1149_v11  ;;  %v775_v11 = vrot.slane %v774_v7, 2  ;;  %v562_v43 = vadd.f32 %v561_v61, %v22556_v59  ;;  %v22594_v61 = vld [vmem:[%s22164_s9 + $0xc8] sm:$0xff] }
 0x1e6   : > { %v22500_v60 = vand.u32 4294901760, %v1185_v12  ;;  %v776_v19 = vadd.f32 %v775_v11, %v774_v7 }
 0x1e8   : > { %v5043_v28 = vsub.f32 %v1185_v12, %v22500_v60 }
 0x1e9   : > { %4581 = vmatmul.mubr.f32.vlgmr.msra.gmra.mrb[0].mxu0 %v4580_v29 }
 0x1ea   : > { %4597 = vmatpush1.xpose.msra.mxu0 %v4580_v29  ;;  %4661 = vmatprep.mubr.f32.mxu0 %v22462_v58  ;;  %v5044_v39 = vand.u32 4294901760, %v5043_v28 }
 0x1eb   : > { %4670 = vmatprep.subr.mxu0 %v4571_v24 }
 0x1ec   : > { %v5045_v42 = vsub.f32 %v5043_v28, %v5044_v39 }
 0x1ed   : > { %v21983_v53 = vpop.eup %21982 }
 0x1ee   : > { %v1111_v16 = vmul.f32 %v21983_v53, %v1015_v8  ;;  %v5046_v54 = vand.u32 4294901760, %v5045_v42  ;;  %v544_v8 = vadd.f32 %v543_v47, %v22526_v0  ;;  %v552_v53 = vadd.f32 %v551_v48, %v550_v37 }
 0x1ef   : > { %v638_v37 = vmul.f32 %v22556_v59, %v22556_v59 }
 0x1f0   : > { %v1148_v20 = vmul.f32 %v22196_v13, %v1111_v16  ;;  %v545_v15 = vrot.slane %v544_v8, 2  ;;  %v768_v16 = vadd.f32 %v767_v51, %v635_v6  ;;  %v553_v18 = vrot.slane %v552_v53, 1 }
 0x1f1   : > { %4663 = vmatmul.mubr.f32.vlgmr.msra.gmra.mrb[0].mxu0 %v22469_v35 }
 0x1f2   : > { %4673 = vmatpush1.xpose.msra.mxu0 %v4577_v10  ;;  %4738 = vmatprep.mubr.f32.mxu0 %v4571_v24  ;;  %v1184_v24 = vadd.f32 %v22200_v3, %v1148_v20  ;;  %v546_v20 = vadd.f32 %v545_v15, %v544_v8  ;;  %v554_v22 = vadd.f32 %v553_v18, %v552_v53 }
 0x1f3   : > { %4747 = vmatprep.subr.mxu0 %v22462_v58 }
 0x1f4   : > { %v22507_v38 = vand.u32 4294901760, %v1184_v24  ;;  %v547_v32 = vrot.slane %v546_v20, 1 }
 0x1f6   : > { %v5049_v46 = vsub.f32 %v1184_v24, %v22507_v38  ;;  %v777_v24 = vrot.slane %v776_v19, 1 }
 0x1f8   : > { %v5050_v27 = vand.u32 4294901760, %v5049_v46 }
 0x1f9   : > { %4741 = vmatmul.mubr.f32.vlgmr.msra.gmra.mrb[0].mxu0 %v4577_v10  ;;  %v890_v10 = vmul.f32 0.125, %v766_v34 }
 0x1fa   : > { %4749 = vmatpush1.xpose.msra.mxu0 %v22469_v35  ;;  %4815 = vmatprep.mubr.f32.mxu0 %v4572_v36 }
 0x1fb   : > { %4827 = vmatprep.subr.mxu0 %v4572_v36  ;;  %v858_v36 = vmul.f32 0.125, %v542_v21 }
 0x1fd   : > { %v922_v41 = vmul.f32 %v858_v36, %v858_v36  ;;  %v1018_v45 = vsub.f32 %v22480_v55, %v858_v36  ;;  %v778_v36 = vadd.f32 %v777_v24, %v776_v19 }
 0x1ff   : > { %v954_v52 = vsub.f32 %v890_v10, %v922_v41  ;;  %v548_v10 = vadd.f32 %v547_v32, %v546_v20 }
 0x201   : > { %4819 = vmatmul.mubr.f32.vlgmr.msra.gmra.mrb[0].mxu0 %v4578_v44  ;;  %v986_v23 = vmax.f32 %v954_v52, 0.0 }
 0x202   : > { %4831 = vmatpush1.xpose.msra.mxu0 %v4578_v44  ;;  %4895 = vmatprep.mubr.f32.mxu0 %v22462_v58  ;;  %v857_v44 = vmul.f32 0.125, %v536_v26 }
 0x203   : > { %4903 = vmatprep.subr.mxu0 %v22462_v58  ;;  %v1050_v29 = vadd.f32 1e-05, %v986_v23 }
 0x204   : > { %v921_v56 = vmul.f32 %v857_v44, %v857_v44  ;;  %v1017_v9 = vsub.f32 %v22488_v63, %v857_v44  ;;  %v769_v63 = vrot.slane %v768_v16, 2 }
 0x205   : > { %21984 = vrsqrt.f32 %v1050_v29 }
 0x206   : > { %v953_v25 = vsub.f32 %v889_v4, %v921_v56  ;;  %v770_v34 = vadd.f32 %v769_v63, %v768_v16 }
 0x208   : > { %v985_v33 = vmax.f32 %v953_v25, 0.0  ;;  %v771_v41 = vrot.slane %v770_v34, 1 }
 0x209   : > { %4897 = vmatmul.mubr.f32.vlgmr.msra.gmra.mrb[0].mxu0 %v22469_v35 }
 0x20a   : > { %4905 = vmatpush1.xpose.msra.mxu0 %v22469_v35  ;;  %4969 = vmatprep.mubr.f32.mxu0 %v22462_v58  ;;  %v5051_v58 = vsub.f32 %v5049_v46, %v5050_v27  ;;  %v772_v52 = vadd.f32 %v771_v41, %v770_v34 }
 0x20b   : > { %4977 = vmatprep.subr.mxu0 %v22500_v60 }
 0x20c   : > { %v5052_v31 = vand.u32 4294901760, %v5051_v58  ;;  %v891_v23 = vmul.f32 0.125, %v772_v52 }
 0x20f   : > { %v21985_v5 = vpop.eup %21984 }
 0x210   : > { %v1114_v49 = vmul.f32 %v21985_v5, %v1018_v45  ;;  %v785_v45 = vrot.slane %v638_v37, 4  ;;  %v22564_v5 = vld [vmem:[%s22164_s9 + $0xb0] sm:$0xff] }
 0x211   : > { %4971 = vmatmul.mubr.f32.vlgmr.msra.gmra.mrb[0].mxu0 %v22469_v35  ;;  %v1049_v35 = vadd.f32 1e-05, %v985_v33  ;;  %v555_v48 = vrot.slane %v22564_v5, 4  ;;  %v637_v7 = vmul.f32 %v22564_v5, %v22564_v5 }
 0x212   : > { %4979 = vmatpush1.xpose.msra.mxu0 %v22507_v38  ;;  %5047 = vmatprep.mubr.f32.mxu0 %v5046_v54  ;;  %v1151_v12 = vmul.f32 %v22196_v13, %v1114_v49  ;;  %v563_v49 = vrot.slane %v562_v43, 2  ;;  %v786_v8 = vadd.f32 %v785_v45, %v638_v37  ;;  %v573_v37 = vrot.slane %v22594_v61, 4 }
 0x213   : > { %5063 = vmatprep.subr.mxu0 %v5046_v54  ;;  %21986 = vrsqrt.f32 %v1049_v35  ;;  %v779_v53 = vrot.slane %v637_v7, 4 }
 0x214   : > { %v1187_v14 = vadd.f32 %v22200_v3, %v1151_v12  ;;  %v787_v12 = vrot.slane %v786_v8, 2  ;;  %v574_v45 = vadd.f32 %v573_v37, %v22594_v61  ;;  %v22632_v37 = vld [vmem:[%s22164_s9 + $0xd8] sm:$0xff] }
 0x216   : > { %v22538_v62 = vand.u32 4294901760, %v1187_v14  ;;  %v788_v20 = vadd.f32 %v787_v12, %v786_v8 }
 0x218   : > { %v5515_v30 = vsub.f32 %v1187_v14, %v22538_v62 }
 0x219   : > { %5053 = vmatmul.mubr.f32.vlgmr.msra.gmra.mrb[0].mxu0 %v5052_v31 }
 0x21a   : > { %5069 = vmatpush1.xpose.msra.mxu0 %v5052_v31  ;;  %5133 = vmatprep.mubr.f32.mxu0 %v22500_v60  ;;  %v5516_v40 = vand.u32 4294901760, %v5515_v30 }
 0x21b   : > { %5142 = vmatprep.subr.mxu0 %v5043_v28 }
 0x21c   : > { %v5517_v44 = vsub.f32 %v5515_v30, %v5516_v40 }
 0x21d   : > { %v21987_v55 = vpop.eup %21986 }
 0x21e   : > { %v1113_v17 = vmul.f32 %v21987_v55, %v1017_v9  ;;  %v5518_v56 = vand.u32 4294901760, %v5517_v44  ;;  %v556_v9 = vadd.f32 %v555_v48, %v22564_v5  ;;  %v564_v55 = vadd.f32 %v563_v49, %v562_v43 }
 0x21f   : > { %v640_v43 = vmul.f32 %v22594_v61, %v22594_v61 }
 0x220   : > { %v1150_v21 = vmul.f32 %v22196_v13, %v1113_v17  ;;  %v557_v16 = vrot.slane %v556_v9, 2  ;;  %v780_v17 = vadd.f32 %v779_v53, %v637_v7  ;;  %v565_v19 = vrot.slane %v564_v55, 1 }
 0x221   : > { %5135 = vmatmul.mubr.f32.vlgmr.msra.gmra.mrb[0].mxu0 %v22507_v38 }
 0x222   : > { %5145 = vmatpush1.xpose.msra.mxu0 %v5049_v46  ;;  %5210 = vmatprep.mubr.f32.mxu0 %v5043_v28  ;;  %v1186_v28 = vadd.f32 %v22200_v3, %v1150_v21  ;;  %v558_v21 = vadd.f32 %v557_v16, %v556_v9  ;;  %v566_v24 = vadd.f32 %v565_v19, %v564_v55 }
 0x223   : > { %5219 = vmatprep.subr.mxu0 %v22500_v60 }
 0x224   : > { %v22545_v26 = vand.u32 4294901760, %v1186_v28  ;;  %v559_v34 = vrot.slane %v558_v21, 1 }
 0x226   : > { %v5521_v50 = vsub.f32 %v1186_v28, %v22545_v26  ;;  %v789_v28 = vrot.slane %v788_v20, 1 }
 0x228   : > { %v5522_v4 = vand.u32 4294901760, %v5521_v50 }
 0x229   : > { %5213 = vmatmul.mubr.f32.vlgmr.msra.gmra.mrb[0].mxu0 %v5049_v46  ;;  %v892_v46 = vmul.f32 0.125, %v778_v36 }
 0x22a   : > { %5221 = vmatpush1.xpose.msra.mxu0 %v22507_v38  ;;  %5287 = vmatprep.mubr.f32.mxu0 %v5044_v39 }
 0x22b   : > { %5299 = vmatprep.subr.mxu0 %v5044_v39  ;;  %v860_v39 = vmul.f32 0.125, %v554_v22 }
 0x22d   : > { %v924_v42 = vmul.f32 %v860_v39, %v860_v39  ;;  %v1020_v47 = vsub.f32 %v22518_v57, %v860_v39  ;;  %v790_v39 = vadd.f32 %v789_v28, %v788_v20 }
 0x22f   : > { %v956_v54 = vsub.f32 %v892_v46, %v924_v42  ;;  %v560_v46 = vadd.f32 %v559_v34, %v558_v21 }
 0x231   : > { %5291 = vmatmul.mubr.f32.vlgmr.msra.gmra.mrb[0].mxu0 %v5050_v27  ;;  %v988_v25 = vmax.f32 %v956_v54, 0.0 }
 0x232   : > { %5303 = vmatpush1.xpose.msra.mxu0 %v5050_v27  ;;  %5367 = vmatprep.mubr.f32.mxu0 %v22500_v60  ;;  %v859_v27 = vmul.f32 0.125, %v548_v10 }
 0x233   : > { %5375 = vmatprep.subr.mxu0 %v22500_v60  ;;  %v1052_v31 = vadd.f32 1e-05, %v988_v25 }
 0x234   : > { %v923_v58 = vmul.f32 %v859_v27, %v859_v27  ;;  %v1019_v11 = vsub.f32 %v22526_v0, %v859_v27  ;;  %v781_v0 = vrot.slane %v780_v17, 2 }
 0x235   : > { %21988 = vrsqrt.f32 %v1052_v31 }
 0x236   : > { %v955_v29 = vsub.f32 %v891_v23, %v923_v58  ;;  %v782_v36 = vadd.f32 %v781_v0, %v780_v17 }
 0x238   : > { %v987_v35 = vmax.f32 %v955_v29, 0.0  ;;  %v783_v42 = vrot.slane %v782_v36, 1 }
 0x239   : > { %5369 = vmatmul.mubr.f32.vlgmr.msra.gmra.mrb[0].mxu0 %v22507_v38 }
 0x23a   : > { %5377 = vmatpush1.xpose.msra.mxu0 %v22507_v38  ;;  %5441 = vmatprep.mubr.f32.mxu0 %v22500_v60  ;;  %v5523_v60 = vsub.f32 %v5521_v50, %v5522_v4  ;;  %v784_v54 = vadd.f32 %v783_v42, %v782_v36 }
 0x23b   : > { %5449 = vmatprep.subr.mxu0 %v22538_v62 }
 0x23c   : > { %v5524_v33 = vand.u32 4294901760, %v5523_v60  ;;  %v893_v25 = vmul.f32 0.125, %v784_v54 }
 0x23f   : > { %v21989_v6 = vpop.eup %21988 }
 0x240   : > { %v1116_v51 = vmul.f32 %v21989_v6, %v1020_v47  ;;  %v797_v47 = vrot.slane %v640_v43, 4  ;;  %v22602_v6 = vld [vmem:[%s22164_s9 + $0xc0] sm:$0xff] }
 0x241   : > { %5443 = vmatmul.mubr.f32.vlgmr.msra.gmra.mrb[0].mxu0 %v22507_v38  ;;  %v1051_v38 = vadd.f32 1e-05, %v987_v35  ;;  %v567_v49 = vrot.slane %v22602_v6, 4  ;;  %v639_v8 = vmul.f32 %v22602_v6, %v22602_v6 }
 0x242   : > { %5451 = vmatpush1.xpose.msra.mxu0 %v22545_v26  ;;  %5519 = vmatprep.mubr.f32.mxu0 %v5518_v56  ;;  %v1153_v14 = vmul.f32 %v22196_v13, %v1116_v51  ;;  %v575_v51 = vrot.slane %v574_v45, 2  ;;  %v798_v9 = vadd.f32 %v797_v47, %v640_v43  ;;  %v585_v43 = vrot.slane %v22632_v37, 4 }
 0x243   : > { %5535 = vmatprep.subr.mxu0 %v5518_v56  ;;  %21990 = vrsqrt.f32 %v1051_v38  ;;  %v791_v55 = vrot.slane %v639_v8, 4 }
 0x244   : > { %v1189_v15 = vadd.f32 %v22200_v3, %v1153_v14  ;;  %v799_v14 = vrot.slane %v798_v9, 2  ;;  %v586_v47 = vadd.f32 %v585_v43, %v22632_v37  ;;  %v22670_v43 = vld [vmem:[%s22164_s9 + $0xe8] sm:$0xff] }
 0x246   : > { %v22576_v63 = vand.u32 4294901760, %v1189_v15  ;;  %v800_v21 = vadd.f32 %v799_v14, %v798_v9 }
 0x248   : > { %v5987_v32 = vsub.f32 %v1189_v15, %v22576_v63 }
 0x249   : > { %5525 = vmatmul.mubr.f32.vlgmr.msra.gmra.mrb[0].mxu0 %v5524_v33 }
 0x24a   : > { %5541 = vmatpush1.xpose.msra.mxu0 %v5524_v33  ;;  %5605 = vmatprep.mubr.f32.mxu0 %v22538_v62  ;;  %v5988_v41 = vand.u32 4294901760, %v5987_v32 }
 0x24b   : > { %5614 = vmatprep.subr.mxu0 %v5515_v30 }
 0x24c   : > { %v5989_v27 = vsub.f32 %v5987_v32, %v5988_v41 }
 0x24d   : > { %v21991_v57 = vpop.eup %21990 }
 0x24e   : > { %v1115_v18 = vmul.f32 %v21991_v57, %v1019_v11  ;;  %v5990_v58 = vand.u32 4294901760, %v5989_v27  ;;  %v568_v11 = vadd.f32 %v567_v49, %v22602_v6  ;;  %v576_v57 = vadd.f32 %v575_v51, %v574_v45 }
 0x24f   : > { %v642_v45 = vmul.f32 %v22632_v37, %v22632_v37 }
 0x250   : > { %v1152_v22 = vmul.f32 %v22196_v13, %v1115_v18  ;;  %v569_v17 = vrot.slane %v568_v11, 2  ;;  %v792_v18 = vadd.f32 %v791_v55, %v639_v8  ;;  %v577_v20 = vrot.slane %v576_v57, 1 }
 0x251   : > { %5607 = vmatmul.mubr.f32.vlgmr.msra.gmra.mrb[0].mxu0 %v22545_v26 }
 0x252   : > { %5617 = vmatpush1.xpose.msra.mxu0 %v5521_v50  ;;  %5682 = vmatprep.mubr.f32.mxu0 %v5515_v30  ;;  %v1188_v30 = vadd.f32 %v22200_v3, %v1152_v22  ;;  %v570_v22 = vadd.f32 %v569_v17, %v568_v11  ;;  %v578_v28 = vadd.f32 %v577_v20, %v576_v57 }
 0x253   : > { %5691 = vmatprep.subr.mxu0 %v22538_v62 }
 0x254   : > { %v22583_v10 = vand.u32 4294901760, %v1188_v30  ;;  %v571_v36 = vrot.slane %v570_v22, 1 }
 0x256   : > { %v5993_v52 = vsub.f32 %v1188_v30, %v22583_v10  ;;  %v801_v30 = vrot.slane %v800_v21, 1 }
 0x258   : > { %v5994_v23 = vand.u32 4294901760, %v5993_v52 }
 0x259   : > { %5685 = vmatmul.mubr.f32.vlgmr.msra.gmra.mrb[0].mxu0 %v5521_v50  ;;  %v894_v50 = vmul.f32 0.125, %v790_v39 }
 0x25a   : > { %5693 = vmatpush1.xpose.msra.mxu0 %v22545_v26  ;;  %5759 = vmatprep.mubr.f32.mxu0 %v5516_v40 }
 0x25b   : > { %5771 = vmatprep.subr.mxu0 %v5516_v40  ;;  %v862_v40 = vmul.f32 0.125, %v566_v24 }
 0x25d   : > { %v926_v44 = vmul.f32 %v862_v40, %v862_v40  ;;  %v1022_v48 = vsub.f32 %v22556_v59, %v862_v40  ;;  %v802_v40 = vadd.f32 %v801_v30, %v800_v21 }
 0x25f   : > { %v958_v56 = vsub.f32 %v894_v50, %v926_v44  ;;  %v572_v50 = vadd.f32 %v571_v36, %v570_v22 }
 0x261   : > { %5763 = vmatmul.mubr.f32.vlgmr.msra.gmra.mrb[0].mxu0 %v5522_v4  ;;  %v990_v29 = vmax.f32 %v958_v56, 0.0 }
 0x262   : > { %5775 = vmatpush1.xpose.msra.mxu0 %v5522_v4  ;;  %5839 = vmatprep.mubr.f32.mxu0 %v22538_v62  ;;  %v861_v4 = vmul.f32 0.125, %v560_v46 }
 0x263   : > { %5847 = vmatprep.subr.mxu0 %v22538_v62  ;;  %v1054_v33 = vadd.f32 1e-05, %v990_v29 }
 0x264   : > { %v925_v60 = vmul.f32 %v861_v4, %v861_v4  ;;  %v1021_v12 = vsub.f32 %v22564_v5, %v861_v4  ;;  %v793_v5 = vrot.slane %v792_v18, 2 }
 0x265   : > { %21992 = vrsqrt.f32 %v1054_v33 }
 0x266   : > { %v957_v31 = vsub.f32 %v893_v25, %v925_v60  ;;  %v794_v39 = vadd.f32 %v793_v5, %v792_v18 }
 0x268   : > { %v989_v38 = vmax.f32 %v957_v31, 0.0  ;;  %v795_v44 = vrot.slane %v794_v39, 1 }
 0x269   : > { %5841 = vmatmul.mubr.f32.vlgmr.msra.gmra.mrb[0].mxu0 %v22545_v26 }
 0x26a   : > { %5849 = vmatpush1.xpose.msra.mxu0 %v22545_v26  ;;  %5913 = vmatprep.mubr.f32.mxu0 %v22538_v62  ;;  %v5995_v62 = vsub.f32 %v5993_v52, %v5994_v23  ;;  %v796_v56 = vadd.f32 %v795_v44, %v794_v39 }
 0x26b   : > { %5921 = vmatprep.subr.mxu0 %v22576_v63 }
 0x26c   : > { %v5996_v35 = vand.u32 4294901760, %v5995_v62  ;;  %v895_v29 = vmul.f32 0.125, %v796_v56 }
 0x26f   : > { %v21993_v7 = vpop.eup %21992 }
 0x270   : > { %v1118_v53 = vmul.f32 %v21993_v7, %v1022_v48  ;;  %v809_v48 = vrot.slane %v642_v45, 4  ;;  %v22640_v7 = vld [vmem:[%s22164_s9 + $0xd0] sm:$0xff] }
 0x271   : > { %5915 = vmatmul.mubr.f32.vlgmr.msra.gmra.mrb[0].mxu0 %v22545_v26  ;;  %v1053_v26 = vadd.f32 1e-05, %v989_v38  ;;  %v579_v51 = vrot.slane %v22640_v7, 4  ;;  %v641_v9 = vmul.f32 %v22640_v7, %v22640_v7 }
 0x272   : > { %5923 = vmatpush1.xpose.msra.mxu0 %v22583_v10  ;;  %5991 = vmatprep.mubr.f32.mxu0 %v5990_v58  ;;  %v1155_v15 = vmul.f32 %v22196_v13, %v1118_v53  ;;  %v587_v53 = vrot.slane %v586_v47, 2  ;;  %v810_v11 = vadd.f32 %v809_v48, %v642_v45  ;;  %v597_v45 = vrot.slane %v22670_v43, 4 }
 0x273   : > { %6007 = vmatprep.subr.mxu0 %v5990_v58  ;;  %21994 = vrsqrt.f32 %v1053_v26  ;;  %v803_v57 = vrot.slane %v641_v9, 4 }
 0x274   : > { %v1191_v16 = vadd.f32 %v22200_v3, %v1155_v15  ;;  %v811_v15 = vrot.slane %v810_v11, 2  ;;  %v598_v48 = vadd.f32 %v597_v45, %v22670_v43  ;;  %v22714_v45 = vld [vmem:[%s22164_s9 + $0xf8] sm:$0xff] }
 0x276   : > { %v22614_v0 = vand.u32 4294901760, %v1191_v16  ;;  %v812_v22 = vadd.f32 %v811_v15, %v810_v11 }
 0x278   : > { %v6459_v34 = vsub.f32 %v1191_v16, %v22614_v0 }
 0x279   : > { %5997 = vmatmul.mubr.f32.vlgmr.msra.gmra.mrb[0].mxu0 %v5996_v35 }
 0x27a   : > { %6013 = vmatpush1.xpose.msra.mxu0 %v5996_v35  ;;  %6077 = vmatprep.mubr.f32.mxu0 %v22576_v63  ;;  %v6460_v42 = vand.u32 4294901760, %v6459_v34 }
 0x27b   : > { %6086 = vmatprep.subr.mxu0 %v5987_v32 }
 0x27c   : > { %v6461_v4 = vsub.f32 %v6459_v34, %v6460_v42 }
 0x27d   : > { %v21995_v59 = vpop.eup %21994 }
 0x27e   : > { %v1117_v19 = vmul.f32 %v21995_v59, %v1021_v12  ;;  %v6462_v60 = vand.u32 4294901760, %v6461_v4  ;;  %v580_v12 = vadd.f32 %v579_v51, %v22640_v7  ;;  %v588_v59 = vadd.f32 %v587_v53, %v586_v47 }
 0x27f   : > { %v644_v47 = vmul.f32 %v22670_v43, %v22670_v43 }
 0x280   : > { %v1154_v24 = vmul.f32 %v22196_v13, %v1117_v19  ;;  %v581_v18 = vrot.slane %v580_v12, 2  ;;  %v804_v19 = vadd.f32 %v803_v57, %v641_v9  ;;  %v589_v21 = vrot.slane %v588_v59, 1 }
 0x281   : > { %6079 = vmatmul.mubr.f32.vlgmr.msra.gmra.mrb[0].mxu0 %v22583_v10 }
 0x282   : > { %6089 = vmatpush1.xpose.msra.mxu0 %v5993_v52  ;;  %6154 = vmatprep.mubr.f32.mxu0 %v5987_v32  ;;  %v1190_v32 = vadd.f32 %v22200_v3, %v1154_v24  ;;  %v582_v24 = vadd.f32 %v581_v18, %v580_v12  ;;  %v590_v30 = vadd.f32 %v589_v21, %v588_v59 }
 0x283   : > { %6163 = vmatprep.subr.mxu0 %v22576_v63 }
 0x284   : > { %v22621_v46 = vand.u32 4294901760, %v1190_v32  ;;  %v583_v39 = vrot.slane %v582_v24, 1 }
 0x286   : > { %v6465_v54 = vsub.f32 %v1190_v32, %v22621_v46  ;;  %v813_v32 = vrot.slane %v812_v22, 1 }
 0x288   : > { %v6466_v25 = vand.u32 4294901760, %v6465_v54 }
 0x289   : > { %6157 = vmatmul.mubr.f32.vlgmr.msra.gmra.mrb[0].mxu0 %v5993_v52  ;;  %v896_v52 = vmul.f32 0.125, %v802_v40 }
 0x28a   : > { %6165 = vmatpush1.xpose.msra.mxu0 %v22583_v10  ;;  %6231 = vmatprep.mubr.f32.mxu0 %v5988_v41 }
 0x28b   : > { %6243 = vmatprep.subr.mxu0 %v5988_v41  ;;  %v864_v41 = vmul.f32 0.125, %v578_v28 }
 0x28d   : > { %v928_v27 = vmul.f32 %v864_v41, %v864_v41  ;;  %v1024_v49 = vsub.f32 %v22594_v61, %v864_v41  ;;  %v814_v41 = vadd.f32 %v813_v32, %v812_v22 }
 0x28f   : > { %v960_v58 = vsub.f32 %v896_v52, %v928_v27  ;;  %v584_v52 = vadd.f32 %v583_v39, %v582_v24 }
 0x291   : > { %6235 = vmatmul.mubr.f32.vlgmr.msra.gmra.mrb[0].mxu0 %v5994_v23  ;;  %v992_v31 = vmax.f32 %v960_v58, 0.0 }
 0x292   : > { %6247 = vmatpush1.xpose.msra.mxu0 %v5994_v23  ;;  %6311 = vmatprep.mubr.f32.mxu0 %v22576_v63  ;;  %v863_v23 = vmul.f32 0.125, %v572_v50 }
 0x293   : > { %6319 = vmatprep.subr.mxu0 %v22576_v63  ;;  %v1056_v35 = vadd.f32 1e-05, %v992_v31 }
 0x294   : > { %v927_v62 = vmul.f32 %v863_v23, %v863_v23  ;;  %v1023_v14 = vsub.f32 %v22602_v6, %v863_v23  ;;  %v805_v6 = vrot.slane %v804_v19, 2 }
 0x295   : > { %21996 = vrsqrt.f32 %v1056_v35 }
 0x296   : > { %v959_v33 = vsub.f32 %v895_v29, %v927_v62  ;;  %v806_v40 = vadd.f32 %v805_v6, %v804_v19 }
 0x298   : > { %v991_v26 = vmax.f32 %v959_v33, 0.0  ;;  %v807_v27 = vrot.slane %v806_v40, 1 }
 0x299   : > { %6313 = vmatmul.mubr.f32.vlgmr.msra.gmra.mrb[0].mxu0 %v22583_v10 }
 0x29a   : > { %6321 = vmatpush1.xpose.msra.mxu0 %v22583_v10  ;;  %6385 = vmatprep.mubr.f32.mxu0 %v22576_v63  ;;  %v6467_v63 = vsub.f32 %v6465_v54, %v6466_v25  ;;  %v808_v58 = vadd.f32 %v807_v27, %v806_v40 }
 0x29b   : > { %6393 = vmatprep.subr.mxu0 %v22614_v0 }
 0x29c   : > { %v6468_v38 = vand.u32 4294901760, %v6467_v63  ;;  %v897_v31 = vmul.f32 0.125, %v808_v58 }
 0x29f   : > { %v21997_v8 = vpop.eup %21996 }
 0x2a0   : > { %v1120_v55 = vmul.f32 %v21997_v8, %v1024_v49  ;;  %v821_v49 = vrot.slane %v644_v47, 4  ;;  %v22678_v8 = vld [vmem:[%s22164_s9 + $0xe0] sm:$0xff] }
 0x2a1   : > { %6387 = vmatmul.mubr.f32.vlgmr.msra.gmra.mrb[0].mxu0 %v22583_v10  ;;  %v1055_v10 = vadd.f32 1e-05, %v991_v26  ;;  %v591_v53 = vrot.slane %v22678_v8, 4  ;;  %v643_v11 = vmul.f32 %v22678_v8, %v22678_v8 }
 0x2a2   : > { %6395 = vmatpush1.xpose.msra.mxu0 %v22621_v46  ;;  %6463 = vmatprep.mubr.f32.mxu0 %v6462_v60  ;;  %v1157_v16 = vmul.f32 %v22196_v13, %v1120_v55  ;;  %v599_v55 = vrot.slane %v598_v48, 2  ;;  %v822_v12 = vadd.f32 %v821_v49, %v644_v47  ;;  %v609_v47 = vrot.slane %v22714_v45, 4 }
 0x2a3   : > { %6479 = vmatprep.subr.mxu0 %v6462_v60  ;;  %21998 = vrsqrt.f32 %v1055_v10  ;;  %v815_v59 = vrot.slane %v643_v11, 4 }
 0x2a4   : > { %v1193_v17 = vadd.f32 %v22200_v3, %v1157_v16  ;;  %v823_v16 = vrot.slane %v822_v12, 2  ;;  %v610_v49 = vadd.f32 %v609_v47, %v22714_v45 }
 0x2a6   : > { %v22652_v5 = vand.u32 4294901760, %v1193_v17  ;;  %v824_v24 = vadd.f32 %v823_v16, %v822_v12 }
 0x2a8   : > { %v6931_v36 = vsub.f32 %v1193_v17, %v22652_v5 }
 0x2a9   : > { %6469 = vmatmul.mubr.f32.vlgmr.msra.gmra.mrb[0].mxu0 %v6468_v38 }
 0x2aa   : > { %6485 = vmatpush1.xpose.msra.mxu0 %v6468_v38  ;;  %6549 = vmatprep.mubr.f32.mxu0 %v22614_v0  ;;  %v6932_v44 = vand.u32 4294901760, %v6931_v36 }
 0x2ab   : > { %6558 = vmatprep.subr.mxu0 %v6459_v34 }
 0x2ac   : > { %v6933_v23 = vsub.f32 %v6931_v36, %v6932_v44 }
 0x2ad   : > { %v21999_v61 = vpop.eup %21998 }
 0x2ae   : > { %v1119_v20 = vmul.f32 %v21999_v61, %v1023_v14  ;;  %v6934_v62 = vand.u32 4294901760, %v6933_v23  ;;  %v592_v14 = vadd.f32 %v591_v53, %v22678_v8  ;;  %v600_v61 = vadd.f32 %v599_v55, %v598_v48  ;;  %v22727_v53 = vld [vmem:[%s23717_s5] sm:$0xff] }
 0x2af   : > { %v646_v48 = vmul.f32 %v22714_v45, %v22714_v45  ;;  %8753 = vrot.lane.b32.xlu1 %v22727_v53, %s22096_s12  ;;  %s378_s12 = scalar_lea.vmem %s23716_s4, %s23687_s22 }
 0x2b0   : > { %v1156_v28 = vmul.f32 %v22196_v13, %v1119_v20  ;;  %v593_v19 = vrot.slane %v592_v14, 2  ;;  %v816_v20 = vadd.f32 %v815_v59, %v643_v11  ;;  %v601_v22 = vrot.slane %v600_v61, 1 }
 0x2b1   : > { %6551 = vmatmul.mubr.f32.vlgmr.msra.gmra.mrb[0].mxu0 %v22621_v46 }
 0x2b2   : > { %6561 = vmatpush1.xpose.msra.mxu0 %v6465_v54  ;;  %6626 = vmatprep.mubr.f32.mxu0 %v6459_v34  ;;  %v1192_v34 = vadd.f32 %v22200_v3, %v1156_v28  ;;  %v594_v28 = vadd.f32 %v593_v19, %v592_v14  ;;  %v602_v32 = vadd.f32 %v601_v22, %v600_v61  ;;  %v611_v14 = vrot.slane %v610_v49, 2 }
 0x2b3   : > { %6635 = vmatprep.subr.mxu0 %v22614_v0  ;;  %10113 = vrot.lane.b32.xlu1 %v22727_v53, %s22099_s17 }
 0x2b4   : > { %v22659_v50 = vand.u32 4294901760, %v1192_v34  ;;  %v595_v40 = vrot.slane %v594_v28, 1 }
 0x2b6   : > { %v6937_v56 = vsub.f32 %v1192_v34, %v22659_v50  ;;  %v825_v34 = vrot.slane %v824_v24, 1 }
 0x2b8   : > { %v6938_v29 = vand.u32 4294901760, %v6937_v56 }
 0x2b9   : > { %6629 = vmatmul.mubr.f32.vlgmr.msra.gmra.mrb[0].mxu0 %v6465_v54  ;;  %v898_v54 = vmul.f32 0.125, %v814_v41 }
 0x2ba   : > { %6637 = vmatpush1.xpose.msra.mxu0 %v22621_v46  ;;  %6703 = vmatprep.mubr.f32.mxu0 %v6460_v42 }
 0x2bb   : > { %6715 = vmatprep.subr.mxu0 %v6460_v42  ;;  %v866_v42 = vmul.f32 0.125, %v590_v30 }
 0x2bd   : > { %v930_v4 = vmul.f32 %v866_v42, %v866_v42  ;;  %v1026_v51 = vsub.f32 %v22632_v37, %v866_v42  ;;  %v826_v42 = vadd.f32 %v825_v34, %v824_v24 }
 0x2bf   : > { %v962_v60 = vsub.f32 %v898_v54, %v930_v4  ;;  %v596_v54 = vadd.f32 %v595_v40, %v594_v28 }
 0x2c1   : > { %6707 = vmatmul.mubr.f32.vlgmr.msra.gmra.mrb[0].mxu0 %v6466_v25  ;;  %v994_v33 = vmax.f32 %v962_v60, 0.0 }
 0x2c2   : > { %6719 = vmatpush1.xpose.msra.mxu0 %v6466_v25  ;;  %6783 = vmatprep.mubr.f32.mxu0 %v22614_v0  ;;  %v865_v25 = vmul.f32 0.125, %v584_v52 }
 0x2c3   : > { %6791 = vmatprep.subr.mxu0 %v22614_v0  ;;  %v1058_v38 = vadd.f32 1e-05, %v994_v33 }
 0x2c4   : > { %v929_v63 = vmul.f32 %v865_v25, %v865_v25  ;;  %v1025_v15 = vsub.f32 %v22640_v7, %v865_v25  ;;  %v817_v7 = vrot.slane %v816_v20, 2 }
 0x2c5   : > { %22000 = vrsqrt.f32 %v1058_v38 }
 0x2c6   : > { %v961_v35 = vsub.f32 %v897_v31, %v929_v63  ;;  %v818_v41 = vadd.f32 %v817_v7, %v816_v20 }
 0x2c8   : > { %v993_v10 = vmax.f32 %v961_v35, 0.0  ;;  %v819_v4 = vrot.slane %v818_v41, 1 }
 0x2c9   : > { %6785 = vmatmul.mubr.f32.vlgmr.msra.gmra.mrb[0].mxu0 %v22621_v46 }
 0x2ca   : > { %6793 = vmatpush1.xpose.msra.mxu0 %v22621_v46  ;;  %6857 = vmatprep.mubr.f32.mxu0 %v22614_v0  ;;  %v6939_v0 = vsub.f32 %v6937_v56, %v6938_v29  ;;  %v820_v60 = vadd.f32 %v819_v4, %v818_v41 }
 0x2cb   : > { %6865 = vmatprep.subr.mxu0 %v22652_v5 }
 0x2cc   : > { %v6940_v26 = vand.u32 4294901760, %v6939_v0  ;;  %v899_v33 = vmul.f32 0.125, %v820_v60 }
 0x2cf   : > { %v22001_v9 = vpop.eup %22000 }
 0x2d0   : > { %v1122_v57 = vmul.f32 %v22001_v9, %v1026_v51  ;;  %v833_v51 = vrot.slane %v646_v48, 4  ;;  %v22722_v9 = vld [vmem:[%s22164_s9 + $0xf0] sm:$0xff] }
 0x2d1   : > { %6859 = vmatmul.mubr.f32.vlgmr.msra.gmra.mrb[0].mxu0 %v22621_v46  ;;  %v1057_v46 = vadd.f32 1e-05, %v993_v10  ;;  %v603_v12 = vrot.slane %v22722_v9, 4 }
 0x2d2   : > { %6867 = vmatpush1.xpose.msra.mxu0 %v22659_v50  ;;  %6935 = vmatprep.mubr.f32.mxu0 %v6934_v62  ;;  %v1159_v17 = vmul.f32 %v22196_v13, %v1122_v57  ;;  %v645_v57 = vmul.f32 %v22722_v9, %v22722_v9  ;;  %v834_v59 = vadd.f32 %v833_v51, %v646_v48 }
 0x2d3   : > { %6951 = vmatprep.subr.mxu0 %v6934_v62  ;;  %22002 = vrsqrt.f32 %v1057_v46  ;;  %v604_v61 = vadd.f32 %v603_v12, %v22722_v9 }
 0x2d4   : > { %v1195_v18 = vadd.f32 %v22200_v3, %v1159_v17  ;;  %v827_v16 = vrot.slane %v645_v57, 4  ;;  %v835_v17 = vrot.slane %v834_v59, 2 }
 0x2d6   : > { %v22690_v6 = vand.u32 4294901760, %v1195_v18  ;;  %v828_v22 = vadd.f32 %v827_v16, %v645_v57  ;;  %v836_v7 = vadd.f32 %v835_v17, %v834_v59 }
 0x2d8   : > { %v7403_v39 = vsub.f32 %v1195_v18, %v22690_v6 }
 0x2d9   : > { %6941 = vmatmul.mubr.f32.vlgmr.msra.gmra.mrb[0].mxu0 %v6940_v26 }
 0x2da   : > { %6957 = vmatpush1.xpose.msra.mxu0 %v6940_v26  ;;  %7021 = vmatprep.mubr.f32.mxu0 %v22652_v5  ;;  %v22699_v27 = vand.u32 4294901760, %v7403_v39 }
 0x2db   : > { %7030 = vmatprep.subr.mxu0 %v6931_v36 }
 0x2dc   : > { %v7405_v25 = vsub.f32 %v7403_v39, %v22699_v27 }
 0x2dd   : > { %v22003_v37 = vpop.eup %22002 }
 0x2de   : > { %v1121_v21 = vmul.f32 %v22003_v37, %v1025_v15  ;;  %v7406_v63 = vand.u32 4294901760, %v7405_v25  ;;  %v612_v37 = vadd.f32 %v611_v14, %v610_v49 }
 0x2e0   : > { %v1158_v30 = vmul.f32 %v22196_v13, %v1121_v21  ;;  %v605_v21 = vrot.slane %v604_v61, 2  ;;  %v613_v28 = vrot.slane %v612_v37, 1 }
 0x2e1   : > { %7023 = vmatmul.mubr.f32.vlgmr.msra.gmra.mrb[0].mxu0 %v22659_v50 }
 0x2e2   : > { %7033 = vmatpush1.xpose.msra.mxu0 %v6937_v56  ;;  %7098 = vmatprep.mubr.f32.mxu0 %v6931_v36  ;;  %v1194_v36 = vadd.f32 %v22200_v3, %v1158_v30 }
 0x2e3   : > { %7107 = vmatprep.subr.mxu0 %v22652_v5 }
 0x2e4   : > { %v22697_v52 = vand.u32 4294901760, %v1194_v36 }
 0x2e6   : > { %v7409_v58 = vsub.f32 %v1194_v36, %v22697_v52  ;;  %v614_v36 = vadd.f32 %v613_v28, %v612_v37 }
 0x2e8   : > { %v22707_v31 = vand.u32 4294901760, %v7409_v58 }
 0x2e9   : > { %7101 = vmatmul.mubr.f32.vlgmr.msra.gmra.mrb[0].mxu0 %v6937_v56  ;;  %v900_v56 = vmul.f32 0.125, %v826_v42 }
 0x2ea   : > { %7109 = vmatpush1.xpose.msra.mxu0 %v22659_v50  ;;  %7175 = vmatprep.mubr.f32.mxu0 %v6932_v44 }
 0x2eb   : > { %7187 = vmatprep.subr.mxu0 %v6932_v44  ;;  %v868_v44 = vmul.f32 0.125, %v602_v32  ;;  %v829_v32 = vrot.slane %v828_v22, 2 }
 0x2ed   : > { %v932_v23 = vmul.f32 %v868_v44, %v868_v44  ;;  %v1028_v11 = vsub.f32 %v22670_v43, %v868_v44  ;;  %v830_v44 = vadd.f32 %v829_v32, %v828_v22 }
 0x2ef   : > { %v964_v62 = vsub.f32 %v900_v56, %v932_v23 }
 0x2f1   : > { %7179 = vmatmul.mubr.f32.vlgmr.msra.gmra.mrb[0].mxu0 %v6938_v29  ;;  %v996_v35 = vmax.f32 %v964_v62, 0.0 }
 0x2f2   : > { %7191 = vmatpush1.xpose.msra.mxu0 %v6938_v29  ;;  %7255 = vmatprep.mubr.f32.mxu0 %v22652_v5  ;;  %v867_v29 = vmul.f32 0.125, %v596_v54  ;;  %v870_v54 = vmul.f32 0.125, %v614_v36 }
 0x2f3   : > { %7263 = vmatprep.subr.mxu0 %v22652_v5  ;;  %v1060_v26 = vadd.f32 1e-05, %v996_v35 }
 0x2f4   : > { %v931_v0 = vmul.f32 %v867_v29, %v867_v29  ;;  %v1027_v43 = vsub.f32 %v22678_v8, %v867_v29  ;;  %v606_v8 = vadd.f32 %v605_v21, %v604_v61  ;;  %v934_v60 = vmul.f32 %v870_v54, %v870_v54 }
 0x2f5   : > { %22004 = vrsqrt.f32 %v1060_v26 }
 0x2f6   : > { %v963_v38 = vsub.f32 %v899_v33, %v931_v0  ;;  %v607_v42 = vrot.slane %v606_v8, 1 }
 0x2f8   : > { %v995_v46 = vmax.f32 %v963_v38, 0.0  ;;  %v608_v23 = vadd.f32 %v607_v42, %v606_v8 }
 0x2f9   : > { %7257 = vmatmul.mubr.f32.vlgmr.msra.gmra.mrb[0].mxu0 %v22659_v50 }
 0x2fa   : > { %7265 = vmatpush1.xpose.msra.mxu0 %v22659_v50  ;;  %7329 = vmatprep.mubr.f32.mxu0 %v22652_v5  ;;  %v7411_v5 = vsub.f32 %v7409_v58, %v22707_v31 }
 0x2fb   : > { %7337 = vmatprep.subr.mxu0 %v22690_v6 }
 0x2fc   : > { %v7412_v10 = vand.u32 4294901760, %v7411_v5 }
 0x2ff   : > { %v22005_v55 = vpop.eup %22004 }
 0x300   : > { %v1124_v15 = vmul.f32 %v22005_v55, %v1028_v11 }
 0x301   : > { %7331 = vmatmul.mubr.f32.vlgmr.msra.gmra.mrb[0].mxu0 %v22659_v50  ;;  %v1059_v50 = vadd.f32 1e-05, %v995_v46 }
 0x302   : > { %7339 = vmatpush1.xpose.msra.mxu0 %v22697_v52  ;;  %7407 = vmatprep.mubr.f32.mxu0 %v7406_v63  ;;  %v1161_v19 = vmul.f32 %v22196_v13, %v1124_v15 }
 0x303   : > { %7423 = vmatprep.subr.mxu0 %v7406_v63  ;;  %22006 = vrsqrt.f32 %v1059_v50  ;;  %v869_v63 = vmul.f32 0.125, %v608_v23 }
 0x304   : > { %v1197_v20 = vadd.f32 %v22200_v3, %v1161_v19 }
 0x305   : > { %v933_v38 = vmul.f32 %v869_v63, %v869_v63  ;;  %v1029_v11 = vsub.f32 %v22722_v9, %v869_v63 }
 0x306   : > { %v22742_v30 = vand.u32 4294901760, %v1197_v20 }
 0x308   : > { %v7875_v41 = vsub.f32 %v1197_v20, %v22742_v30 }
 0x309   : > { %7413 = vmatmul.mubr.f32.vlgmr.msra.gmra.mrb[0].mxu0 %v7412_v10 }
 0x30a   : > { %7429 = vmatpush1.xpose.msra.mxu0 %v7412_v10  ;;  %7493 = vmatprep.mubr.f32.mxu0 %v22690_v6  ;;  %v7876_v56 = vand.u32 4294901760, %v7875_v41 }
 0x30b   : > { %7502 = vmatprep.subr.mxu0 %v7403_v39 }
 0x30c   : > { %v7877_v62 = vsub.f32 %v7875_v41, %v7876_v56 }
 0x30d   : > { %v22007_v18 = vpop.eup %22006 }
 0x30e   : > { %v1123_v24 = vmul.f32 %v22007_v18, %v1027_v43  ;;  %v7878_v35 = vand.u32 4294901760, %v7877_v62 }
 0x310   : > { %v1160_v34 = vmul.f32 %v22196_v13, %v1123_v24  ;;  %v22097_v24 = vmov 0.0  }
 0x311   : > { %7495 = vmatmul.mubr.f32.vlgmr.msra.gmra.mrb[0].mxu0 %v22697_v52  ;;  %21155 = vmatprep.subr.mxu1 %v22097_v24 }
 0x312   : > { %7505 = vmatpush1.xpose.msra.mxu0 %v7409_v58  ;;  %7570 = vmatprep.mubr.f32.mxu0 %v7403_v39  ;;  %v837_v39 = vrot.slane %v836_v7, 1  ;;  %v1196_v40 = vadd.f32 %v22200_v3, %v1160_v34 }
 0x313   : > { %7579 = vmatprep.subr.mxu0 %v22690_v6  ;;  %21157 = vmatprep.mubr.msk.f32.mxu1 %vm22098_vm1, %v22097_v24 }
 0x314   : > { %v22751_v4 = vand.u32 4294901760, %v1196_v40 }
 0x316   : > { %v7881_v29 = vsub.f32 %v1196_v40, %v22751_v4 }
 0x318   : > { %v7882_v0 = vand.u32 4294901760, %v7881_v29 }
 0x319   : > { %7573 = vmatmul.mubr.f32.vlgmr.msra.gmra.mrb[0].mxu0 %v7409_v58  ;;  %v831_v58 = vrot.slane %v830_v44, 1 }
 0x31a   : > { %7581 = vmatpush1.xpose.msra.mxu0 %v22697_v52  ;;  %7647 = vmatprep.mubr.f32.mxu0 %v22699_v27 }
 0x31b   : > { %7659 = vmatprep.subr.mxu0 %v22699_v27  ;;  %v838_v27 = vadd.f32 %v837_v39, %v836_v7 }
 0x31d   : > { %v902_v25 = vmul.f32 0.125, %v838_v27 }
 0x31f   : > { %v966_v33 = vsub.f32 %v902_v25, %v934_v60 }
 0x321   : > { %7651 = vmatmul.mubr.f32.vlgmr.msra.gmra.mrb[0].mxu0 %v22707_v31  ;;  %v998_v26 = vmax.f32 %v966_v33, 0.0  ;;  %v8754_v21 = vpop.permute.xlu1 %8753 }
 0x322   : > { %7663 = vmatpush1.xpose.msra.mxu0 %v22707_v31  ;;  %7727 = vmatprep.mubr.f32.mxu0 %v22690_v6  ;;  %v832_v31 = vadd.f32 %v831_v58, %v830_v44  ;;  %v8759_v22 = vsel %vm8755_vm0, %v8754_v21, 0 }
 0x323   : > { %7735 = vmatprep.subr.mxu0 %v22690_v6  ;;  %v1062_v46 = vadd.f32 1e-05, %v998_v26  ;;  %v22779_v28 = vand.u32 4294901760, %v8759_v22 }
 0x324   : > { %v901_v5 = vmul.f32 0.125, %v832_v31 }
 0x325   : > { %22008 = vrsqrt.f32 %v1062_v46  ;;  %21156 = vmatpush3.xpose.msra.mxu1 %v22779_v28  ;;  %v22790_v7 = vsub.f32 %v8759_v22, %v22779_v28 }
 0x326   : > { %v965_v10 = vsub.f32 %v901_v5, %v933_v38  ;;  %21160 = vmatprep.subr.mxu1 %v22097_v24  ;;  %v22870_v38 = vld [vmem:[%s23717_s5 + $0x10] ss:$0 sm:$0xff] }
 0x327   : > { %v22794_v32 = vand.u32 4294901760, %v22790_v7  ;;  %10120 = vrot.lane.b32.xlu0 %v22870_v38, %s22099_s17 }
 0x328   : > { %v997_v47 = vmax.f32 %v965_v10, 0.0 }
 0x329   : > { %7729 = vmatmul.mubr.f32.vlgmr.msra.gmra.mrb[0].mxu0 %v22697_v52  ;;  %v8841_v40 = vsub.f32 %v22790_v7, %v22794_v32 }
 0x32a   : > { %7737 = vmatpush1.xpose.msra.mxu0 %v22697_v52  ;;  %7801 = vmatprep.mubr.f32.mxu0 %v22690_v6  ;;  %v7883_v6 = vsub.f32 %v7881_v29, %v7882_v0  ;;  %v1061_v48 = vadd.f32 1e-05, %v997_v47 }
 0x32b   : > { %7809 = vmatprep.subr.mxu0 %v22742_v30  ;;  %v22798_v44 = vand.u32 4294901760, %v8841_v40 }
 0x32c   : > { %v7884_v50 = vand.u32 4294901760, %v7883_v6  ;;  %22010 = vrsqrt.f32 %v1061_v48 }
 0x32f   : > { %v22009_v49 = vpop.eup %22008 }
 0x331   : > { %7803 = vmatmul.mubr.f32.vlgmr.msra.gmra.mrb[0].mxu0 %v22697_v52  ;;  %v1030_v52 = vsub.f32 %v22714_v45, %v870_v54  ;;  %v9207_v54 = vsel %vm8755_vm0, %v22727_v53, 0 }
 0x332   : > { %7811 = vmatpush1.xpose.msra.mxu0 %v22751_v4  ;;  %7879 = vmatprep.mubr.f32.mxu0 %v7878_v35 }
 0x333   : > { %7895 = vmatprep.subr.mxu0 %v7878_v35  ;;  %v1126_v51 = vmul.f32 %v22009_v49, %v1030_v52  ;;  %v388_v35 = vld [vmem:[%s23717_s5 + $0x8] sm:$0xff] }
 0x334   : > { %v22863_v5 = vand.u32 4294901760, %v388_v35  ;;  %10115 = vrot.lane.b32.xlu1 %v388_v35, %s22099_s17 }
 0x335   : > { %v1163_v12 = vmul.f32 %v22196_v13, %v1126_v51 }
 0x336   : > { %v22011_v55 = vpop.eup %22010  ;;  %v22875_v26 = vsub.f32 %v388_v35, %v22863_v5 }
 0x337   : > { %v1199_v57 = vadd.f32 %v22200_v3, %v1163_v12  ;;  %v1125_v14 = vmul.f32 %v22011_v55, %v1029_v11  ;;  %v10114_v12 = vpop.permute.xlu1 %10113 }
 0x338   : > { %v22879_v47 = vand.u32 4294901760, %v22875_v26 }
 0x339   : > { %7885 = vmatmul.mubr.f32.vlgmr.msra.gmra.mrb[0].mxu0 %v7884_v50  ;;  %v8280_v59 = vand.u32 4294901760, %v1199_v57  ;;  %v1162_v45 = vmul.f32 %v22196_v13, %v1125_v14  ;;  %v10128_v14 = vand.u32 4294901760, %v10114_v12 }
 0x33a   : > { %7901 = vmatpush1.xpose.msra.mxu0 %v7884_v50  ;;  %7965 = vmatprep.mubr.f32.mxu0 %v22742_v30  ;;  %v9743_v49 = vsub.f32 %v22875_v26, %v22879_v47 }
 0x33b   : > { %7974 = vmatprep.subr.mxu0 %v7875_v41  ;;  %v1198_v9 = vadd.f32 %v22200_v3, %v1162_v45  ;;  %v8347_v15 = vsub.f32 %v1199_v57, %v8280_v59  ;;  %v22100_v45 = vmov 0.0|0.0  }
 0x33c   : > { %v22883_v11 = vand.u32 4294901760, %v9743_v49 }
 0x33d   : > { %v8282_v61 = vand.u32 4294901760, %v1198_v9  ;;  %v8348_v16 = vand.u32 4294901760, %v8347_v15 }
 0x33f   : > { %v8353_v43 = vsub.f32 %v1198_v9, %v8282_v61  ;;  %v8349_v37 = vsub.f32 %v8347_v15, %v8348_v16 }
 0x341   : > { %7967 = vmatmul.mubr.f32.vlgmr.msra.gmra.mrb[0].mxu0 %v22751_v4  ;;  %v8354_v17 = vand.u32 4294901760, %v8353_v43  ;;  %v8350_v18 = vand.u32 4294901760, %v8349_v37 }
 0x342   : > { %7977 = vmatpush1.xpose.msra.mxu0 %v7881_v29  ;;  %8042 = vmatprep.mubr.f32.mxu0 %v7875_v41 }
 0x343   : > { %8051 = vmatprep.subr.mxu0 %v22742_v30  ;;  %v8355_v19 = vsub.f32 %v8353_v43, %v8354_v17 }
 0x345   : > { %v8356_v20 = vand.u32 4294901760, %v8355_v19 }
 0x349   : > { %8045 = vmatmul.mubr.f32.vlgmr.msra.gmra.mrb[0].mxu0 %v7881_v29 }
 0x34a   : > { %8053 = vmatpush1.xpose.msra.mxu0 %v22751_v4  ;;  %8119 = vmatprep.mubr.f32.mxu0 %v7876_v56 }
 0x34b   : > { %8131 = vmatprep.subr.mxu0 %v7876_v56 }
 0x351   : > { %8123 = vmatmul.mubr.f32.vlgmr.msra.gmra.mrb[0].mxu0 %v7882_v0 }
 0x352   : > { %8135 = vmatpush1.xpose.msra.mxu0 %v7882_v0  ;;  %8199 = vmatprep.mubr.f32.mxu0 %v22742_v30 }
 0x353   : > { %8207 = vmatprep.subr.mxu0 %v22742_v30 }
 0x359   : > { %8201 = vmatmul.mubr.f32.vlgmr.msra.gmra.mrb[0].mxu0 %v22751_v4 }
 0x35a   : > { %8209 = vmatpush1.xpose.msra.mxu0 %v22751_v4  ;;  %8273 = vmatprep.mubr.f32.mxu0 %v22742_v30 }
 0x35b   : > { %8281 = vmatprep.subr.mxu0 %v8280_v59 }
 0x361   : > { %8275 = vmatmul.mubr.f32.vlgmr.msra.gmra.mrb[0].mxu0 %v22751_v4  ;;  %v22824_v4 = vand.u32 4294901760, %v9207_v54 }
 0x362   : > { %8283 = vmatpush1.xpose.msra.mxu0 %v8282_v61  ;;  %8351 = vmatprep.mubr.f32.mxu0 %v8350_v18 }
 0x363   : > { %8367 = vmatprep.subr.mxu0 %v8350_v18  ;;  %v22827_v56 = vsub.f32 %v9207_v54, %v22824_v4 }
 0x365   : > { %v22830_v23 = vand.u32 4294901760, %v22827_v56 }
 0x367   : > { %v9278_v58 = vsub.f32 %v22827_v56, %v22830_v23 }
 0x369   : > { %8357 = vmatmul.mubr.f32.vlgmr.msra.gmra.mrb[0].mxu0 %v8356_v20  ;;  %v22834_v60 = vand.u32 4294901760, %v9278_v58 }
 0x36a   : > { %8373 = vmatpush1.xpose.msra.mxu0 %v8356_v20  ;;  %8437 = vmatprep.mubr.f32.mxu0 %v8280_v59 }
 0x36b   : > { %8446 = vmatprep.subr.mxu0 %v8347_v15 }
 0x371   : > { %8439 = vmatmul.mubr.f32.vlgmr.msra.gmra.mrb[0].mxu0 %v8282_v61 }
 0x372   : > { %8449 = vmatpush1.xpose.msra.mxu0 %v8353_v43  ;;  %8514 = vmatprep.mubr.f32.mxu0 %v8347_v15  ;;  %v22912_v15 = vld [vmem:[%s22164_s9 + $0x108] sm:$0xff] }
 0x373   : > { %8523 = vmatprep.subr.mxu0 %v8280_v59 }
 0x379   : > { %8517 = vmatmul.mubr.f32.vlgmr.msra.gmra.mrb[0].mxu0 %v8353_v43  ;;  %v22918_v43 = vld [vmem:[%s22164_s9 + $0x100] sm:$0xff] }
 0x37a   : > { %8525 = vmatpush1.xpose.msra.mxu0 %v8282_v61  ;;  %8591 = vmatprep.mubr.f32.mxu0 %v8348_v16  ;;  %v10678_v18 = vrot.slane %v22918_v43, 4  ;;  %v10870_v19 = vmul.f32 %v22918_v43, %v22918_v43 }
 0x37b   : > { %8603 = vmatprep.subr.mxu0 %v8348_v16  ;;  %v10871_v16 = vmul.f32 %v22912_v15, %v22912_v15 }
 0x37c   : > { %v10679_v22 = vadd.f32 %v22918_v43, %v10678_v18 }
 0x381   : > { %8595 = vmatmul.mubr.f32.vlgmr.msra.gmra.mrb[0].mxu0 %v8354_v17 }
 0x382   : > { %8607 = vmatpush1.xpose.msra.mxu0 %v8354_v17  ;;  %8671 = vmatprep.mubr.f32.mxu0 %v8280_v59  ;;  %v10908_v17 = vrot.slane %v10871_v16, 4 }
 0x383   : > { %8679 = vmatprep.subr.mxu0 %v8280_v59 }
 0x384   : > { %v10909_v21 = vadd.f32 %v10908_v17, %v10871_v16 }
 0x389   : > { %8673 = vmatmul.mubr.f32.vlgmr.msra.gmra.mrb[0].mxu0 %v8282_v61 }
 0x38a   : > { %8681 = vmatpush1.xpose.msra.mxu0 %v8282_v61  ;;  %8745 = vmatprep.mubr.f32.mxu0 %v8280_v59 }
 0x38b   : > { %21287 = vmatprep.subr.mxu0 %v22097_v24 }
 0x391   : > { %8747 = vmatmul.mubr.f32.vlgmr.msra.gmra.mrb[0].mxu0 %v8282_v61  ;;  %v10684_v61 = vrot.slane %v22912_v15, 4 }
 0x392   : > { %21289 = vmatprep.mubr.msk.f32.mxu0 %vm22098_vm1, %v22097_v24  ;;  %21288 = vmatpush3.xpose.msra.mxu0 %v22779_v28 }
 0x393   : > { %21292 = vmatprep.subr.mxu0 %v22097_v24  ;;  %v10685_v37 = vadd.f32 %v22912_v15, %v10684_v61 }
 0x395   : > { %v10686_v20 = vrot.slane %v10685_v37, 2 }
 0x3a6   : > { %v10116_v57 = vpop.permute.xlu1 %10115 }
 0x3a7   : > { %v10131_v59 = vand.u32 4294901760, %v10116_v57 }
 0x3a9   : > { %v22907_v9 = vpack.c.bf16 %v10131_v59, %v10128_v14 }
 0x464   : > { %v8748_v30 = vpop.f32.mrb[0].mxu0 }
 0x465   : > { %v8757_v8 = vsel %vm8755_vm0, %v8748_v30, 0  ;;  %v8750_v34 = vpop.f32.mrb[1].mxu0  ;;  %v10902_v30 = vrot.slane %v10870_v19, 4 }
 0x466   : > { %v8827_v36 = vand.u32 4294901760, %v8757_v8  ;;  %v10910_v34 = vrot.slane %v10909_v21, 2 }
 0x468   : > { %v8828_v39 = vsub.f32 %v8757_v8, %v8827_v36  ;;  %v10687_v8 = vadd.f32 %v10686_v20, %v10685_v37 }
 0x46a   : > { %v8829_v41 = vand.u32 4294901760, %v8828_v39  ;;  %v10688_v40 = vrot.slane %v10687_v8, 1 }
 0x46c   : > { %v8830_v42 = vsub.f32 %v8828_v39, %v8829_v41  ;;  %v10689_v54 = vadd.f32 %v10688_v40, %v10687_v8 }
 0x46e   : > { %v8831_v27 = vand.u32 4294901760, %v8830_v42 }
 0x470   : > { %21158 = vmatmul.mubr.f32.vlgmr.msra.gmra.mrb[0].mxu1 %v8831_v27 }
 0x471   : > { %21161 = vmatpush3.xpose.msra.mxu1 %v22798_v44  ;;  %21162 = vmatprep.mubr.msk.f32.mxu1 %vm22098_vm1, %v22097_v24 }
 0x472   : > { %21165 = vmatprep.subr.mxu1 %v22097_v24 }
 0x478   : > { %21163 = vmatmul.mubr.f32.vlgmr.msra.gmra.mrb[0].mxu1 %v8827_v36 }
 0x479   : > { %21166 = vmatpush3.xpose.msra.mxu1 %v22790_v7  ;;  %21167 = vmatprep.mubr.msk.f32.mxu1 %vm22098_vm1, %v22097_v24 }
 0x47a   : > { %21170 = vmatprep.subr.mxu1 %v22097_v24 }
 0x480   : > { %21168 = vmatmul.mubr.f32.vlgmr.msra.gmra.mrb[0].mxu1 %v8828_v39  ;;  %v10903_v39 = vadd.f32 %v10902_v30, %v10870_v19 }
 0x481   : > { %21171 = vmatpush3.xpose.msra.mxu1 %v22779_v28  ;;  %21172 = vmatprep.mubr.msk.f32.mxu1 %vm22098_vm1, %v22097_v24 }
 0x482   : > { %21175 = vmatprep.subr.mxu1 %v22097_v24  ;;  %v10904_v27 = vrot.slane %v10903_v39, 2 }
 0x488   : > { %21173 = vmatmul.mubr.f32.vlgmr.msra.gmra.mrb[0].mxu1 %v8829_v41  ;;  %v10911_v41 = vadd.f32 %v10910_v34, %v10909_v21 }
 0x489   : > { %21176 = vmatpush3.xpose.msra.mxu1 %v22794_v32  ;;  %21177 = vmatprep.mubr.msk.f32.mxu1 %vm22098_vm1, %v22097_v24 }
 0x48a   : > { %21180 = vmatprep.subr.mxu1 %v22097_v24  ;;  %v10912_v58 = vrot.slane %v10911_v41, 1 }
 0x490   : > { %21178 = vmatmul.mubr.f32.vlgmr.msra.gmra.mrb[0].mxu1 %v8827_v36 }
 0x491   : > { %21181 = vmatpush3.xpose.msra.mxu1 %v22779_v28  ;;  %21182 = vmatprep.mubr.msk.f32.mxu1 %vm22098_vm1, %v22097_v24 }
 0x492   : > { %21185 = vmatprep.subr.mxu1 %v22097_v24 }
 0x498   : > { %21183 = vmatmul.mubr.f32.vlgmr.msra.gmra.mrb[0].mxu1 %v8827_v36  ;;  %v10680_v36 = vrot.slane %v10679_v22, 2 }
 0x499   : > { %21187 = vmatprep.mubr.msk.f32.mxu1 %vm22098_vm1, %v22097_v24 }
 0x49a   : > { %v10681_v42 = vadd.f32 %v10680_v36, %v10679_v22 }
 0x56b   : > { %v9203_v25 = vpop.f32.mrb[0].mxu1 }
 0x56c   : > { %v9210_v29 = vand.u32 4294901760, %v9203_v25  ;;  %v21184_v62 = vpop.f32.mrb[1].mxu1 }
 0x56d   : > { %v22925_v62 = vmul.f32 0.125, %v10689_v54 }
 0x56e   : > { %v9287_v31 = vsub.f32 %v9203_v25, %v9210_v29  ;;  %21186 = vmatpush3.msra.mxu1 %v9210_v29  ;;  %v10682_v25 = vrot.slane %v10681_v42, 1 }
 0x56f   : > { %21188 = vmatmul.mubr.f32.vlgmr.msra.gmra.mrb[2].mxu1 %v22834_v60  ;;  %21190 = vmatprep.subr.mxu1 %v22097_v24 }
 0x570   : > { %v9288_v63 = vand.u32 4294901760, %v9287_v31  ;;  %21192 = vmatprep.mubr.msk.f32.mxu1 %vm22098_vm1, %v22097_v24 }
 0x572   : > { %v9289_v33 = vsub.f32 %v9287_v31, %v9288_v63 }
 0x574   : > { %v9290_v0 = vand.u32 4294901760, %v9289_v33 }
 0x576   : > { %21191 = vmatpush3.msra.mxu1 %v9290_v0  ;;  %v22927_v0 = vsub.f32 %v10114_v12, %v10128_v14 }
 0x577   : > { %21193 = vmatmul.mubr.f32.vlgmr.msra.gmra.mrb[2].mxu1 %v22824_v4  ;;  %21195 = vmatprep.subr.mxu1 %v22097_v24 }
 0x578   : > { %21196 = vmatpush3.msra.mxu1 %v9287_v31  ;;  %21197 = vmatprep.mubr.msk.f32.mxu1 %vm22098_vm1, %v22097_v24  ;;  %v10913_v31 = vadd.f32 %v10912_v58, %v10911_v41 }
 0x579   : > { %21200 = vmatprep.subr.mxu1 %v22097_v24 }
 0x57f   : > { %21198 = vmatmul.mubr.f32.vlgmr.msra.gmra.mrb[2].mxu1 %v22827_v56 }
 0x580   : > { %21201 = vmatpush3.msra.mxu1 %v9210_v29  ;;  %21202 = vmatprep.mubr.msk.f32.mxu1 %vm22098_vm1, %v22097_v24 }
 0x581   : > { %21205 = vmatprep.subr.mxu1 %v22097_v24 }
 0x587   : > { %21203 = vmatmul.mubr.f32.vlgmr.msra.gmra.mrb[2].mxu1 %v22830_v23 }
 0x588   : > { %21206 = vmatpush3.msra.mxu1 %v9288_v63  ;;  %21207 = vmatprep.mubr.msk.f32.mxu1 %vm22098_vm1, %v22097_v24  ;;  %v10683_v63 = vadd.f32 %v10682_v25, %v10681_v42  ;;  %v22964_v25 = vld [vmem:[%s22164_s9 + $0x110] sm:$0xff] }
 0x589   : > { %21210 = vmatprep.subr.mxu1 %v22097_v24 }
 0x58a   : > { %v22934_v49 = vmul.f32 0.125, %v10683_v63  ;;  %v10872_v63 = vmul.f32 %v22964_v25, %v22964_v25 }
 0x58f   : > { %21208 = vmatmul.mubr.f32.vlgmr.msra.gmra.mrb[2].mxu1 %v22824_v4 }
 0x590   : > { %21211 = vmatpush3.msra.mxu1 %v9210_v29  ;;  %21212 = vmatprep.mubr.msk.f32.mxu1 %vm22098_vm1, %v22097_v24  ;;  %v10905_v29 = vadd.f32 %v10904_v27, %v10903_v39  ;;  %v22951_v39 = vld [vmem:[%s22164_s9 + $0x118] sm:$0xff] }
 0x591   : > { %21215 = vmatprep.subr.mxu1 %v22097_v24  ;;  %v10696_v42 = vrot.slane %v22951_v39, 4  ;;  %v10873_v27 = vmul.f32 %v22951_v39, %v22951_v39 }
 0x592   : > { %v10906_v33 = vrot.slane %v10905_v29, 1 }
 0x593   : > { %v10697_v54 = vadd.f32 %v22951_v39, %v10696_v42  ;;  %v10920_v58 = vrot.slane %v10873_v27, 4 }
 0x597   : > { %21213 = vmatmul.mubr.f32.vlgmr.msra.gmra.mrb[2].mxu1 %v22824_v4 }
 0x598   : > { %21217 = vmatprep.mubr.msk.f32.mxu1 %vm22098_vm1, %v22097_v24  ;;  %21216 = vmatpush3.msra.mxu1 %v22863_v5 }
 0x599   : > { %21220 = vmatprep.subr.mxu1 %v22097_v24 }
 0x66a   : > { %v9651_v6 = vpop.f32.mrb[2].mxu1 }
 0x66b   : > { %v9655_v10 = vfloor.f32 %v9651_v6  ;;  %v21214_v46 = vpop.f32.mrb[3].mxu1  ;;  %v22929_v6 = vsub.f32 %v10116_v57, %v10131_v59  ;;  %v11158_v59 = vmul.f32 %v22934_v49, %v22934_v49 }
 0x66d   : > { %v9661_v50 = vsel %vm8755_vm0, %v9655_v10, 0  ;;  %v11159_v10 = vmul.f32 %v22925_v62, %v22925_v62 }
 0x66e   : > { %v9729_v48 = vand.u32 4294901760, %v9661_v50 }
 0x670   : > { %v9730_v52 = vsub.f32 %v9661_v50, %v9729_v48 }
 0x672   : > { %v9731_v53 = vand.u32 4294901760, %v9730_v52 }
 0x674   : > { %v9732_v51 = vsub.f32 %v9730_v52, %v9731_v53 }
 0x676   : > { %v9733_v55 = vand.u32 4294901760, %v9732_v51  ;;  %v10207_v51 = vand.u32 4294901760, %v22927_v0 }
 0x678   : > { %21218 = vmatmul.mubr.f32.vlgmr.msra.gmra.mrb[4].mxu1 %v9733_v55  ;;  %v10214_v55 = vand.u32 4294901760, %v22929_v6  ;;  %v10208_v16 = vsub.f32 %v22927_v0, %v10207_v51 }
 0x679   : > { %21221 = vmatpush3.msra.mxu1 %v22883_v11  ;;  %21222 = vmatprep.mubr.msk.f32.mxu1 %vm22098_vm1, %v22097_v24 }
 0x67a   : > { %21225 = vmatprep.subr.mxu1 %v22097_v24  ;;  %v10215_v37 = vsub.f32 %v22929_v6, %v10214_v55  ;;  %v10209_v21 = vand.u32 4294901760, %v10208_v16 }
 0x67c   : > { %v10216_v22 = vand.u32 4294901760, %v10215_v37 }
 0x67e   : > { %v22953_v40 = vpack.c.bf16 %v10216_v22, %v10209_v21  ;;  %v22994_v22 = vpack.c.bf16 %v10214_v55, %v10207_v51 }
 0x680   : > { %21223 = vmatmul.mubr.f32.vlgmr.msra.gmra.mrb[4].mxu1 %v9729_v48 }
 0x681   : > { %21226 = vmatpush3.msra.mxu1 %v22875_v26  ;;  %21227 = vmatprep.mubr.msk.f32.mxu1 %vm22098_vm1, %v22097_v24 }
 0x682   : > { %21230 = vmatprep.subr.mxu1 %v22097_v24 }
 0x688   : > { %21228 = vmatmul.mubr.f32.vlgmr.msra.gmra.mrb[4].mxu1 %v9730_v52  ;;  %v10907_v52 = vadd.f32 %v10906_v33, %v10905_v29  ;;  %v22968_v29 = vpack.c.bf16 %v22929_v6, %v22927_v0  ;;  %v11255_v33 = vsub.f32 %v22912_v15, %v22925_v62 }
 0x689   : > { %21231 = vmatpush3.msra.mxu1 %v22863_v5  ;;  %21232 = vmatprep.mubr.msk.f32.mxu1 %vm22098_vm1, %v22097_v24 }
 0x68a   : > { %21235 = vmatprep.subr.mxu1 %v22097_v24  ;;  %v11126_v14 = vmul.f32 0.125, %v10907_v52 }
 0x68c   : > { %v11190_v19 = vsub.f32 %v11126_v14, %v11158_v59 }
 0x68e   : > { %v11222_v34 = vmax.f32 %v11190_v19, 0.0 }
 0x690   : > { %21233 = vmatmul.mubr.f32.vlgmr.msra.gmra.mrb[4].mxu1 %v9731_v53  ;;  %v11286_v41 = vadd.f32 1e-05, %v11222_v34 }
 0x691   : > { %21236 = vmatpush3.msra.mxu1 %v22879_v47  ;;  %21237 = vmatprep.mubr.msk.f32.mxu1 %vm22098_vm1, %v22097_v24 }
 0x692   : > { %21240 = vmatprep.subr.mxu1 %v22097_v24 }
 0x698   : > { %21238 = vmatmul.mubr.f32.vlgmr.msra.gmra.mrb[4].mxu1 %v9729_v48 }
 0x699   : > { %21241 = vmatpush3.msra.mxu1 %v22863_v5  ;;  %21242 = vmatprep.mubr.msk.f32.mxu1 %vm22098_vm1, %v22097_v24 }
 0x69a   : > { %21419 = vmatprep.subr.bf16.mxu1 %v22100_v45 }
 0x6a0   : > { %21243 = vmatmul.mubr.f32.vlgmr.msra.gmra.mrb[4].mxu1 %v9729_v48  ;;  %v11127_v48 = vmul.f32 0.125, %v10913_v31  ;;  %v10690_v31 = vrot.slane %v22964_v25, 4 }
 0x6a1   : > { %21249 = vmatprep.mubr.msk.f32.mxu1 %vm22098_vm1, %v22097_v24  ;;  %21421 = vmatpush3.bf16.msra.mxu1 %v22907_v9 }
 0x6a2   : > { %21422 = vmatprep.subr.bf16.mxu1 %v22100_v45  ;;  %v11191_v57 = vsub.f32 %v11127_v48, %v11159_v10  ;;  %v10921_v10 = vadd.f32 %v10920_v58, %v10873_v27  ;;  %v10914_v48 = vrot.slane %v10872_v63, 4 }
 0x6a4   : > { %v11223_v18 = vmax.f32 %v11191_v57, 0.0  ;;  %v10922_v57 = vrot.slane %v10921_v10, 2 }
 0x6a6   : > { %v11287_v8 = vadd.f32 1e-05, %v11223_v18  ;;  %v10923_v37 = vadd.f32 %v10922_v57, %v10921_v10 }
 0x6a8   : > { %22012 = vrsqrt.f32 %v11287_v8  ;;  %v10924_v21 = vrot.slane %v10923_v37, 1 }
 0x6a9   : > { %22014 = vrsqrt.f32 %v11286_v41 }
 0x6aa   : > { %v10925_v41 = vadd.f32 %v10924_v21, %v10923_v37 }
 0x6ac   : > { %v11129_v27 = vmul.f32 0.125, %v10925_v41 }
 0x773   : > { %v10105_v35 = vpop.f32.mrb[4].mxu1 }
 0x774   : > { %v21455_v46 = vadd.f32 %v22870_v38, %v10105_v35  ;;  %v21244_v50 = vpop.f32.mrb[5].mxu1  ;;  %v10698_v35 = vrot.slane %v10697_v54, 2 }
 0x775   : > { %v10691_v50 = vadd.f32 %v22964_v25, %v10690_v31 }
 0x776   : > { %vm10109_vm2 = vcmp.gt.f32.partialorder %v21455_v46, 0.0  ;;  %v10110_v53 = vmul.f32 0.01, %v21455_v46 }
 0x777   : > { %v10692_v59 = vrot.slane %v10691_v50, 2 }
 0x778   : > { %v10111_v12 = vsel %vm10109_vm2, %v21455_v46, %v10110_v53  ;;  %v22013_v46 = vpop.eup %22012  ;;  %v11254_v53 = vsub.f32 %v22918_v43, %v22934_v49 }
 0x779   : > { %v10125_v38 = vsel %vm10123_vm3, %v10111_v12, 0  ;;  %v11351_v52 = vmul.f32 %v22013_v46, %v11255_v33  ;;  %v10699_v12 = vadd.f32 %v10698_v35, %v10697_v54  ;;  %v22015_v14 = vpop.eup %22014  ;;  %v10693_v49 = vadd.f32 %v10692_v59, %v10691_v50 }
 0x77a   : > { %v22941_v61 = vand.u32 4294901760, %v10125_v38  ;;  %v11350_v62 = vmul.f32 %v22015_v14, %v11254_v53 }
 0x77b   : > { %v11383_v15 = vmul.f32 %v11351_v52, %v22196_v13  ;;  %v10700_v16 = vrot.slane %v10699_v12, 1  ;;  %v10694_v34 = vrot.slane %v10693_v49, 1 }
 0x77c   : > { %v10195_v17 = vsub.f32 %v10125_v38, %v22941_v61  ;;  %v10915_v38 = vadd.f32 %v10914_v48, %v10872_v63 }
 0x77d   : > { %v11415_v43 = vadd.f32 %v11383_v15, %v22200_v3  ;;  %v10701_v19 = vadd.f32 %v10700_v16, %v10699_v12  ;;  %v10695_v51 = vadd.f32 %v10694_v34, %v10693_v49 }
 0x77e   : > { %v10196_v20 = vand.u32 4294901760, %v10195_v17  ;;  %v10916_v18 = vrot.slane %v10915_v38, 2 }
 0x77f   : > { %v11097_v42 = vmul.f32 0.125, %v10701_v19  ;;  %v11096_v63 = vmul.f32 0.125, %v10695_v51 }
 0x780   : > { %v10197_v30 = vsub.f32 %v10195_v17, %v10196_v20 }
 0x781   : > { %v11161_v54 = vmul.f32 %v11097_v42, %v11097_v42  ;;  %v11160_v50 = vmul.f32 %v11096_v63, %v11096_v63  ;;  %v11257_v49 = vsub.f32 %v22951_v39, %v11097_v42  ;;  %v11256_v51 = vsub.f32 %v22964_v25, %v11096_v63 }
 0x782   : > { %v10198_v36 = vand.u32 4294901760, %v10197_v30  ;;  %v22996_v30 = vand.u32 4294901760, %v11415_v43 }
 0x783   : > { %v11193_v33 = vsub.f32 %v11129_v27, %v11161_v54 }
 0x784   : > { %21250 = vmatmul.mubr.f32.vlgmr.msra.gmra.mrb[6].mxu1 %v10198_v36  ;;  %v10917_v36 = vadd.f32 %v10916_v18, %v10915_v38  ;;  %v11513_v6 = vsub.f32 %v11415_v43, %v22996_v30  ;;  %v23016_v38 = vld [vmem:[%s22164_s9 + $0x128] sm:$0xff]  ;;  %v23024_v43 = vld [vmem:[%s22164_s9 + $0x120] sm:$0xff] }
 0x785   : > { %21424 = vmatpush3.bf16.msra.mxu1 %v22953_v40  ;;  %21256 = vmatprep.mubr.msk.f32.mxu1 %vm22098_vm1, %v22097_v24  ;;  %v11225_v48 = vmax.f32 %v11193_v33, 0.0  ;;  %v10874_v19 = vmul.f32 %v23024_v43, %v23024_v43 }
 0x786   : > { %21425 = vmatprep.subr.bf16.mxu1 %v22100_v45  ;;  %v10918_v55 = vrot.slane %v10917_v36, 1 }
 0x787   : > { %v11289_v57 = vadd.f32 1e-05, %v11225_v48  ;;  %v10926_v41 = vrot.slane %v10874_v19, 4 }
 0x788   : > { %v10919_v31 = vadd.f32 %v10918_v55, %v10917_v36 }
 0x789   : > { %22016 = vrsqrt.f32 %v11289_v57 }
 0x78a   : > { %v11128_v46 = vmul.f32 0.125, %v10919_v31  ;;  %v10927_v31 = vadd.f32 %v10926_v41, %v10874_v19 }
 0x78c   : > { %21257 = vmatmul.mubr.f32.vlgmr.msra.gmra.mrb[6].mxu1 %v22941_v61  ;;  %v11192_v12 = vsub.f32 %v11128_v46, %v11160_v50  ;;  %v10928_v25 = vrot.slane %v10927_v31, 2 }
 0x78d   : > { %21427 = vmatpush3.bf16.msra.mxu1 %v22968_v29  ;;  %21263 = vmatprep.mubr.msk.f32.mxu1 %vm22098_vm1, %v22097_v24 }
 0x78e   : > { %21428 = vmatprep.subr.bf16.mxu1 %v22100_v45  ;;  %v11224_v59 = vmax.f32 %v11192_v12, 0.0  ;;  %v10929_v57 = vadd.f32 %v10928_v25, %v10927_v31 }
 0x790   : > { %v11288_v15 = vadd.f32 1e-05, %v11224_v59 }
 0x792   : > { %22018 = vrsqrt.f32 %v11288_v15 }
 0x793   : > { %v22017_v18 = vpop.eup %22016 }
 0x794   : > { %21264 = vmatmul.mubr.f32.vlgmr.msra.gmra.mrb[6].mxu1 %v10195_v17  ;;  %v11382_v17 = vmul.f32 %v11350_v62, %v22196_v13  ;;  %v10875_v62 = vmul.f32 %v23016_v38, %v23016_v38  ;;  %v11353_v34 = vmul.f32 %v22017_v18, %v11257_v49 }
 0x795   : > { %21430 = vmatpush3.bf16.msra.mxu1 %v22907_v9  ;;  %21270 = vmatprep.mubr.msk.f32.mxu1 %vm22098_vm1, %v22097_v24 }
 0x796   : > { %21431 = vmatprep.subr.bf16.mxu1 %v22100_v45  ;;  %v11414_v8 = vadd.f32 %v11382_v17, %v22200_v3  ;;  %v10932_v37 = vrot.slane %v10875_v62, 4  ;;  %v10702_v17 = vrot.slane %v23024_v43, 4  ;;  %v11385_v42 = vmul.f32 %v11353_v34, %v22196_v13 }
 0x798   : > { %v23003_v0 = vand.u32 4294901760, %v11414_v8  ;;  %v10703_v36 = vadd.f32 %v23024_v43, %v10702_v17  ;;  %v11417_v27 = vadd.f32 %v11385_v42, %v22200_v3 }
 0x79a   : > { %v11519_v58 = vsub.f32 %v11414_v8, %v23003_v0  ;;  %v10933_v8 = vadd.f32 %v10932_v37, %v10875_v62  ;;  %v10704_v54 = vrot.slane %v10703_v36, 2  ;;  %v23036_v50 = vand.u32 4294901760, %v11417_v27 }
 0x79c   : > { %21271 = vmatmul.mubr.f32.vlgmr.msra.gmra.mrb[6].mxu1 %v10196_v20  ;;  %v11514_v20 = vand.u32 4294901760, %v11513_v6  ;;  %v11520_v10 = vand.u32 4294901760, %v11519_v58  ;;  %v10934_v55 = vrot.slane %v10933_v8, 2  ;;  %v22019_v39 = vpop.eup %22018 }
 0x79d   : > { %21433 = vmatpush3.bf16.msra.mxu1 %v22994_v22  ;;  %21277 = vmatprep.mubr.msk.f32.mxu1 %vm22098_vm1, %v22097_v24  ;;  %v11352_v33 = vmul.f32 %v22019_v39, %v11256_v51 }
 0x79e   : > { %21434 = vmatprep.subr.bf16.mxu1 %v22100_v45  ;;  %v11515_v35 = vsub.f32 %v11513_v6, %v11514_v20  ;;  %v11521_v53 = vsub.f32 %v11519_v58, %v11520_v10  ;;  %v10935_v46 = vadd.f32 %v10934_v55, %v10933_v8 }
 0x79f   : > { %v11384_v63 = vmul.f32 %v11352_v33, %v22196_v13 }
 0x7a0   : > { %v11516_v52 = vand.u32 4294901760, %v11515_v35  ;;  %v11522_v14 = vand.u32 4294901760, %v11521_v53  ;;  %v11985_v53 = vsub.f32 %v11417_v27, %v23036_v50  ;;  %v23054_v27 = vld [vmem:[%s22164_s9 + $0x138] sm:$0xff] }
 0x7a1   : > { %v10877_v31 = vmul.f32 %v23054_v27, %v23054_v27 }
 0x7a4   : > { %21278 = vmatmul.mubr.f32.vlgmr.msra.gmra.mrb[6].mxu1 %v22941_v61 }
 0x7a5   : > { %21436 = vmatpush3.bf16.msra.mxu1 %v22907_v9  ;;  %21284 = vmatprep.mubr.msk.f32.mxu1 %vm22098_vm1, %v22097_v24 }
 0x7a6   : > { %11447 = vmatprep.subr.mxu1 %v22996_v30 }
 0x7ac   : > { %21285 = vmatmul.mubr.f32.vlgmr.msra.gmra.mrb[6].mxu1 %v22941_v61  ;;  %v10708_v61 = vrot.slane %v23016_v38, 4 }
 0x7ad   : > { %11517 = vmatprep.mubr.f32.mxu1 %v11516_v52 }
 0x7ae   : > { %11449 = vmatpush1.xpose.msra.mxu1 %v23003_v0  ;;  %v10709_v16 = vadd.f32 %v23016_v38, %v10708_v61  ;;  %v11986_v61 = vand.u32 4294901760, %v11985_v53 }
 0x7af   : > { %11533 = vmatprep.subr.mxu1 %v11516_v52  ;;  %v10936_v52 = vrot.slane %v10935_v46, 1 }
 0x7b0   : > { %v10710_v21 = vrot.slane %v10709_v16, 2  ;;  %v11987_v18 = vsub.f32 %v11985_v53, %v11986_v61 }
 0x7b1   : > { %11523 = vmatmul.mubr.f32.vlgmr.msra.gmra.mrb[8].mxu1 %v11522_v14 }
 0x7b2   : > { %11539 = vmatpush1.xpose.msra.mxu1 %v11522_v14  ;;  %11603 = vmatprep.mubr.f32.mxu1 %v22996_v30  ;;  %v10937_v14 = vadd.f32 %v10936_v52, %v10935_v46  ;;  %v11988_v34 = vand.u32 4294901760, %v11987_v18  ;;  %v23062_v46 = vld [vmem:[%s22164_s9 + $0x130] sm:$0xff] }
 0x7b3   : > { %11612 = vmatprep.subr.mxu1 %v11513_v6 }
 0x7b9   : > { %11605 = vmatmul.mubr.f32.vlgmr.msra.gmra.mrb[8].mxu1 %v23003_v0 }
 0x7ba   : > { %11615 = vmatpush1.xpose.msra.mxu1 %v11519_v58  ;;  %11680 = vmatprep.mubr.f32.mxu1 %v11513_v6  ;;  %v10711_v6 = vadd.f32 %v10710_v21, %v10709_v16  ;;  %v10930_v16 = vrot.slane %v10929_v57, 1 }
 0x7bb   : > { %11689 = vmatprep.subr.mxu1 %v22996_v30 }
 0x7bc   : > { %v10712_v35 = vrot.slane %v10711_v6, 1  ;;  %v10931_v17 = vadd.f32 %v10930_v16, %v10929_v57 }
 0x7be   : > { %v10713_v48 = vadd.f32 %v10712_v35, %v10711_v6  ;;  %v10944_v35 = vrot.slane %v10877_v31, 4 }
 0x7c0   : > { %v11099_v59 = vmul.f32 0.125, %v10713_v48  ;;  %v10876_v48 = vmul.f32 %v23062_v46, %v23062_v46 }
 0x7c1   : > { %11683 = vmatmul.mubr.f32.vlgmr.msra.gmra.mrb[8].mxu1 %v11519_v58  ;;  %v10705_v58 = vadd.f32 %v10704_v54, %v10703_v36  ;;  %v11130_v36 = vmul.f32 0.125, %v10931_v17  ;;  %v10720_v54 = vrot.slane %v23054_v27, 4 }
 0x7c2   : > { %11691 = vmatpush1.xpose.msra.mxu1 %v23003_v0  ;;  %11757 = vmatprep.mubr.f32.mxu1 %v11514_v20  ;;  %v11163_v37 = vmul.f32 %v11099_v59, %v11099_v59 }
 0x7c3   : > { %11769 = vmatprep.subr.mxu1 %v11514_v20  ;;  %v11416_v20 = vadd.f32 %v11384_v63, %v22200_v3  ;;  %v10706_v12 = vrot.slane %v10705_v58, 1  ;;  %v10721_v33 = vadd.f32 %v23054_v27, %v10720_v54  ;;  %v10714_v63 = vrot.slane %v23062_v46, 4 }
 0x7c5   : > { %v23043_v15 = vand.u32 4294901760, %v11416_v20  ;;  %v10707_v62 = vadd.f32 %v10706_v12, %v10705_v58  ;;  %v11259_v58 = vsub.f32 %v23016_v38, %v11099_v59  ;;  %v10722_v52 = vrot.slane %v10721_v33, 2 }
 0x7c6   : > { %v10715_v57 = vadd.f32 %v23062_v46, %v10714_v63 }
 0x7c7   : > { %v11991_v49 = vsub.f32 %v11416_v20, %v23043_v15  ;;  %v11098_v19 = vmul.f32 0.125, %v10707_v62  ;;  %v10945_v20 = vadd.f32 %v10944_v35, %v10877_v31 }
 0x7c9   : > { %11761 = vmatmul.mubr.f32.vlgmr.msra.gmra.mrb[8].mxu1 %v11520_v10  ;;  %v11992_v8 = vand.u32 4294901760, %v11991_v49  ;;  %v11162_v41 = vmul.f32 %v11098_v19, %v11098_v19  ;;  %v11258_v62 = vsub.f32 %v23024_v43, %v11098_v19  ;;  %v10946_v16 = vrot.slane %v10945_v20, 2 }
 0x7ca   : > { %11773 = vmatpush1.xpose.msra.mxu1 %v11520_v10  ;;  %11837 = vmatprep.mubr.f32.mxu1 %v22996_v30  ;;  %v11131_v10 = vmul.f32 0.125, %v10937_v14  ;;  %v10938_v14 = vrot.slane %v10876_v48, 4 }
 0x7cb   : > { %11845 = vmatprep.subr.mxu1 %v22996_v30  ;;  %v11194_v6 = vsub.f32 %v11130_v36, %v11162_v41 }
 0x7cc   : > { %v11195_v21 = vsub.f32 %v11131_v10, %v11163_v37  ;;  %v10716_v37 = vrot.slane %v10715_v57, 2  ;;  %v10939_v18 = vadd.f32 %v10938_v14, %v10876_v48 }
 0x7cd   : > { %v11226_v42 = vmax.f32 %v11194_v6, 0.0 }
 0x7ce   : > { %v11227_v51 = vmax.f32 %v11195_v21, 0.0  ;;  %v10940_v43 = vrot.slane %v10939_v18, 2 }
 0x7d0   : > { %v11291_v55 = vadd.f32 1e-05, %v11227_v51 }
 0x7d1   : > { %11839 = vmatmul.mubr.f32.vlgmr.msra.gmra.mrb[8].mxu1 %v23003_v0 }
 0x7d2   : > { %11847 = vmatpush1.xpose.msra.mxu1 %v23003_v0  ;;  %11911 = vmatprep.mubr.f32.mxu1 %v22996_v30  ;;  %v11993_v30 = vsub.f32 %v11991_v49, %v11992_v8  ;;  %22020 = vrsqrt.f32 %v11291_v55  ;;  %v10941_v55 = vadd.f32 %v10940_v43, %v10939_v18 }
 0x7d3   : > { %11919 = vmatprep.subr.mxu1 %v23036_v50 }
 0x7d4   : > { %v11994_v39 = vand.u32 4294901760, %v11993_v30 }
 0x7d9   : > { %11913 = vmatmul.mubr.f32.vlgmr.msra.gmra.mrb[8].mxu1 %v23003_v0  ;;  %v11290_v0 = vadd.f32 1e-05, %v11226_v42 }
 0x7da   : > { %11921 = vmatpush1.xpose.msra.mxu1 %v23043_v15  ;;  %11989 = vmatprep.mubr.f32.mxu1 %v11988_v34 }
 0x7db   : > { %12005 = vmatprep.subr.mxu1 %v11988_v34  ;;  %22022 = vrsqrt.f32 %v11290_v0  ;;  %v10947_v34 = vadd.f32 %v10946_v16, %v10945_v20 }
 0x7dc   : > { %v22021_v25 = vpop.eup %22020 }
 0x7dd   : > { %v11355_v12 = vmul.f32 %v22021_v25, %v11259_v58  ;;  %v10948_v51 = vrot.slane %v10947_v34, 1 }
 0x7df   : > { %v11387_v59 = vmul.f32 %v11355_v12, %v22196_v13 }
 0x7e1   : > { %11995 = vmatmul.mubr.f32.vlgmr.msra.gmra.mrb[8].mxu1 %v11994_v39  ;;  %v11419_v10 = vadd.f32 %v11387_v59, %v22200_v3 }
 0x7e2   : > { %12011 = vmatpush1.xpose.msra.mxu1 %v11994_v39  ;;  %12075 = vmatprep.mubr.f32.mxu1 %v23036_v50  ;;  %v10949_v39 = vadd.f32 %v10948_v51, %v10947_v34  ;;  %v23100_v34 = vld [vmem:[%s22164_s9 + $0x140] sm:$0xff] }
 0x7e3   : > { %12084 = vmatprep.subr.mxu1 %v11985_v53  ;;  %v23074_v36 = vand.u32 4294901760, %v11419_v10 }
 0x7e5   : > { %v22023_v38 = vpop.eup %22022  ;;  %v12457_v30 = vsub.f32 %v11419_v10, %v23074_v36  ;;  %v23092_v10 = vld [vmem:[%s22164_s9 + $0x148] sm:$0xff] }
 0x7e6   : > { %v11354_v17 = vmul.f32 %v22023_v38, %v11258_v62  ;;  %v10879_v18 = vmul.f32 %v23092_v10, %v23092_v10 }
 0x7e7   : > { %v12458_v54 = vand.u32 4294901760, %v12457_v30 }
 0x7e8   : > { %v11386_v19 = vmul.f32 %v11354_v17, %v22196_v13 }
 0x7e9   : > { %12077 = vmatmul.mubr.f32.vlgmr.msra.gmra.mrb[8].mxu1 %v23043_v15  ;;  %v12459_v25 = vsub.f32 %v12457_v30, %v12458_v54 }
 0x7ea   : > { %12087 = vmatpush1.xpose.msra.mxu1 %v11991_v49  ;;  %12152 = vmatprep.mubr.f32.mxu1 %v11985_v53  ;;  %v10723_v53 = vadd.f32 %v10722_v52, %v10721_v33  ;;  %v10942_v33 = vrot.slane %v10941_v55, 1 }
 0x7eb   : > { %12161 = vmatprep.subr.mxu1 %v23036_v50  ;;  %v12460_v12 = vand.u32 4294901760, %v12459_v25 }
 0x7ec   : > { %v10724_v21 = vrot.slane %v10723_v53, 1  ;;  %v10943_v63 = vadd.f32 %v10942_v33, %v10941_v55 }
 0x7ee   : > { %v10725_v41 = vadd.f32 %v10724_v21, %v10723_v53  ;;  %v10956_v21 = vrot.slane %v10879_v18, 4 }
 0x7f0   : > { %v11101_v42 = vmul.f32 0.125, %v10725_v41  ;;  %v10878_v41 = vmul.f32 %v23100_v34, %v23100_v34 }
 0x7f1   : > { %12155 = vmatmul.mubr.f32.vlgmr.msra.gmra.mrb[8].mxu1 %v11991_v49  ;;  %v10717_v49 = vadd.f32 %v10716_v37, %v10715_v57  ;;  %v11132_v57 = vmul.f32 0.125, %v10943_v63  ;;  %v10732_v37 = vrot.slane %v23092_v10, 4 }
 0x7f2   : > { %12163 = vmatpush1.xpose.msra.mxu1 %v23043_v15  ;;  %12229 = vmatprep.mubr.f32.mxu1 %v11986_v61  ;;  %v11165_v35 = vmul.f32 %v11101_v42, %v11101_v42 }
 0x7f3   : > { %12241 = vmatprep.subr.mxu1 %v11986_v61  ;;  %v11418_v61 = vadd.f32 %v11386_v19, %v22200_v3  ;;  %v10718_v6 = vrot.slane %v10717_v49, 1  ;;  %v10733_v17 = vadd.f32 %v23092_v10, %v10732_v37  ;;  %v10726_v19 = vrot.slane %v23100_v34, 4 }
 0x7f5   : > { %v23081_v0 = vand.u32 4294901760, %v11418_v61  ;;  %v10719_v31 = vadd.f32 %v10718_v6, %v10717_v49  ;;  %v11261_v49 = vsub.f32 %v23054_v27, %v11101_v42  ;;  %v10734_v51 = vrot.slane %v10733_v17, 2 }
 0x7f6   : > { %v10727_v55 = vadd.f32 %v23100_v34, %v10726_v19 }
 0x7f7   : > { %v12463_v58 = vsub.f32 %v11418_v61, %v23081_v0  ;;  %v11100_v48 = vmul.f32 0.125, %v10719_v31  ;;  %v10957_v61 = vadd.f32 %v10956_v21, %v10879_v18 }
 0x7f9   : > { %12233 = vmatmul.mubr.f32.vlgmr.msra.gmra.mrb[8].mxu1 %v11992_v8  ;;  %v12464_v20 = vand.u32 4294901760, %v12463_v58  ;;  %v11164_v14 = vmul.f32 %v11100_v48, %v11100_v48  ;;  %v11260_v31 = vsub.f32 %v23062_v46, %v11100_v48  ;;  %v10958_v33 = vrot.slane %v10957_v61, 2 }
 0x7fa   : > { %12245 = vmatpush1.xpose.msra.mxu1 %v11992_v8  ;;  %12309 = vmatprep.mubr.f32.mxu1 %v23036_v50  ;;  %v11133_v8 = vmul.f32 0.125, %v10949_v39  ;;  %v10950_v39 = vrot.slane %v10878_v41, 4 }
 0x7fb   : > { %12317 = vmatprep.subr.mxu1 %v23036_v50  ;;  %v11196_v53 = vsub.f32 %v11132_v57, %v11164_v14 }
 0x7fc   : > { %v11197_v52 = vsub.f32 %v11133_v8, %v11165_v35  ;;  %v10728_v35 = vrot.slane %v10727_v55, 2  ;;  %v10951_v25 = vadd.f32 %v10950_v39, %v10878_v41 }
 0x7fd   : > { %v11228_v59 = vmax.f32 %v11196_v53, 0.0 }
 0x7fe   : > { %v11229_v62 = vmax.f32 %v11197_v52, 0.0  ;;  %v10952_v46 = vrot.slane %v10951_v25, 2 }
 0x800   : > { %v11293_v16 = vadd.f32 1e-05, %v11229_v62 }
 0x801   : > { %12311 = vmatmul.mubr.f32.vlgmr.msra.gmra.mrb[8].mxu1 %v23043_v15 }
 0x802   : > { %12319 = vmatpush1.xpose.msra.mxu1 %v23043_v15  ;;  %12383 = vmatprep.mubr.f32.mxu1 %v23036_v50  ;;  %v12465_v50 = vsub.f32 %v12463_v58, %v12464_v20  ;;  %22024 = vrsqrt.f32 %v11293_v16  ;;  %v10953_v16 = vadd.f32 %v10952_v46, %v10951_v25 }
 0x803   : > { %12391 = vmatprep.subr.mxu1 %v23074_v36 }
 0x804   : > { %v12466_v38 = vand.u32 4294901760, %v12465_v50 }
 0x809   : > { %12385 = vmatmul.mubr.f32.vlgmr.msra.gmra.mrb[8].mxu1 %v23043_v15  ;;  %v11292_v15 = vadd.f32 1e-05, %v11228_v59 }
 0x80a   : > { %12393 = vmatpush1.xpose.msra.mxu1 %v23081_v0  ;;  %12461 = vmatprep.mubr.f32.mxu1 %v12460_v12 }
 0x80b   : > { %12477 = vmatprep.subr.mxu1 %v12460_v12  ;;  %22026 = vrsqrt.f32 %v11292_v15  ;;  %v10959_v12 = vadd.f32 %v10958_v33, %v10957_v61 }
 0x80c   : > { %v22025_v43 = vpop.eup %22024 }
 0x80d   : > { %v11357_v6 = vmul.f32 %v22025_v43, %v11261_v49  ;;  %v10960_v62 = vrot.slane %v10959_v12, 1 }
 0x80f   : > { %v11389_v42 = vmul.f32 %v11357_v6, %v22196_v13 }
 0x811   : > { %12467 = vmatmul.mubr.f32.vlgmr.msra.gmra.mrb[8].mxu1 %v12466_v38  ;;  %v11421_v8 = vadd.f32 %v11389_v42, %v22200_v3 }
 0x812   : > { %12483 = vmatpush1.xpose.msra.mxu1 %v12466_v38  ;;  %12547 = vmatprep.mubr.f32.mxu1 %v23074_v36  ;;  %v10961_v38 = vadd.f32 %v10960_v62, %v10959_v12  ;;  %v23138_v12 = vld [vmem:[%s22164_s9 + $0x150] sm:$0xff] }
 0x813   : > { %12556 = vmatprep.subr.mxu1 %v12457_v30  ;;  %v23112_v57 = vand.u32 4294901760, %v11421_v8 }
 0x815   : > { %v22027_v27 = vpop.eup %22026  ;;  %v12929_v50 = vsub.f32 %v11421_v8, %v23112_v57  ;;  %v23130_v8 = vld [vmem:[%s22164_s9 + $0x158] sm:$0xff] }
 0x816   : > { %v11356_v63 = vmul.f32 %v22027_v27, %v11260_v31  ;;  %v10881_v25 = vmul.f32 %v23130_v8, %v23130_v8 }
 0x817   : > { %v12930_v37 = vand.u32 4294901760, %v12929_v50 }
 0x818   : > { %v11388_v48 = vmul.f32 %v11356_v63, %v22196_v13 }
 0x819   : > { %12549 = vmatmul.mubr.f32.vlgmr.msra.gmra.mrb[8].mxu1 %v23081_v0  ;;  %v12931_v43 = vsub.f32 %v12929_v50, %v12930_v37 }
 0x81a   : > { %12559 = vmatpush1.xpose.msra.mxu1 %v12463_v58  ;;  %12624 = vmatprep.mubr.f32.mxu1 %v12457_v30  ;;  %v10735_v30 = vadd.f32 %v10734_v51, %v10733_v17  ;;  %v10954_v17 = vrot.slane %v10953_v16, 1 }
 0x81b   : > { %12633 = vmatprep.subr.mxu1 %v23074_v36  ;;  %v12932_v6 = vand.u32 4294901760, %v12931_v43 }
 0x81c   : > { %v10736_v52 = vrot.slane %v10735_v30, 1  ;;  %v10955_v19 = vadd.f32 %v10954_v17, %v10953_v16 }
 0x81e   : > { %v10737_v14 = vadd.f32 %v10736_v52, %v10735_v30  ;;  %v10968_v52 = vrot.slane %v10881_v25, 4 }
 0x820   : > { %v11103_v59 = vmul.f32 0.125, %v10737_v14  ;;  %v10880_v14 = vmul.f32 %v23138_v12, %v23138_v12 }
 0x821   : > { %12627 = vmatmul.mubr.f32.vlgmr.msra.gmra.mrb[8].mxu1 %v12463_v58  ;;  %v10729_v58 = vadd.f32 %v10728_v35, %v10727_v55  ;;  %v11134_v55 = vmul.f32 0.125, %v10955_v19  ;;  %v10744_v35 = vrot.slane %v23130_v8, 4 }
 0x822   : > { %12635 = vmatpush1.xpose.msra.mxu1 %v23081_v0  ;;  %12701 = vmatprep.mubr.f32.mxu1 %v12458_v54  ;;  %v11167_v21 = vmul.f32 %v11103_v59, %v11103_v59 }
 0x823   : > { %12713 = vmatprep.subr.mxu1 %v12458_v54  ;;  %v11420_v54 = vadd.f32 %v11388_v48, %v22200_v3  ;;  %v10730_v53 = vrot.slane %v10729_v58, 1  ;;  %v10745_v63 = vadd.f32 %v23130_v8, %v10744_v35  ;;  %v10738_v48 = vrot.slane %v23138_v12, 4 }
 0x825   : > { %v23119_v15 = vand.u32 4294901760, %v11420_v54  ;;  %v10731_v18 = vadd.f32 %v10730_v53, %v10729_v58  ;;  %v11263_v58 = vsub.f32 %v23092_v10, %v11103_v59  ;;  %v10746_v62 = vrot.slane %v10745_v63, 2 }
 0x826   : > { %v10739_v16 = vadd.f32 %v23138_v12, %v10738_v48 }
 0x827   : > { %v12935_v49 = vsub.f32 %v11420_v54, %v23119_v15  ;;  %v11102_v41 = vmul.f32 0.125, %v10731_v18  ;;  %v10969_v54 = vadd.f32 %v10968_v52, %v10881_v25 }
 0x829   : > { %12705 = vmatmul.mubr.f32.vlgmr.msra.gmra.mrb[8].mxu1 %v12464_v20  ;;  %v12936_v61 = vand.u32 4294901760, %v12935_v49  ;;  %v11166_v39 = vmul.f32 %v11102_v41, %v11102_v41  ;;  %v11262_v18 = vsub.f32 %v23100_v34, %v11102_v41  ;;  %v10970_v17 = vrot.slane %v10969_v54, 2 }
 0x82a   : > { %12717 = vmatpush1.xpose.msra.mxu1 %v12464_v20  ;;  %12781 = vmatprep.mubr.f32.mxu1 %v23074_v36  ;;  %v11135_v20 = vmul.f32 0.125, %v10961_v38  ;;  %v10962_v38 = vrot.slane %v10880_v14, 4 }
 0x82b   : > { %12789 = vmatprep.subr.mxu1 %v23074_v36  ;;  %v11198_v30 = vsub.f32 %v11134_v55, %v11166_v39 }
 0x82c   : > { %v11199_v51 = vsub.f32 %v11135_v20, %v11167_v21  ;;  %v10740_v21 = vrot.slane %v10739_v16, 2  ;;  %v10963_v43 = vadd.f32 %v10962_v38, %v10880_v14 }
 0x82d   : > { %v11230_v42 = vmax.f32 %v11198_v30, 0.0 }
 0x82e   : > { %v11231_v31 = vmax.f32 %v11199_v51, 0.0  ;;  %v10964_v34 = vrot.slane %v10963_v43, 2 }
 0x830   : > { %v11295_v33 = vadd.f32 1e-05, %v11231_v31 }
 0x831   : > { %12783 = vmatmul.mubr.f32.vlgmr.msra.gmra.mrb[8].mxu1 %v23081_v0 }
 0x832   : > { %12791 = vmatpush1.xpose.msra.mxu1 %v23081_v0  ;;  %12855 = vmatprep.mubr.f32.mxu1 %v23074_v36  ;;  %v12937_v36 = vsub.f32 %v12935_v49, %v12936_v61  ;;  %22028 = vrsqrt.f32 %v11295_v33  ;;  %v10965_v33 = vadd.f32 %v10964_v34, %v10963_v43 }
 0x833   : > { %12863 = vmatprep.subr.mxu1 %v23112_v57 }
 0x834   : > { %v12938_v27 = vand.u32 4294901760, %v12937_v36 }
 0x839   : > { %12857 = vmatmul.mubr.f32.vlgmr.msra.gmra.mrb[8].mxu1 %v23081_v0  ;;  %v11294_v0 = vadd.f32 1e-05, %v11230_v42 }
 0x83a   : > { %12865 = vmatpush1.xpose.msra.mxu1 %v23119_v15  ;;  %12933 = vmatprep.mubr.f32.mxu1 %v12932_v6 }
 0x83b   : > { %12949 = vmatprep.subr.mxu1 %v12932_v6  ;;  %22030 = vrsqrt.f32 %v11294_v0  ;;  %v10971_v6 = vadd.f32 %v10970_v17, %v10969_v54 }
 0x83c   : > { %v22029_v46 = vpop.eup %22028 }
 0x83d   : > { %v11359_v53 = vmul.f32 %v22029_v46, %v11263_v58  ;;  %v10972_v31 = vrot.slane %v10971_v6, 1 }
 0x83f   : > { %v11391_v59 = vmul.f32 %v11359_v53, %v22196_v13 }
 0x841   : > { %12939 = vmatmul.mubr.f32.vlgmr.msra.gmra.mrb[8].mxu1 %v12938_v27  ;;  %v11423_v20 = vadd.f32 %v11391_v59, %v22200_v3 }
 0x842   : > { %12955 = vmatpush1.xpose.msra.mxu1 %v12938_v27  ;;  %13019 = vmatprep.mubr.f32.mxu1 %v23112_v57  ;;  %v10973_v27 = vadd.f32 %v10972_v31, %v10971_v6  ;;  %v23182_v6 = vld [vmem:[%s22164_s9 + $0x160] sm:$0xff]  ;;  %v23189_v31 = vpop.permute.xlu0 %10120 }
 0x843   : > { %13028 = vmatprep.subr.mxu1 %v12929_v50  ;;  %v23150_v55 = vand.u32 4294901760, %v11423_v20 }
 0x845   : > { %v22031_v10 = vpop.eup %22030  ;;  %v13401_v36 = vsub.f32 %v11423_v20, %v23150_v55  ;;  %v23174_v20 = vld [vmem:[%s22164_s9 + $0x168] sm:$0xff] }
 0x846   : > { %v11358_v19 = vmul.f32 %v22031_v10, %v11262_v18  ;;  %v10883_v43 = vmul.f32 %v23174_v20, %v23174_v20 }
 0x847   : > { %v23159_v35 = vand.u32 4294901760, %v13401_v36 }
 0x848   : > { %v11390_v41 = vmul.f32 %v11358_v19, %v22196_v13 }
 0x849   : > { %13021 = vmatmul.mubr.f32.vlgmr.msra.gmra.mrb[8].mxu1 %v23119_v15  ;;  %v13403_v46 = vsub.f32 %v13401_v36, %v23159_v35 }
 0x84a   : > { %13031 = vmatpush1.xpose.msra.mxu1 %v12935_v49  ;;  %13096 = vmatprep.mubr.f32.mxu1 %v12929_v50  ;;  %v10747_v50 = vadd.f32 %v10746_v62, %v10745_v63  ;;  %v10966_v63 = vrot.slane %v10965_v33, 1 }
 0x84b   : > { %13105 = vmatprep.subr.mxu1 %v23112_v57  ;;  %v13404_v53 = vand.u32 4294901760, %v13403_v46 }
 0x84c   : > { %v10748_v51 = vrot.slane %v10747_v50, 1  ;;  %v10967_v48 = vadd.f32 %v10966_v63, %v10965_v33 }
 0x84e   : > { %v10749_v39 = vadd.f32 %v10748_v51, %v10747_v50  ;;  %v10980_v51 = vrot.slane %v10883_v43, 4 }
 0x850   : > { %v11105_v42 = vmul.f32 0.125, %v10749_v39  ;;  %v10882_v39 = vmul.f32 %v23182_v6, %v23182_v6 }
 0x851   : > { %13099 = vmatmul.mubr.f32.vlgmr.msra.gmra.mrb[8].mxu1 %v12935_v49  ;;  %v10741_v49 = vadd.f32 %v10740_v21, %v10739_v16  ;;  %v11136_v16 = vmul.f32 0.125, %v10967_v48  ;;  %v10756_v21 = vrot.slane %v23174_v20, 4 }
 0x852   : > { %13107 = vmatpush1.xpose.msra.mxu1 %v23119_v15  ;;  %13173 = vmatprep.mubr.f32.mxu1 %v12930_v37  ;;  %v11169_v52 = vmul.f32 %v11105_v42, %v11105_v42 }
 0x853   : > { %13185 = vmatprep.subr.mxu1 %v12930_v37  ;;  %v11422_v37 = vadd.f32 %v11390_v41, %v22200_v3  ;;  %v10742_v30 = vrot.slane %v10741_v49, 1  ;;  %v10757_v19 = vadd.f32 %v23174_v20, %v10756_v21  ;;  %v10750_v41 = vrot.slane %v23182_v6, 4 }
 0x855   : > { %v23157_v0 = vand.u32 4294901760, %v11422_v37  ;;  %v10743_v25 = vadd.f32 %v10742_v30, %v10741_v49  ;;  %v11265_v49 = vsub.f32 %v23130_v8, %v11105_v42  ;;  %v10981_v30 = vadd.f32 %v10980_v51, %v10883_v43 }
 0x856   : > { %v10751_v8 = vadd.f32 %v23182_v6, %v10750_v41  ;;  %v10974_v42 = vrot.slane %v10882_v39, 4 }
 0x857   : > { %v13407_v58 = vsub.f32 %v11422_v37, %v23157_v0  ;;  %v11104_v14 = vmul.f32 0.125, %v10743_v25  ;;  %v10758_v37 = vrot.slane %v10757_v19, 2 }
 0x859   : > { %13177 = vmatmul.mubr.f32.vlgmr.msra.gmra.mrb[8].mxu1 %v12936_v61  ;;  %v23167_v54 = vand.u32 4294901760, %v13407_v58  ;;  %v11168_v38 = vmul.f32 %v11104_v14, %v11104_v14  ;;  %v11264_v63 = vsub.f32 %v23138_v12, %v11104_v14 }
 0x85a   : > { %13189 = vmatpush1.xpose.msra.mxu1 %v12936_v61  ;;  %13253 = vmatprep.mubr.f32.mxu1 %v23112_v57  ;;  %v11137_v61 = vmul.f32 0.125, %v10973_v27 }
 0x85b   : > { %13261 = vmatprep.subr.mxu1 %v23112_v57  ;;  %v11200_v50 = vsub.f32 %v11136_v16, %v11168_v38  ;;  %v10975_v16 = vadd.f32 %v10974_v42, %v10882_v39 }
 0x85c   : > { %v11201_v62 = vsub.f32 %v11137_v61, %v11169_v52  ;;  %v10759_v61 = vadd.f32 %v10758_v37, %v10757_v19  ;;  %v10982_v52 = vrot.slane %v10981_v30, 2 }
 0x85d   : > { %v11232_v59 = vmax.f32 %v11200_v50, 0.0  ;;  %v10976_v50 = vrot.slane %v10975_v16, 2 }
 0x85e   : > { %v11233_v18 = vmax.f32 %v11201_v62, 0.0  ;;  %v10760_v14 = vrot.slane %v10759_v61, 1  ;;  %v10983_v38 = vadd.f32 %v10982_v52, %v10981_v30 }
 0x85f   : > { %v10977_v43 = vadd.f32 %v10976_v50, %v10975_v16  ;;  %v23223_v16 = vld [vmem:[%s22164_s9 + $0x178] sm:$0xff]  ;;  %v23231_v50 = vld [vmem:[%s22164_s9 + $0x170] sm:$0xff] }
 0x860   : > { %v11297_v17 = vadd.f32 1e-05, %v11233_v18 }
 0x861   : > { %13255 = vmatmul.mubr.f32.vlgmr.msra.gmra.mrb[8].mxu1 %v23119_v15  ;;  %v10978_v39 = vrot.slane %v10977_v43, 1 }
 0x862   : > { %13263 = vmatpush1.xpose.msra.mxu1 %v23119_v15  ;;  %13327 = vmatprep.mubr.f32.mxu1 %v23112_v57  ;;  %v13409_v57 = vsub.f32 %v13407_v58, %v23167_v54  ;;  %22032 = vrsqrt.f32 %v11297_v17 }
 0x863   : > { %13335 = vmatprep.subr.mxu1 %v23150_v55 }
 0x864   : > { %v13410_v10 = vand.u32 4294901760, %v13409_v57 }
 0x869   : > { %13329 = vmatmul.mubr.f32.vlgmr.msra.gmra.mrb[8].mxu1 %v23119_v15  ;;  %v11296_v15 = vadd.f32 1e-05, %v11232_v59  ;;  %v10984_v59 = vrot.slane %v10983_v38, 1 }
 0x86a   : > { %13337 = vmatpush1.xpose.msra.mxu1 %v23157_v0  ;;  %13405 = vmatprep.mubr.f32.mxu1 %v13404_v53 }
 0x86b   : > { %13421 = vmatprep.subr.mxu1 %v13404_v53  ;;  %22034 = vrsqrt.f32 %v11296_v15  ;;  %v10985_v19 = vadd.f32 %v10984_v59, %v10983_v38  ;;  %v10762_v59 = vrot.slane %v23231_v50, 4 }
 0x86c   : > { %v22033_v34 = vpop.eup %22032 }
 0x86d   : > { %v11361_v33 = vmul.f32 %v22033_v34, %v11265_v49 }
 0x86f   : > { %v11393_v62 = vmul.f32 %v11361_v33, %v22196_v13 }
 0x871   : > { %13411 = vmatmul.mubr.f32.vlgmr.msra.gmra.mrb[8].mxu1 %v13410_v10  ;;  %v11425_v53 = vadd.f32 %v11393_v62, %v22200_v3 }
 0x872   : > { %13427 = vmatpush1.xpose.msra.mxu1 %v13410_v10  ;;  %13491 = vmatprep.mubr.f32.mxu1 %v23150_v55  ;;  %v10761_v10 = vadd.f32 %v10760_v14, %v10759_v61  ;;  %v10885_v14 = vmul.f32 %v23223_v16, %v23223_v16 }
 0x873   : > { %13500 = vmatprep.subr.mxu1 %v13401_v36  ;;  %v23203_v18 = vand.u32 4294901760, %v11425_v53 }
 0x874   : > { %v11107_v51 = vmul.f32 0.125, %v10761_v10 }
 0x875   : > { %v22035_v46 = vpop.eup %22034  ;;  %v13873_v15 = vsub.f32 %v11425_v53, %v23203_v18 }
 0x876   : > { %v11360_v12 = vmul.f32 %v22035_v46, %v11264_v63  ;;  %v11171_v37 = vmul.f32 %v11107_v51, %v11107_v51 }
 0x877   : > { %v13874_v34 = vand.u32 4294901760, %v13873_v15 }
 0x878   : > { %v11392_v17 = vmul.f32 %v11360_v12, %v22196_v13  ;;  %v10768_v12 = vrot.slane %v23223_v16, 4 }
 0x879   : > { %13493 = vmatmul.mubr.f32.vlgmr.msra.gmra.mrb[8].mxu1 %v23157_v0  ;;  %v13875_v33 = vsub.f32 %v13873_v15, %v13874_v34 }
 0x87a   : > { %13503 = vmatpush1.xpose.msra.mxu1 %v13407_v58  ;;  %13568 = vmatprep.mubr.f32.mxu1 %v13401_v36  ;;  %v10769_v38 = vadd.f32 %v23223_v16, %v10768_v12 }
 0x87b   : > { %13577 = vmatprep.subr.mxu1 %v23150_v55  ;;  %v13876_v63 = vand.u32 4294901760, %v13875_v33 }
 0x87f   : > { %v10582_v27 = vpop.f32.mrb[6].mxu1 }
 0x880   : > { %v23192_v25 = vadd.f32 %v10582_v27, %v23189_v31  ;;  %v21286_v36 = vpop.f32.mrb[7].mxu1  ;;  %v10979_v27 = vadd.f32 %v10978_v39, %v10977_v43 }
 0x881   : > { %13571 = vmatmul.mubr.f32.vlgmr.msra.gmra.mrb[8].mxu1 %v13407_v58  ;;  %v10752_v58 = vrot.slane %v10751_v8, 2 }
 0x882   : > { %13579 = vmatpush1.xpose.msra.mxu1 %v23157_v0  ;;  %13645 = vmatprep.mubr.f32.mxu1 %v23159_v35  ;;  %v10587_v48 = vsel %vm10586_vm4, %v23192_v25, -inf  ;;  %v11138_v61 = vmul.f32 0.125, %v10979_v27 }
 0x883   : > { %13657 = vmatprep.subr.mxu1 %v23159_v35  ;;  %10588 = vmax.xlane.f32.xlu1 %v10587_v48  ;;  %v10753_v57 = vadd.f32 %v10752_v58, %v10751_v8  ;;  %v11424_v35 = vadd.f32 %v11392_v17, %v22200_v3  ;;  %v11267_v17 = vsub.f32 %v23174_v20, %v11107_v51 }
 0x885   : > { %v10754_v21 = vrot.slane %v10753_v57, 1  ;;  %v23212_v49 = vand.u32 4294901760, %v11424_v35 }
 0x887   : > { %v10755_v41 = vadd.f32 %v10754_v21, %v10753_v57  ;;  %v13879_v30 = vsub.f32 %v11424_v35, %v23212_v49  ;;  %v10992_v57 = vrot.slane %v10885_v14, 4  ;;  %v10884_v35 = vmul.f32 %v23231_v50, %v23231_v50 }
 0x888   : > { %v10770_v21 = vrot.slane %v10769_v38, 2 }
 0x889   : > { %13649 = vmatmul.mubr.f32.vlgmr.msra.gmra.mrb[8].mxu1 %v23167_v54  ;;  %v11106_v36 = vmul.f32 0.125, %v10755_v41  ;;  %v13880_v42 = vand.u32 4294901760, %v13879_v30  ;;  %v10993_v43 = vadd.f32 %v10992_v57, %v10885_v14  ;;  %v10763_v41 = vadd.f32 %v23231_v50, %v10762_v59 }
 0x88a   : > { %13661 = vmatpush1.xpose.msra.mxu1 %v23167_v54  ;;  %13725 = vmatprep.mubr.f32.mxu1 %v23150_v55  ;;  %v11139_v54 = vmul.f32 0.125, %v10985_v19  ;;  %v10986_v39 = vrot.slane %v10884_v35, 4 }
 0x88b   : > { %13733 = vmatprep.subr.mxu1 %v23150_v55  ;;  %v11170_v52 = vmul.f32 %v11106_v36, %v11106_v36  ;;  %v10764_v27 = vrot.slane %v10763_v41, 2 }
 0x88c   : > { %v11203_v8 = vsub.f32 %v11139_v54, %v11171_v37  ;;  %v11266_v54 = vsub.f32 %v23182_v6, %v11106_v36  ;;  %v10994_v37 = vrot.slane %v10993_v43, 2 }
 0x88d   : > { %v11202_v48 = vsub.f32 %v11138_v61, %v11170_v52 }
 0x88e   : > { %v11235_v46 = vmax.f32 %v11203_v8, 0.0  ;;  %v10987_v8 = vadd.f32 %v10986_v39, %v10884_v35  ;;  %v10995_v52 = vadd.f32 %v10994_v37, %v10993_v43 }
 0x88f   : > { %v11234_v58 = vmax.f32 %v11202_v48, 0.0 }
 0x890   : > { %v11299_v62 = vadd.f32 1e-05, %v11235_v46  ;;  %v10988_v6 = vrot.slane %v10987_v8, 2  ;;  %v10996_v48 = vrot.slane %v10995_v52, 1 }
 0x891   : > { %13727 = vmatmul.mubr.f32.vlgmr.msra.gmra.mrb[8].mxu1 %v23157_v0 }
 0x892   : > { %13735 = vmatpush1.xpose.msra.mxu1 %v23157_v0  ;;  %13799 = vmatprep.mubr.f32.mxu1 %v23150_v55  ;;  %v13881_v55 = vsub.f32 %v13879_v30, %v13880_v42  ;;  %22036 = vrsqrt.f32 %v11299_v62 }
 0x893   : > { %13807 = vmatprep.subr.mxu1 %v23203_v18 }
 0x894   : > { %v13882_v53 = vand.u32 4294901760, %v13881_v55 }
 0x899   : > { %13801 = vmatmul.mubr.f32.vlgmr.msra.gmra.mrb[8].mxu1 %v23157_v0  ;;  %v11298_v0 = vadd.f32 1e-05, %v11234_v58  ;;  %v10989_v58 = vadd.f32 %v10988_v6, %v10987_v8  ;;  %v23261_v8 = vld [vmem:[%s22164_s9 + $0x188] sm:$0xff]  ;;  %v23269_v6 = vld [vmem:[%s22164_s9 + $0x180] sm:$0xff] }
 0x89a   : > { %13809 = vmatpush1.xpose.msra.mxu1 %v23212_v49  ;;  %13877 = vmatprep.mubr.f32.mxu1 %v13876_v63 }
 0x89b   : > { %13893 = vmatprep.subr.mxu1 %v13876_v63  ;;  %22038 = vrsqrt.f32 %v11298_v0  ;;  %v10997_v0 = vadd.f32 %v10996_v48, %v10995_v52  ;;  %v10774_v48 = vrot.slane %v23269_v6, 4 }
 0x89c   : > { %v22037_v10 = vpop.eup %22036 }
 0x89d   : > { %v11363_v19 = vmul.f32 %v22037_v10, %v11267_v17  ;;  %v10990_v17 = vrot.slane %v10989_v58, 1 }
 0x89f   : > { %v11395_v51 = vmul.f32 %v11363_v19, %v22196_v13 }
 0x8a1   : > { %13883 = vmatmul.mubr.f32.vlgmr.msra.gmra.mrb[8].mxu1 %v13882_v53  ;;  %v11427_v33 = vadd.f32 %v11395_v51, %v22200_v3 }
 0x8a2   : > { %13899 = vmatpush1.xpose.msra.mxu1 %v13882_v53  ;;  %13963 = vmatprep.mubr.f32.mxu1 %v23203_v18 }
 0x8a3   : > { %13972 = vmatprep.subr.mxu1 %v13873_v15  ;;  %v23243_v46 = vand.u32 4294901760, %v11427_v33 }
 0x8a5   : > { %v22039_v20 = vpop.eup %22038  ;;  %v14345_v62 = vsub.f32 %v11427_v33, %v23243_v46 }
 0x8a6   : > { %v11362_v63 = vmul.f32 %v22039_v20, %v11266_v54 }
 0x8a8   : > { %v11394_v36 = vmul.f32 %v11362_v63, %v22196_v13  ;;  %v10780_v63 = vrot.slane %v23261_v8, 4 }
 0x8a9   : > { %13965 = vmatmul.mubr.f32.vlgmr.msra.gmra.mrb[8].mxu1 %v23212_v49 }
 0x8aa   : > { %13975 = vmatpush1.xpose.msra.mxu1 %v13879_v30  ;;  %14040 = vmatprep.mubr.f32.mxu1 %v13873_v15  ;;  %v10771_v15 = vadd.f32 %v10770_v21, %v10769_v38  ;;  %v14346_v38 = vand.u32 4294901760, %v14345_v62  ;;  %v10991_v21 = vadd.f32 %v10990_v17, %v10989_v58  ;;  %v10781_v52 = vadd.f32 %v23261_v8, %v10780_v63 }
 0x8ab   : > { %14049 = vmatprep.subr.mxu1 %v23203_v18 }
 0x8ac   : > { %v10772_v61 = vrot.slane %v10771_v15, 1  ;;  %v14347_v35 = vsub.f32 %v14345_v62, %v14346_v38  ;;  %v11140_v54 = vmul.f32 0.125, %v10991_v21 }
 0x8ae   : > { %v10773_v55 = vadd.f32 %v10772_v61, %v10771_v15  ;;  %v14348_v39 = vand.u32 4294901760, %v14347_v35  ;;  %v10887_v61 = vmul.f32 %v23261_v8, %v23261_v8 }
 0x8b0   : > { %v11109_v12 = vmul.f32 0.125, %v10773_v55 }
 0x8b1   : > { %14043 = vmatmul.mubr.f32.vlgmr.msra.gmra.mrb[8].mxu1 %v13879_v30  ;;  %v10765_v30 = vadd.f32 %v10764_v27, %v10763_v41 }
 0x8b2   : > { %14051 = vmatpush1.xpose.msra.mxu1 %v23212_v49  ;;  %14117 = vmatprep.mubr.f32.mxu1 %v13874_v34  ;;  %v11173_v10 = vmul.f32 %v11109_v12, %v11109_v12 }
 0x8b3   : > { %14129 = vmatprep.subr.mxu1 %v13874_v34  ;;  %v11426_v34 = vadd.f32 %v11394_v36, %v22200_v3  ;;  %v10766_v53 = vrot.slane %v10765_v30, 1  ;;  %v11269_v36 = vsub.f32 %v23223_v16, %v11109_v12 }
 0x8b5   : > { %v23250_v14 = vand.u32 4294901760, %v11426_v34  ;;  %v10767_v57 = vadd.f32 %v10766_v53, %v10765_v30  ;;  %v11004_v30 = vrot.slane %v10887_v61, 4  ;;  %v10782_v53 = vrot.slane %v10781_v52, 2 }
 0x8b7   : > { %v14351_v59 = vsub.f32 %v11426_v34, %v23250_v14  ;;  %v11108_v43 = vmul.f32 0.125, %v10767_v57  ;;  %v10886_v34 = vmul.f32 %v23269_v6, %v23269_v6  ;;  %v11005_v58 = vadd.f32 %v11004_v30, %v10887_v61 }
 0x8b8   : > { %v10775_v57 = vadd.f32 %v23269_v6, %v10774_v48 }
 0x8b9   : > { %14121 = vmatmul.mubr.f32.vlgmr.msra.gmra.mrb[8].mxu1 %v13880_v42  ;;  %v14352_v41 = vand.u32 4294901760, %v14351_v59  ;;  %v11172_v15 = vmul.f32 %v11108_v43, %v11108_v43  ;;  %v10998_v17 = vrot.slane %v10886_v34, 4 }
 0x8ba   : > { %14133 = vmatpush1.xpose.msra.mxu1 %v13880_v42  ;;  %14197 = vmatprep.mubr.f32.mxu1 %v23203_v18  ;;  %v11141_v42 = vmul.f32 0.125, %v10997_v0  ;;  %v10776_v21 = vrot.slane %v10775_v57, 2 }
 0x8bb   : > { %14205 = vmatprep.subr.mxu1 %v23203_v18  ;;  %v11204_v20 = vsub.f32 %v11140_v54, %v11172_v15 }
 0x8bc   : > { %v11205_v19 = vsub.f32 %v11141_v42, %v11173_v10  ;;  %v11268_v42 = vsub.f32 %v23231_v50, %v11108_v43  ;;  %v11006_v10 = vrot.slane %v11005_v58, 2 }
 0x8bd   : > { %v11236_v27 = vmax.f32 %v11204_v20, 0.0 }
 0x8be   : > { %v11237_v37 = vmax.f32 %v11205_v19, 0.0  ;;  %v10999_v19 = vadd.f32 %v10998_v17, %v10886_v34  ;;  %v11007_v15 = vadd.f32 %v11006_v10, %v11005_v58 }
 0x8c0   : > { %v11301_v51 = vadd.f32 1e-05, %v11237_v37  ;;  %v11000_v50 = vrot.slane %v10999_v19, 2  ;;  %v11008_v20 = vrot.slane %v11007_v15, 1 }
 0x8c1   : > { %14199 = vmatmul.mubr.f32.vlgmr.msra.gmra.mrb[8].mxu1 %v23212_v49 }
 0x8c2   : > { %14207 = vmatpush1.xpose.msra.mxu1 %v23212_v49  ;;  %14271 = vmatprep.mubr.f32.mxu1 %v23203_v18  ;;  %v14353_v18 = vsub.f32 %v14351_v59, %v14352_v41  ;;  %22040 = vrsqrt.f32 %v11301_v51 }
 0x8c3   : > { %14279 = vmatprep.subr.mxu1 %v23243_v46 }
 0x8c4   : > { %v14354_v33 = vand.u32 4294901760, %v14353_v18 }
 0x8c9   : > { %14273 = vmatmul.mubr.f32.vlgmr.msra.gmra.mrb[8].mxu1 %v23212_v49  ;;  %v11300_v49 = vadd.f32 1e-05, %v11236_v27  ;;  %v11001_v27 = vadd.f32 %v11000_v50, %v10999_v19  ;;  %v23299_v19 = vld [vmem:[%s22164_s9 + $0x198] sm:$0xff]  ;;  %v23307_v50 = vld [vmem:[%s22164_s9 + $0x190] sm:$0xff] }
 0x8ca   : > { %14281 = vmatpush1.xpose.msra.mxu1 %v23250_v14  ;;  %14349 = vmatprep.mubr.f32.mxu1 %v14348_v39 }
 0x8cb   : > { %14365 = vmatprep.subr.mxu1 %v14348_v39  ;;  %22042 = vrsqrt.f32 %v11300_v49  ;;  %v11009_v49 = vadd.f32 %v11008_v20, %v11007_v15  ;;  %v10786_v20 = vrot.slane %v23307_v50, 4 }
 0x8cc   : > { %v22041_v55 = vpop.eup %22040 }
 0x8cd   : > { %v11365_v0 = vmul.f32 %v22041_v55, %v11269_v36  ;;  %v11002_v36 = vrot.slane %v11001_v27, 1 }
 0x8cf   : > { %v11397_v12 = vmul.f32 %v11365_v0, %v22196_v13 }
 0x8d1   : > { %14355 = vmatmul.mubr.f32.vlgmr.msra.gmra.mrb[8].mxu1 %v14354_v33  ;;  %v11429_v35 = vadd.f32 %v11397_v12, %v22200_v3 }
 0x8d2   : > { %14371 = vmatpush1.xpose.msra.mxu1 %v14354_v33  ;;  %14435 = vmatprep.mubr.f32.mxu1 %v23243_v46 }
 0x8d3   : > { %14444 = vmatprep.subr.mxu1 %v14345_v62  ;;  %v23281_v37 = vand.u32 4294901760, %v11429_v35 }
 0x8d5   : > { %v22043_v16 = vpop.eup %22042  ;;  %v14817_v51 = vsub.f32 %v11429_v35, %v23281_v37 }
 0x8d6   : > { %v11364_v39 = vmul.f32 %v22043_v16, %v11268_v42 }
 0x8d8   : > { %v11396_v43 = vmul.f32 %v11364_v39, %v22196_v13  ;;  %v10792_v39 = vrot.slane %v23299_v19, 4 }
 0x8d9   : > { %14437 = vmatmul.mubr.f32.vlgmr.msra.gmra.mrb[8].mxu1 %v23250_v14 }
 0x8da   : > { %14447 = vmatpush1.xpose.msra.mxu1 %v14351_v59  ;;  %14512 = vmatprep.mubr.f32.mxu1 %v14345_v62  ;;  %v10783_v62 = vadd.f32 %v10782_v53, %v10781_v52  ;;  %v14818_v52 = vand.u32 4294901760, %v14817_v51  ;;  %v11003_v53 = vadd.f32 %v11002_v36, %v11001_v27  ;;  %v10793_v15 = vadd.f32 %v23299_v19, %v10792_v39 }
 0x8db   : > { %14521 = vmatprep.subr.mxu1 %v23243_v46 }
 0x8dc   : > { %v10784_v54 = vrot.slane %v10783_v62, 1  ;;  %v14819_v34 = vsub.f32 %v14817_v51, %v14818_v52  ;;  %v11142_v42 = vmul.f32 0.125, %v11003_v53 }
 0x8de   : > { %v10785_v18 = vadd.f32 %v10784_v54, %v10783_v62  ;;  %v14820_v17 = vand.u32 4294901760, %v14819_v34  ;;  %v10889_v54 = vmul.f32 %v23299_v19, %v23299_v19 }
 0x8e0   : > { %v11111_v63 = vmul.f32 0.125, %v10785_v18 }
 0x8e1   : > { %14515 = vmatmul.mubr.f32.vlgmr.msra.gmra.mrb[8].mxu1 %v14351_v59  ;;  %v10777_v59 = vadd.f32 %v10776_v21, %v10775_v57 }
 0x8e2   : > { %14523 = vmatpush1.xpose.msra.mxu1 %v23250_v14  ;;  %14589 = vmatprep.mubr.f32.mxu1 %v14346_v38  ;;  %v11175_v55 = vmul.f32 %v11111_v63, %v11111_v63 }
 0x8e3   : > { %14601 = vmatprep.subr.mxu1 %v14346_v38  ;;  %v11428_v38 = vadd.f32 %v11396_v43, %v22200_v3  ;;  %v10778_v33 = vrot.slane %v10777_v59, 1  ;;  %v11271_v43 = vsub.f32 %v23261_v8, %v11111_v63 }
 0x8e5   : > { %v23288_v61 = vand.u32 4294901760, %v11428_v38  ;;  %v10779_v30 = vadd.f32 %v10778_v33, %v10777_v59  ;;  %v11016_v59 = vrot.slane %v10889_v54, 4  ;;  %v10794_v33 = vrot.slane %v10793_v15, 2 }
 0x8e7   : > { %v14823_v48 = vsub.f32 %v11428_v38, %v23288_v61  ;;  %v11110_v58 = vmul.f32 0.125, %v10779_v30  ;;  %v10888_v38 = vmul.f32 %v23307_v50, %v23307_v50  ;;  %v11017_v27 = vadd.f32 %v11016_v59, %v10889_v54 }
 0x8e8   : > { %v10787_v30 = vadd.f32 %v23307_v50, %v10786_v20 }
 0x8e9   : > { %14593 = vmatmul.mubr.f32.vlgmr.msra.gmra.mrb[8].mxu1 %v14352_v41  ;;  %v14824_v57 = vand.u32 4294901760, %v14823_v48  ;;  %v11174_v62 = vmul.f32 %v11110_v58, %v11110_v58  ;;  %v11010_v36 = vrot.slane %v10888_v38, 4 }
 0x8ea   : > { %14605 = vmatpush1.xpose.msra.mxu1 %v14352_v41  ;;  %14669 = vmatprep.mubr.f32.mxu1 %v23243_v46  ;;  %v11143_v41 = vmul.f32 0.125, %v11009_v49  ;;  %v10788_v53 = vrot.slane %v10787_v30, 2 }
 0x8eb   : > { %14677 = vmatprep.subr.mxu1 %v23243_v46  ;;  %v11206_v16 = vsub.f32 %v11142_v42, %v11174_v62 }
 0x8ec   : > { %v11207_v0 = vsub.f32 %v11143_v41, %v11175_v55  ;;  %v11270_v41 = vsub.f32 %v23269_v6, %v11110_v58  ;;  %v11018_v55 = vrot.slane %v11017_v27, 2 }
 0x8ed   : > { %v11238_v21 = vmax.f32 %v11206_v16, 0.0 }
 0x8ee   : > { %v11239_v10 = vmax.f32 %v11207_v0, 0.0  ;;  %v11011_v0 = vadd.f32 %v11010_v36, %v10888_v38  ;;  %v11019_v62 = vadd.f32 %v11018_v55, %v11017_v27 }
 0x8f0   : > { %v11303_v12 = vadd.f32 1e-05, %v11239_v10  ;;  %v11012_v6 = vrot.slane %v11011_v0, 2  ;;  %v11020_v16 = vrot.slane %v11019_v62, 1 }
 0x8f1   : > { %14671 = vmatmul.mubr.f32.vlgmr.msra.gmra.mrb[8].mxu1 %v23250_v14 }
 0x8f2   : > { %14679 = vmatpush1.xpose.msra.mxu1 %v23250_v14  ;;  %14743 = vmatprep.mubr.f32.mxu1 %v23243_v46  ;;  %v14825_v46 = vsub.f32 %v14823_v48, %v14824_v57  ;;  %22044 = vrsqrt.f32 %v11303_v12 }
 0x8f3   : > { %14751 = vmatprep.subr.mxu1 %v23281_v37 }
 0x8f4   : > { %v14826_v35 = vand.u32 4294901760, %v14825_v46 }
 0x8f9   : > { %14745 = vmatmul.mubr.f32.vlgmr.msra.gmra.mrb[8].mxu1 %v23250_v14  ;;  %v11302_v14 = vadd.f32 1e-05, %v11238_v21  ;;  %v11013_v21 = vadd.f32 %v11012_v6, %v11011_v0  ;;  %v23337_v0 = vld [vmem:[%s22164_s9 + $0x1a8] sm:$0xff]  ;;  %v23345_v6 = vld [vmem:[%s22164_s9 + $0x1a0] sm:$0xff] }
 0x8fa   : > { %14753 = vmatpush1.xpose.msra.mxu1 %v23288_v61  ;;  %14821 = vmatprep.mubr.f32.mxu1 %v14820_v17 }
 0x8fb   : > { %14837 = vmatprep.subr.mxu1 %v14820_v17  ;;  %22046 = vrsqrt.f32 %v11302_v14  ;;  %v11021_v14 = vadd.f32 %v11020_v16, %v11019_v62  ;;  %v10798_v16 = vrot.slane %v23345_v6, 4 }
 0x8fc   : > { %v22045_v18 = vpop.eup %22044 }
 0x8fd   : > { %v11367_v49 = vmul.f32 %v22045_v18, %v11271_v43  ;;  %v11014_v43 = vrot.slane %v11013_v21, 1 }
 0x8ff   : > { %v11399_v63 = vmul.f32 %v11367_v49, %v22196_v13 }
 0x901   : > { %14827 = vmatmul.mubr.f32.vlgmr.msra.gmra.mrb[8].mxu1 %v14826_v35  ;;  %v11431_v34 = vadd.f32 %v11399_v63, %v22200_v3 }
 0x902   : > { %14843 = vmatpush1.xpose.msra.mxu1 %v14826_v35  ;;  %14907 = vmatprep.mubr.f32.mxu1 %v23281_v37 }
 0x903   : > { %14916 = vmatprep.subr.mxu1 %v14817_v51  ;;  %v23319_v10 = vand.u32 4294901760, %v11431_v34 }
 0x905   : > { %v22047_v8 = vpop.eup %22046  ;;  %v15289_v12 = vsub.f32 %v11431_v34, %v23319_v10 }
 0x906   : > { %v11366_v17 = vmul.f32 %v22047_v8, %v11270_v41 }
 0x908   : > { %v11398_v58 = vmul.f32 %v11366_v17, %v22196_v13  ;;  %v10804_v17 = vrot.slane %v23337_v0, 4 }
 0x909   : > { %14909 = vmatmul.mubr.f32.vlgmr.msra.gmra.mrb[8].mxu1 %v23288_v61 }
 0x90a   : > { %14919 = vmatpush1.xpose.msra.mxu1 %v14823_v48  ;;  %14984 = vmatprep.mubr.f32.mxu1 %v14817_v51  ;;  %v10795_v51 = vadd.f32 %v10794_v33, %v10793_v15  ;;  %v15290_v15 = vand.u32 4294901760, %v15289_v12  ;;  %v11015_v33 = vadd.f32 %v11014_v43, %v11013_v21  ;;  %v10805_v62 = vadd.f32 %v23337_v0, %v10804_v17 }
 0x90b   : > { %14993 = vmatprep.subr.mxu1 %v23281_v37 }
 0x90c   : > { %v10796_v42 = vrot.slane %v10795_v51, 1  ;;  %v15291_v38 = vsub.f32 %v15289_v12, %v15290_v15  ;;  %v11144_v41 = vmul.f32 0.125, %v11015_v33 }
 0x90e   : > { %v10797_v46 = vadd.f32 %v10796_v42, %v10795_v51  ;;  %v15292_v36 = vand.u32 4294901760, %v15291_v38  ;;  %v10891_v42 = vmul.f32 %v23337_v0, %v23337_v0 }
 0x910   : > { %v11113_v39 = vmul.f32 0.125, %v10797_v46 }
 0x911   : > { %14987 = vmatmul.mubr.f32.vlgmr.msra.gmra.mrb[8].mxu1 %v14823_v48  ;;  %v10789_v48 = vadd.f32 %v10788_v53, %v10787_v30 }
 0x912   : > { %14995 = vmatpush1.xpose.msra.mxu1 %v23288_v61  ;;  %15061 = vmatprep.mubr.f32.mxu1 %v14818_v52  ;;  %v11177_v18 = vmul.f32 %v11113_v39, %v11113_v39 }
 0x913   : > { %15073 = vmatprep.subr.mxu1 %v14818_v52  ;;  %v11430_v52 = vadd.f32 %v11398_v58, %v22200_v3  ;;  %v10790_v35 = vrot.slane %v10789_v48, 1  ;;  %v11273_v58 = vsub.f32 %v23299_v19, %v11113_v39 }
 0x915   : > { %v23326_v54 = vand.u32 4294901760, %v11430_v52  ;;  %v10791_v59 = vadd.f32 %v10790_v35, %v10789_v48  ;;  %v11028_v48 = vrot.slane %v10891_v42, 4  ;;  %v10806_v35 = vrot.slane %v10805_v62, 2 }
 0x917   : > { %v15295_v20 = vsub.f32 %v11430_v52, %v23326_v54  ;;  %v11112_v27 = vmul.f32 0.125, %v10791_v59  ;;  %v10890_v52 = vmul.f32 %v23345_v6, %v23345_v6  ;;  %v11029_v21 = vadd.f32 %v11028_v48, %v10891_v42 }
 0x918   : > { %v10799_v59 = vadd.f32 %v23345_v6, %v10798_v16 }
 0x919   : > { %15065 = vmatmul.mubr.f32.vlgmr.msra.gmra.mrb[8].mxu1 %v14824_v57  ;;  %v15296_v30 = vand.u32 4294901760, %v15295_v20  ;;  %v11176_v51 = vmul.f32 %v11112_v27, %v11112_v27  ;;  %v11022_v43 = vrot.slane %v10890_v52, 4 }
 0x91a   : > { %15077 = vmatpush1.xpose.msra.mxu1 %v14824_v57  ;;  %15141 = vmatprep.mubr.f32.mxu1 %v23281_v37  ;;  %v11145_v57 = vmul.f32 0.125, %v11021_v14  ;;  %v10800_v33 = vrot.slane %v10799_v59, 2 }
 0x91b   : > { %15149 = vmatprep.subr.mxu1 %v23281_v37  ;;  %v11208_v8 = vsub.f32 %v11144_v41, %v11176_v51 }
 0x91c   : > { %v11209_v49 = vsub.f32 %v11145_v57, %v11177_v18  ;;  %v11272_v57 = vsub.f32 %v23307_v50, %v11112_v27  ;;  %v11030_v18 = vrot.slane %v11029_v21, 2 }
 0x91d   : > { %v11240_v53 = vmax.f32 %v11208_v8, 0.0 }
 0x91e   : > { %v11241_v55 = vmax.f32 %v11209_v49, 0.0  ;;  %v11023_v49 = vadd.f32 %v11022_v43, %v10890_v52  ;;  %v11031_v51 = vadd.f32 %v11030_v18, %v11029_v21 }
 0x920   : > { %v11305_v63 = vadd.f32 1e-05, %v11241_v55  ;;  %v11024_v50 = vrot.slane %v11023_v49, 2  ;;  %v11032_v8 = vrot.slane %v11031_v51, 1 }
 0x921   : > { %15143 = vmatmul.mubr.f32.vlgmr.msra.gmra.mrb[8].mxu1 %v23288_v61 }
 0x922   : > { %15151 = vmatpush1.xpose.msra.mxu1 %v23288_v61  ;;  %15215 = vmatprep.mubr.f32.mxu1 %v23281_v37  ;;  %v15297_v37 = vsub.f32 %v15295_v20, %v15296_v30  ;;  %22048 = vrsqrt.f32 %v11305_v63 }
 0x923   : > { %15223 = vmatprep.subr.mxu1 %v23319_v10 }
 0x924   : > { %v15298_v34 = vand.u32 4294901760, %v15297_v37 }
 0x929   : > { %15217 = vmatmul.mubr.f32.vlgmr.msra.gmra.mrb[8].mxu1 %v23288_v61  ;;  %v11304_v61 = vadd.f32 1e-05, %v11240_v53  ;;  %v11025_v53 = vadd.f32 %v11024_v50, %v11023_v49  ;;  %v23375_v49 = vld [vmem:[%s22164_s9 + $0x1b8] sm:$0xff]  ;;  %v23383_v50 = vld [vmem:[%s22164_s9 + $0x1b0] sm:$0xff] }
 0x92a   : > { %15225 = vmatpush1.xpose.msra.mxu1 %v23326_v54  ;;  %15293 = vmatprep.mubr.f32.mxu1 %v15292_v36 }
 0x92b   : > { %15309 = vmatprep.subr.mxu1 %v15292_v36  ;;  %22050 = vrsqrt.f32 %v11304_v61  ;;  %v11033_v61 = vadd.f32 %v11032_v8, %v11031_v51  ;;  %v10810_v8 = vrot.slane %v23383_v50, 4 }
 0x92c   : > { %v22049_v46 = vpop.eup %22048 }
 0x92d   : > { %v11369_v14 = vmul.f32 %v22049_v46, %v11273_v58  ;;  %v11026_v58 = vrot.slane %v11025_v53, 1 }
 0x92f   : > { %v11401_v39 = vmul.f32 %v11369_v14, %v22196_v13 }
 0x931   : > { %15299 = vmatmul.mubr.f32.vlgmr.msra.gmra.mrb[8].mxu1 %v15298_v34  ;;  %v11433_v38 = vadd.f32 %v11401_v39, %v22200_v3 }
 0x932   : > { %15315 = vmatpush1.xpose.msra.mxu1 %v15298_v34  ;;  %15379 = vmatprep.mubr.f32.mxu1 %v23319_v10 }
 0x933   : > { %15388 = vmatprep.subr.mxu1 %v15289_v12  ;;  %v23357_v55 = vand.u32 4294901760, %v11433_v38 }
 0x935   : > { %v22051_v19 = vpop.eup %22050  ;;  %v15761_v63 = vsub.f32 %v11433_v38, %v23357_v55 }
 0x936   : > { %v11368_v36 = vmul.f32 %v22051_v19, %v11272_v57 }
 0x938   : > { %v11400_v27 = vmul.f32 %v11368_v36, %v22196_v13  ;;  %v10816_v36 = vrot.slane %v23375_v49, 4 }
 0x939   : > { %15381 = vmatmul.mubr.f32.vlgmr.msra.gmra.mrb[8].mxu1 %v23326_v54 }
 0x93a   : > { %15391 = vmatpush1.xpose.msra.mxu1 %v15295_v20  ;;  %15456 = vmatprep.mubr.f32.mxu1 %v15289_v12  ;;  %v10807_v12 = vadd.f32 %v10806_v35, %v10805_v62  ;;  %v15762_v62 = vand.u32 4294901760, %v15761_v63  ;;  %v11027_v35 = vadd.f32 %v11026_v58, %v11025_v53  ;;  %v10817_v51 = vadd.f32 %v23375_v49, %v10816_v36 }
 0x93b   : > { %15465 = vmatprep.subr.mxu1 %v23319_v10 }
 0x93c   : > { %v10808_v41 = vrot.slane %v10807_v12, 1  ;;  %v15763_v52 = vsub.f32 %v15761_v63, %v15762_v62  ;;  %v11146_v57 = vmul.f32 0.125, %v11027_v35 }
 0x93e   : > { %v10809_v37 = vadd.f32 %v10808_v41, %v10807_v12  ;;  %v15764_v43 = vand.u32 4294901760, %v15763_v52  ;;  %v10893_v41 = vmul.f32 %v23375_v49, %v23375_v49 }
 0x940   : > { %v11115_v17 = vmul.f32 0.125, %v10809_v37 }
 0x941   : > { %15459 = vmatmul.mubr.f32.vlgmr.msra.gmra.mrb[8].mxu1 %v15295_v20  ;;  %v10801_v20 = vadd.f32 %v10800_v33, %v10799_v59 }
 0x942   : > { %15467 = vmatpush1.xpose.msra.mxu1 %v23326_v54  ;;  %15533 = vmatprep.mubr.f32.mxu1 %v15290_v15  ;;  %v11179_v46 = vmul.f32 %v11115_v17, %v11115_v17 }
 0x943   : > { %15545 = vmatprep.subr.mxu1 %v15290_v15  ;;  %v11432_v15 = vadd.f32 %v11400_v27, %v22200_v3  ;;  %v10802_v34 = vrot.slane %v10801_v20, 1  ;;  %v11275_v27 = vsub.f32 %v23337_v0, %v11115_v17 }
 0x945   : > { %v23364_v42 = vand.u32 4294901760, %v11432_v15  ;;  %v10803_v48 = vadd.f32 %v10802_v34, %v10801_v20  ;;  %v11040_v20 = vrot.slane %v10893_v41, 4  ;;  %v10818_v34 = vrot.slane %v10817_v51, 2 }
 0x947   : > { %v15767_v16 = vsub.f32 %v11432_v15, %v23364_v42  ;;  %v11114_v21 = vmul.f32 0.125, %v10803_v48  ;;  %v10892_v15 = vmul.f32 %v23383_v50, %v23383_v50  ;;  %v11041_v53 = vadd.f32 %v11040_v20, %v10893_v41 }
 0x948   : > { %v10811_v48 = vadd.f32 %v23383_v50, %v10810_v8 }
 0x949   : > { %15537 = vmatmul.mubr.f32.vlgmr.msra.gmra.mrb[8].mxu1 %v15296_v30  ;;  %v15768_v59 = vand.u32 4294901760, %v15767_v16  ;;  %v11178_v12 = vmul.f32 %v11114_v21, %v11114_v21  ;;  %v11034_v58 = vrot.slane %v10892_v15, 4 }
 0x94a   : > { %15549 = vmatpush1.xpose.msra.mxu1 %v15296_v30  ;;  %15613 = vmatprep.mubr.f32.mxu1 %v23319_v10  ;;  %v11147_v30 = vmul.f32 0.125, %v11033_v61  ;;  %v10812_v35 = vrot.slane %v10811_v48, 2 }
 0x94b   : > { %15621 = vmatprep.subr.mxu1 %v23319_v10  ;;  %v11210_v19 = vsub.f32 %v11146_v57, %v11178_v12 }
 0x94c   : > { %v11211_v14 = vsub.f32 %v11147_v30, %v11179_v46  ;;  %v11274_v30 = vsub.f32 %v23345_v6, %v11114_v21  ;;  %v11042_v46 = vrot.slane %v11041_v53, 2 }
 0x94d   : > { %v11242_v33 = vmax.f32 %v11210_v19, 0.0 }
 0x94e   : > { %v11243_v18 = vmax.f32 %v11211_v14, 0.0  ;;  %v11035_v14 = vadd.f32 %v11034_v58, %v10892_v15  ;;  %v11043_v12 = vadd.f32 %v11042_v46, %v11041_v53 }
 0x950   : > { %v11307_v39 = vadd.f32 1e-05, %v11243_v18  ;;  %v11036_v6 = vrot.slane %v11035_v14, 2  ;;  %v11044_v19 = vrot.slane %v11043_v12, 1 }
 0x951   : > { %15615 = vmatmul.mubr.f32.vlgmr.msra.gmra.mrb[8].mxu1 %v23326_v54 }
 0x952   : > { %15623 = vmatpush1.xpose.msra.mxu1 %v23326_v54  ;;  %15687 = vmatprep.mubr.f32.mxu1 %v23319_v10  ;;  %v15769_v10 = vsub.f32 %v15767_v16, %v15768_v59  ;;  %22052 = vrsqrt.f32 %v11307_v39 }
 0x953   : > { %15695 = vmatprep.subr.mxu1 %v23357_v55 }
 0x954   : > { %v15770_v38 = vand.u32 4294901760, %v15769_v10 }
 0x959   : > { %15689 = vmatmul.mubr.f32.vlgmr.msra.gmra.mrb[8].mxu1 %v23326_v54  ;;  %v11306_v54 = vadd.f32 1e-05, %v11242_v33  ;;  %v11037_v33 = vadd.f32 %v11036_v6, %v11035_v14  ;;  %v23413_v14 = vld [vmem:[%s22164_s9 + $0x1c8] sm:$0xff]  ;;  %v23421_v6 = vld [vmem:[%s22164_s9 + $0x1c0] sm:$0xff] }
 0x95a   : > { %15697 = vmatpush1.xpose.msra.mxu1 %v23364_v42  ;;  %15765 = vmatprep.mubr.f32.mxu1 %v15764_v43 }
 0x95b   : > { %15781 = vmatprep.subr.mxu1 %v15764_v43  ;;  %22054 = vrsqrt.f32 %v11306_v54  ;;  %v11045_v54 = vadd.f32 %v11044_v19, %v11043_v12  ;;  %v10822_v19 = vrot.slane %v23421_v6, 4 }
 0x95c   : > { %v22053_v37 = vpop.eup %22052 }
 0x95d   : > { %v11371_v61 = vmul.f32 %v22053_v37, %v11275_v27  ;;  %v11038_v27 = vrot.slane %v11037_v33, 1 }
 0x95f   : > { %v11403_v17 = vmul.f32 %v11371_v61, %v22196_v13 }
 0x961   : > { %15771 = vmatmul.mubr.f32.vlgmr.msra.gmra.mrb[8].mxu1 %v15770_v38  ;;  %v11435_v52 = vadd.f32 %v11403_v17, %v22200_v3 }
 0x962   : > { %15787 = vmatpush1.xpose.msra.mxu1 %v15770_v38  ;;  %15851 = vmatprep.mubr.f32.mxu1 %v23357_v55 }
 0x963   : > { %15860 = vmatprep.subr.mxu1 %v15761_v63  ;;  %v23395_v18 = vand.u32 4294901760, %v11435_v52 }
 0x965   : > { %v22055_v0 = vpop.eup %22054  ;;  %v16233_v39 = vsub.f32 %v11435_v52, %v23395_v18 }
 0x966   : > { %v11370_v43 = vmul.f32 %v22055_v0, %v11274_v30 }
 0x968   : > { %v11402_v21 = vmul.f32 %v11370_v43, %v22196_v13  ;;  %v10828_v43 = vrot.slane %v23413_v14, 4 }
 0x969   : > { %15853 = vmatmul.mubr.f32.vlgmr.msra.gmra.mrb[8].mxu1 %v23364_v42 }
 0x96a   : > { %15863 = vmatpush1.xpose.msra.mxu1 %v15767_v16  ;;  %15928 = vmatprep.mubr.f32.mxu1 %v15761_v63  ;;  %v10819_v63 = vadd.f32 %v10818_v34, %v10817_v51  ;;  %v16234_v51 = vand.u32 4294901760, %v16233_v39  ;;  %v11039_v34 = vadd.f32 %v11038_v27, %v11037_v33  ;;  %v10829_v12 = vadd.f32 %v23413_v14, %v10828_v43 }
 0x96b   : > { %15937 = vmatprep.subr.mxu1 %v23357_v55 }
 0x96c   : > { %v10820_v57 = vrot.slane %v10819_v63, 1  ;;  %v16235_v15 = vsub.f32 %v16233_v39, %v16234_v51  ;;  %v11148_v30 = vmul.f32 0.125, %v11039_v34 }
 0x96e   : > { %v10821_v10 = vadd.f32 %v10820_v57, %v10819_v63  ;;  %v16236_v58 = vand.u32 4294901760, %v16235_v15  ;;  %v10895_v57 = vmul.f32 %v23413_v14, %v23413_v14 }
 0x970   : > { %v11117_v36 = vmul.f32 0.125, %v10821_v10 }
 0x971   : > { %15931 = vmatmul.mubr.f32.vlgmr.msra.gmra.mrb[8].mxu1 %v15767_v16  ;;  %v10813_v16 = vadd.f32 %v10812_v35, %v10811_v48 }
 0x972   : > { %15939 = vmatpush1.xpose.msra.mxu1 %v23364_v42  ;;  %16005 = vmatprep.mubr.f32.mxu1 %v15762_v62  ;;  %v11181_v37 = vmul.f32 %v11117_v36, %v11117_v36 }
 0x973   : > { %16017 = vmatprep.subr.mxu1 %v15762_v62  ;;  %v11434_v62 = vadd.f32 %v11402_v21, %v22200_v3  ;;  %v10814_v38 = vrot.slane %v10813_v16, 1  ;;  %v11277_v21 = vsub.f32 %v23375_v49, %v11117_v36 }
 0x975   : > { %v23402_v41 = vand.u32 4294901760, %v11434_v62  ;;  %v10815_v20 = vadd.f32 %v10814_v38, %v10813_v16  ;;  %v11052_v16 = vrot.slane %v10895_v57, 4  ;;  %v10830_v38 = vrot.slane %v10829_v12, 2 }
 0x977   : > { %v16239_v8 = vsub.f32 %v11434_v62, %v23402_v41  ;;  %v11116_v53 = vmul.f32 0.125, %v10815_v20  ;;  %v10894_v62 = vmul.f32 %v23421_v6, %v23421_v6  ;;  %v11053_v33 = vadd.f32 %v11052_v16, %v10895_v57 }
 0x978   : > { %v10823_v20 = vadd.f32 %v23421_v6, %v10822_v19 }
 0x979   : > { %16009 = vmatmul.mubr.f32.vlgmr.msra.gmra.mrb[8].mxu1 %v15768_v59  ;;  %v16240_v48 = vand.u32 4294901760, %v16239_v8  ;;  %v11180_v63 = vmul.f32 %v11116_v53, %v11116_v53  ;;  %v11046_v27 = vrot.slane %v10894_v62, 4 }
 0x97a   : > { %16021 = vmatpush1.xpose.msra.mxu1 %v15768_v59  ;;  %16085 = vmatprep.mubr.f32.mxu1 %v23357_v55  ;;  %v11149_v59 = vmul.f32 0.125, %v11045_v54  ;;  %v10824_v34 = vrot.slane %v10823_v20, 2 }
 0x97b   : > { %16093 = vmatprep.subr.mxu1 %v23357_v55  ;;  %v11212_v0 = vsub.f32 %v11148_v30, %v11180_v63 }
 0x97c   : > { %v11213_v61 = vsub.f32 %v11149_v59, %v11181_v37  ;;  %v11276_v59 = vsub.f32 %v23383_v50, %v11116_v53  ;;  %v11054_v37 = vrot.slane %v11053_v33, 2 }
 0x97d   : > { %v11244_v35 = vmax.f32 %v11212_v0, 0.0 }
 0x97e   : > { %v11245_v46 = vmax.f32 %v11213_v61, 0.0  ;;  %v11047_v61 = vadd.f32 %v11046_v27, %v10894_v62  ;;  %v11055_v63 = vadd.f32 %v11054_v37, %v11053_v33 }
 0x980   : > { %v11309_v17 = vadd.f32 1e-05, %v11245_v46  ;;  %v11048_v50 = vrot.slane %v11047_v61, 2  ;;  %v11056_v0 = vrot.slane %v11055_v63, 1 }
 0x981   : > { %16087 = vmatmul.mubr.f32.vlgmr.msra.gmra.mrb[8].mxu1 %v23364_v42 }
 0x982   : > { %16095 = vmatpush1.xpose.msra.mxu1 %v23364_v42  ;;  %16159 = vmatprep.mubr.f32.mxu1 %v23357_v55  ;;  %v16241_v55 = vsub.f32 %v16239_v8, %v16240_v48  ;;  %22056 = vrsqrt.f32 %v11309_v17 }
 0x983   : > { %16167 = vmatprep.subr.mxu1 %v23395_v18 }
 0x984   : > { %v16242_v52 = vand.u32 4294901760, %v16241_v55 }
 0x989   : > { %16161 = vmatmul.mubr.f32.vlgmr.msra.gmra.mrb[8].mxu1 %v23364_v42  ;;  %v11308_v42 = vadd.f32 1e-05, %v11244_v35  ;;  %v11049_v35 = vadd.f32 %v11048_v50, %v11047_v61  ;;  %v23451_v61 = vld [vmem:[%s22164_s9 + $0x1d8] sm:$0xff]  ;;  %v23459_v50 = vld [vmem:[%s22164_s9 + $0x1d0] sm:$0xff] }
 0x98a   : > { %16169 = vmatpush1.xpose.msra.mxu1 %v23402_v41  ;;  %16237 = vmatprep.mubr.f32.mxu1 %v16236_v58 }
 0x98b   : > { %16253 = vmatprep.subr.mxu1 %v16236_v58  ;;  %22058 = vrsqrt.f32 %v11308_v42  ;;  %v11057_v42 = vadd.f32 %v11056_v0, %v11055_v63  ;;  %v10834_v0 = vrot.slane %v23459_v50, 4 }
 0x98c   : > { %v22057_v10 = vpop.eup %22056 }
 0x98d   : > { %v11373_v54 = vmul.f32 %v22057_v10, %v11277_v21  ;;  %v11050_v21 = vrot.slane %v11049_v35, 1 }
 0x98f   : > { %v11405_v36 = vmul.f32 %v11373_v54, %v22196_v13 }
 0x991   : > { %16243 = vmatmul.mubr.f32.vlgmr.msra.gmra.mrb[8].mxu1 %v16242_v52  ;;  %v11437_v15 = vadd.f32 %v11405_v36, %v22200_v3 }
 0x992   : > { %16259 = vmatpush1.xpose.msra.mxu1 %v16242_v52  ;;  %16323 = vmatprep.mubr.f32.mxu1 %v23395_v18 }
 0x993   : > { %16332 = vmatprep.subr.mxu1 %v16233_v39  ;;  %v23433_v46 = vand.u32 4294901760, %v11437_v15 }
 0x995   : > { %v22059_v49 = vpop.eup %22058  ;;  %v16705_v17 = vsub.f32 %v11437_v15, %v23433_v46 }
 0x996   : > { %v11372_v58 = vmul.f32 %v22059_v49, %v11276_v59 }
 0x998   : > { %v11404_v53 = vmul.f32 %v11372_v58, %v22196_v13  ;;  %v10840_v58 = vrot.slane %v23451_v61, 4 }
 0x999   : > { %16325 = vmatmul.mubr.f32.vlgmr.msra.gmra.mrb[8].mxu1 %v23402_v41 }
 0x99a   : > { %16335 = vmatpush1.xpose.msra.mxu1 %v16239_v8  ;;  %16400 = vmatprep.mubr.f32.mxu1 %v16233_v39  ;;  %v10831_v39 = vadd.f32 %v10830_v38, %v10829_v12  ;;  %v16706_v12 = vand.u32 4294901760, %v16705_v17  ;;  %v11051_v38 = vadd.f32 %v11050_v21, %v11049_v35  ;;  %v10841_v63 = vadd.f32 %v23451_v61, %v10840_v58 }
 0x99b   : > { %16409 = vmatprep.subr.mxu1 %v23395_v18 }
 0x99c   : > { %v10832_v30 = vrot.slane %v10831_v39, 1  ;;  %v16707_v62 = vsub.f32 %v16705_v17, %v16706_v12  ;;  %v11150_v59 = vmul.f32 0.125, %v11051_v38 }
 0x99e   : > { %v10833_v55 = vadd.f32 %v10832_v30, %v10831_v39  ;;  %v16708_v27 = vand.u32 4294901760, %v16707_v62  ;;  %v10897_v30 = vmul.f32 %v23451_v61, %v23451_v61 }
 0x9a0   : > { %v11119_v43 = vmul.f32 0.125, %v10833_v55 }
 0x9a1   : > { %16403 = vmatmul.mubr.f32.vlgmr.msra.gmra.mrb[8].mxu1 %v16239_v8  ;;  %v10825_v8 = vadd.f32 %v10824_v34, %v10823_v20 }
 0x9a2   : > { %16411 = vmatpush1.xpose.msra.mxu1 %v23402_v41  ;;  %16477 = vmatprep.mubr.f32.mxu1 %v16234_v51  ;;  %v11183_v10 = vmul.f32 %v11119_v43, %v11119_v43 }
 0x9a3   : > { %16489 = vmatprep.subr.mxu1 %v16234_v51  ;;  %v11436_v51 = vadd.f32 %v11404_v53, %v22200_v3  ;;  %v10826_v52 = vrot.slane %v10825_v8, 1  ;;  %v11279_v53 = vsub.f32 %v23413_v14, %v11119_v43 }
 0x9a5   : > { %v23440_v57 = vand.u32 4294901760, %v11436_v51  ;;  %v10827_v16 = vadd.f32 %v10826_v52, %v10825_v8  ;;  %v11064_v8 = vrot.slane %v10897_v30, 4  ;;  %v10842_v52 = vrot.slane %v10841_v63, 2 }
 0x9a7   : > { %v16711_v19 = vsub.f32 %v11436_v51, %v23440_v57  ;;  %v11118_v33 = vmul.f32 0.125, %v10827_v16  ;;  %v10896_v51 = vmul.f32 %v23459_v50, %v23459_v50  ;;  %v11065_v35 = vadd.f32 %v11064_v8, %v10897_v30 }
 0x9a8   : > { %v10835_v16 = vadd.f32 %v23459_v50, %v10834_v0 }
 0x9a9   : > { %16481 = vmatmul.mubr.f32.vlgmr.msra.gmra.mrb[8].mxu1 %v16240_v48  ;;  %v16712_v20 = vand.u32 4294901760, %v16711_v19  ;;  %v11182_v39 = vmul.f32 %v11118_v33, %v11118_v33  ;;  %v11058_v21 = vrot.slane %v10896_v51, 4 }
 0x9aa   : > { %16493 = vmatpush1.xpose.msra.mxu1 %v16240_v48  ;;  %16557 = vmatprep.mubr.f32.mxu1 %v23395_v18  ;;  %v11151_v48 = vmul.f32 0.125, %v11057_v42  ;;  %v10836_v38 = vrot.slane %v10835_v16, 2 }
 0x9ab   : > { %16565 = vmatprep.subr.mxu1 %v23395_v18  ;;  %v11214_v49 = vsub.f32 %v11150_v59, %v11182_v39 }
 0x9ac   : > { %v11215_v54 = vsub.f32 %v11151_v48, %v11183_v10  ;;  %v11278_v48 = vsub.f32 %v23421_v6, %v11118_v33  ;;  %v11066_v10 = vrot.slane %v11065_v35, 2 }
 0x9ad   : > { %v11246_v34 = vmax.f32 %v11214_v49, 0.0 }
 0x9ae   : > { %v11247_v37 = vmax.f32 %v11215_v54, 0.0  ;;  %v11059_v54 = vadd.f32 %v11058_v21, %v10896_v51  ;;  %v11067_v39 = vadd.f32 %v11066_v10, %v11065_v35 }
 0x9b0   : > { %v11311_v36 = vadd.f32 1e-05, %v11247_v37  ;;  %v11060_v6 = vrot.slane %v11059_v54, 2  ;;  %v11068_v49 = vrot.slane %v11067_v39, 1 }
 0x9b1   : > { %16559 = vmatmul.mubr.f32.vlgmr.msra.gmra.mrb[8].mxu1 %v23402_v41 }
 0x9b2   : > { %16567 = vmatpush1.xpose.msra.mxu1 %v23402_v41  ;;  %16631 = vmatprep.mubr.f32.mxu1 %v23395_v18  ;;  %v16713_v18 = vsub.f32 %v16711_v19, %v16712_v20  ;;  %22060 = vrsqrt.f32 %v11311_v36 }
 0x9b3   : > { %16639 = vmatprep.subr.mxu1 %v23433_v46 }
 0x9b4   : > { %v16714_v15 = vand.u32 4294901760, %v16713_v18 }
 0x9b9   : > { %16633 = vmatmul.mubr.f32.vlgmr.msra.gmra.mrb[8].mxu1 %v23402_v41  ;;  %v11310_v41 = vadd.f32 1e-05, %v11246_v34  ;;  %v11061_v34 = vadd.f32 %v11060_v6, %v11059_v54  ;;  %v23489_v54 = vld [vmem:[%s22164_s9 + $0x1e8] sm:$0xff]  ;;  %v23497_v6 = vld [vmem:[%s22164_s9 + $0x1e0] sm:$0xff] }
 0x9ba   : > { %16641 = vmatpush1.xpose.msra.mxu1 %v23440_v57  ;;  %16709 = vmatprep.mubr.f32.mxu1 %v16708_v27 }
 0x9bb   : > { %16725 = vmatprep.subr.mxu1 %v16708_v27  ;;  %22062 = vrsqrt.f32 %v11310_v41  ;;  %v11069_v41 = vadd.f32 %v11068_v49, %v11067_v39  ;;  %v10846_v49 = vrot.slane %v23497_v6, 4 }
 0x9bc   : > { %v22061_v55 = vpop.eup %22060 }
 0x9bd   : > { %v11375_v42 = vmul.f32 %v22061_v55, %v11279_v53  ;;  %v11062_v53 = vrot.slane %v11061_v34, 1 }
 0x9bf   : > { %v11407_v43 = vmul.f32 %v11375_v42, %v22196_v13 }
 0x9c1   : > { %16715 = vmatmul.mubr.f32.vlgmr.msra.gmra.mrb[8].mxu1 %v16714_v15  ;;  %v11439_v62 = vadd.f32 %v11407_v43, %v22200_v3 }
 0x9c2   : > { %16731 = vmatpush1.xpose.msra.mxu1 %v16714_v15  ;;  %16795 = vmatprep.mubr.f32.mxu1 %v23433_v46 }
 0x9c3   : > { %16804 = vmatprep.subr.mxu1 %v16705_v17  ;;  %v23471_v37 = vand.u32 4294901760, %v11439_v62 }
 0x9c5   : > { %v22063_v14 = vpop.eup %22062  ;;  %v17177_v36 = vsub.f32 %v11439_v62, %v23471_v37 }
 0x9c6   : > { %v11374_v27 = vmul.f32 %v22063_v14, %v11278_v48 }
 0x9c8   : > { %v11406_v33 = vmul.f32 %v11374_v27, %v22196_v13  ;;  %v10852_v27 = vrot.slane %v23489_v54, 4 }
 0x9c9   : > { %16797 = vmatmul.mubr.f32.vlgmr.msra.gmra.mrb[8].mxu1 %v23440_v57 }
 0x9ca   : > { %16807 = vmatpush1.xpose.msra.mxu1 %v16711_v19  ;;  %16872 = vmatprep.mubr.f32.mxu1 %v16705_v17  ;;  %v10843_v17 = vadd.f32 %v10842_v52, %v10841_v63  ;;  %v17178_v63 = vand.u32 4294901760, %v17177_v36  ;;  %v11063_v52 = vadd.f32 %v11062_v53, %v11061_v34  ;;  %v10853_v39 = vadd.f32 %v23489_v54, %v10852_v27 }
 0x9cb   : > { %16881 = vmatprep.subr.mxu1 %v23433_v46 }
 0x9cc   : > { %v10844_v59 = vrot.slane %v10843_v17, 1  ;;  %v17179_v51 = vsub.f32 %v17177_v36, %v17178_v63  ;;  %v11152_v48 = vmul.f32 0.125, %v11063_v52 }
 0x9ce   : > { %v10845_v18 = vadd.f32 %v10844_v59, %v10843_v17  ;;  %v17180_v21 = vand.u32 4294901760, %v17179_v51  ;;  %v10899_v59 = vmul.f32 %v23489_v54, %v23489_v54 }
 0x9d0   : > { %v11121_v58 = vmul.f32 0.125, %v10845_v18 }
 0x9d1   : > { %16875 = vmatmul.mubr.f32.vlgmr.msra.gmra.mrb[8].mxu1 %v16711_v19  ;;  %v10837_v19 = vadd.f32 %v10836_v38, %v10835_v16 }
 0x9d2   : > { %16883 = vmatpush1.xpose.msra.mxu1 %v23440_v57  ;;  %16949 = vmatprep.mubr.f32.mxu1 %v16706_v12  ;;  %v11185_v55 = vmul.f32 %v11121_v58, %v11121_v58 }
 0x9d3   : > { %16961 = vmatprep.subr.mxu1 %v16706_v12  ;;  %v11438_v12 = vadd.f32 %v11406_v33, %v22200_v3  ;;  %v10838_v15 = vrot.slane %v10837_v19, 1  ;;  %v11281_v33 = vsub.f32 %v23451_v61, %v11121_v58 }
 0x9d5   : > { %v23478_v30 = vand.u32 4294901760, %v11438_v12  ;;  %v10839_v8 = vadd.f32 %v10838_v15, %v10837_v19  ;;  %v11076_v19 = vrot.slane %v10899_v59, 4  ;;  %v10854_v15 = vrot.slane %v10853_v39, 2 }
 0x9d7   : > { %v17183_v0 = vsub.f32 %v11438_v12, %v23478_v30  ;;  %v11120_v35 = vmul.f32 0.125, %v10839_v8  ;;  %v10898_v12 = vmul.f32 %v23497_v6, %v23497_v6  ;;  %v11077_v34 = vadd.f32 %v11076_v19, %v10899_v59 }
 0x9d8   : > { %v10847_v8 = vadd.f32 %v23497_v6, %v10846_v49 }
 0x9d9   : > { %16953 = vmatmul.mubr.f32.vlgmr.msra.gmra.mrb[8].mxu1 %v16712_v20  ;;  %v17184_v16 = vand.u32 4294901760, %v17183_v0  ;;  %v11184_v17 = vmul.f32 %v11120_v35, %v11120_v35  ;;  %v11070_v53 = vrot.slane %v10898_v12, 4 }
 0x9da   : > { %16965 = vmatpush1.xpose.msra.mxu1 %v16712_v20  ;;  %17029 = vmatprep.mubr.f32.mxu1 %v23433_v46  ;;  %v11153_v20 = vmul.f32 0.125, %v11069_v41  ;;  %v10848_v52 = vrot.slane %v10847_v8, 2 }
 0x9db   : > { %17037 = vmatprep.subr.mxu1 %v23433_v46  ;;  %v11216_v14 = vsub.f32 %v11152_v48, %v11184_v17 }
 0x9dc   : > { %v11217_v42 = vsub.f32 %v11153_v20, %v11185_v55  ;;  %v11280_v20 = vsub.f32 %v23459_v50, %v11120_v35  ;;  %v11078_v55 = vrot.slane %v11077_v34, 2 }
 0x9dd   : > { %v11248_v38 = vmax.f32 %v11216_v14, 0.0 }
 0x9de   : > { %v11249_v10 = vmax.f32 %v11217_v42, 0.0  ;;  %v11071_v42 = vadd.f32 %v11070_v53, %v10898_v12  ;;  %v11079_v17 = vadd.f32 %v11078_v55, %v11077_v34 }
 0x9e0   : > { %v11313_v43 = vadd.f32 1e-05, %v11249_v10  ;;  %v11072_v50 = vrot.slane %v11071_v42, 2  ;;  %v11080_v14 = vrot.slane %v11079_v17, 1 }
 0x9e1   : > { %17031 = vmatmul.mubr.f32.vlgmr.msra.gmra.mrb[8].mxu1 %v23440_v57 }
 0x9e2   : > { %17039 = vmatpush1.xpose.msra.mxu1 %v23440_v57  ;;  %17103 = vmatprep.mubr.f32.mxu1 %v23433_v46  ;;  %v17185_v46 = vsub.f32 %v17183_v0, %v17184_v16  ;;  %22064 = vrsqrt.f32 %v11313_v43 }
 0x9e3   : > { %17111 = vmatprep.subr.mxu1 %v23471_v37 }
 0x9e4   : > { %v17186_v62 = vand.u32 4294901760, %v17185_v46 }
 0x9e9   : > { %17105 = vmatmul.mubr.f32.vlgmr.msra.gmra.mrb[8].mxu1 %v23440_v57  ;;  %v11312_v57 = vadd.f32 1e-05, %v11248_v38  ;;  %v11073_v38 = vadd.f32 %v11072_v50, %v11071_v42  ;;  %v23527_v42 = vld [vmem:[%s22164_s9 + $0x1f8] sm:$0xff]  ;;  %v23535_v50 = vld [vmem:[%s22164_s9 + $0x1f0] sm:$0xff] }
 0x9ea   : > { %17113 = vmatpush1.xpose.msra.mxu1 %v23478_v30  ;;  %17181 = vmatprep.mubr.f32.mxu1 %v17180_v21 }
 0x9eb   : > { %17197 = vmatprep.subr.mxu1 %v17180_v21  ;;  %22066 = vrsqrt.f32 %v11312_v57  ;;  %v11081_v57 = vadd.f32 %v11080_v14, %v11079_v17  ;;  %v10858_v14 = vrot.slane %v23535_v50, 4 }
 0x9ec   : > { %v22065_v18 = vpop.eup %22064 }
 0x9ed   : > { %v11377_v41 = vmul.f32 %v22065_v18, %v11281_v33  ;;  %v11074_v33 = vrot.slane %v11073_v38, 1 }
 0x9ef   : > { %v11409_v58 = vmul.f32 %v11377_v41, %v22196_v13 }
 0x9f1   : > { %17187 = vmatmul.mubr.f32.vlgmr.msra.gmra.mrb[8].mxu1 %v17186_v62  ;;  %v11441_v51 = vadd.f32 %v11409_v58, %v22200_v3 }
 0x9f2   : > { %17203 = vmatpush1.xpose.msra.mxu1 %v17186_v62  ;;  %17267 = vmatprep.mubr.f32.mxu1 %v23471_v37 }
 0x9f3   : > { %17276 = vmatprep.subr.mxu1 %v17177_v36  ;;  %v23509_v10 = vand.u32 4294901760, %v11441_v51 }
 0x9f5   : > { %v22067_v61 = vpop.eup %22066  ;;  %v17649_v43 = vsub.f32 %v11441_v51, %v23509_v10 }
 0x9f6   : > { %v11376_v21 = vmul.f32 %v22067_v61, %v11280_v20 }
 0x9f8   : > { %v11408_v35 = vmul.f32 %v11376_v21, %v22196_v13  ;;  %v10864_v21 = vrot.slane %v23527_v42, 4 }
 0x9f9   : > { %17269 = vmatmul.mubr.f32.vlgmr.msra.gmra.mrb[8].mxu1 %v23478_v30 }
 0x9fa   : > { %17279 = vmatpush1.xpose.msra.mxu1 %v17183_v0  ;;  %17344 = vmatprep.mubr.f32.mxu1 %v17177_v36  ;;  %v10855_v36 = vadd.f32 %v10854_v15, %v10853_v39  ;;  %v17650_v39 = vand.u32 4294901760, %v17649_v43  ;;  %v11075_v15 = vadd.f32 %v11074_v33, %v11073_v38  ;;  %v10865_v17 = vadd.f32 %v23527_v42, %v10864_v21 }
 0x9fb   : > { %17353 = vmatprep.subr.mxu1 %v23471_v37 }
 0x9fc   : > { %v10856_v48 = vrot.slane %v10855_v36, 1  ;;  %v17651_v12 = vsub.f32 %v17649_v43, %v17650_v39  ;;  %v11154_v20 = vmul.f32 0.125, %v11075_v15 }
 0x9fe   : > { %v10857_v46 = vadd.f32 %v10856_v48, %v10855_v36  ;;  %v17652_v53 = vand.u32 4294901760, %v17651_v12  ;;  %v10901_v48 = vmul.f32 %v23527_v42, %v23527_v42 }
 0xa00   : > { %v11123_v27 = vmul.f32 0.125, %v10857_v46 }
 0xa01   : > { %17347 = vmatmul.mubr.f32.vlgmr.msra.gmra.mrb[8].mxu1 %v17183_v0  ;;  %v10849_v0 = vadd.f32 %v10848_v52, %v10847_v8 }
 0xa02   : > { %17355 = vmatpush1.xpose.msra.mxu1 %v23478_v30  ;;  %17421 = vmatprep.mubr.f32.mxu1 %v17178_v63  ;;  %v11187_v18 = vmul.f32 %v11123_v27, %v11123_v27 }
 0xa03   : > { %17433 = vmatprep.subr.mxu1 %v17178_v63  ;;  %v11440_v63 = vadd.f32 %v11408_v35, %v22200_v3  ;;  %v10850_v62 = vrot.slane %v10849_v0, 1  ;;  %v11283_v35 = vsub.f32 %v23489_v54, %v11123_v27 }
 0xa05   : > { %v23516_v59 = vand.u32 4294901760, %v11440_v63  ;;  %v10851_v19 = vadd.f32 %v10850_v62, %v10849_v0  ;;  %v11088_v0 = vrot.slane %v10901_v48, 4  ;;  %v10866_v62 = vrot.slane %v10865_v17, 2 }
 0xa07   : > { %v17655_v49 = vsub.f32 %v11440_v63, %v23516_v59  ;;  %v11122_v34 = vmul.f32 0.125, %v10851_v19  ;;  %v10900_v63 = vmul.f32 %v23535_v50, %v23535_v50  ;;  %v11089_v38 = vadd.f32 %v11088_v0, %v10901_v48 }
 0xa08   : > { %v10859_v19 = vadd.f32 %v23535_v50, %v10858_v14 }
 0xa09   : > { %17425 = vmatmul.mubr.f32.vlgmr.msra.gmra.mrb[8].mxu1 %v17184_v16  ;;  %v17656_v8 = vand.u32 4294901760, %v17655_v49  ;;  %v11186_v36 = vmul.f32 %v11122_v34, %v11122_v34  ;;  %v11082_v33 = vrot.slane %v10900_v63, 4 }
 0xa0a   : > { %17437 = vmatpush1.xpose.msra.mxu1 %v17184_v16  ;;  %17501 = vmatprep.mubr.f32.mxu1 %v23471_v37  ;;  %v11155_v16 = vmul.f32 0.125, %v11081_v57  ;;  %v10860_v15 = vrot.slane %v10859_v19, 2 }
 0xa0b   : > { %17509 = vmatprep.subr.mxu1 %v23471_v37  ;;  %v11218_v61 = vsub.f32 %v11154_v20, %v11186_v36 }
 0xa0c   : > { %v11219_v41 = vsub.f32 %v11155_v16, %v11187_v18  ;;  %v11282_v16 = vsub.f32 %v23497_v6, %v11122_v34  ;;  %v11090_v18 = vrot.slane %v11089_v38, 2 }
 0xa0d   : > { %v11250_v52 = vmax.f32 %v11218_v61, 0.0 }
 0xa0e   : > { %v11251_v55 = vmax.f32 %v11219_v41, 0.0  ;;  %v11083_v41 = vadd.f32 %v11082_v33, %v10900_v63  ;;  %v11091_v36 = vadd.f32 %v11090_v18, %v11089_v38 }
 0xa10   : > { %v11315_v58 = vadd.f32 1e-05, %v11251_v55  ;;  %v11084_v6 = vrot.slane %v11083_v41, 2  ;;  %v11092_v61 = vrot.slane %v11091_v36, 1 }
 0xa11   : > { %17503 = vmatmul.mubr.f32.vlgmr.msra.gmra.mrb[8].mxu1 %v23478_v30 }
 0xa12   : > { %17511 = vmatpush1.xpose.msra.mxu1 %v23478_v30  ;;  %17575 = vmatprep.mubr.f32.mxu1 %v23471_v37  ;;  %v17657_v37 = vsub.f32 %v17655_v49, %v17656_v8  ;;  %22068 = vrsqrt.f32 %v11315_v58 }
 0xa13   : > { %17583 = vmatprep.subr.mxu1 %v23509_v10 }
 0xa14   : > { %v17658_v51 = vand.u32 4294901760, %v17657_v37 }
 0xa19   : > { %17577 = vmatmul.mubr.f32.vlgmr.msra.gmra.mrb[8].mxu1 %v23478_v30  ;;  %v11314_v30 = vadd.f32 1e-05, %v11250_v52  ;;  %v11085_v52 = vadd.f32 %v11084_v6, %v11083_v41 }
 0xa1a   : > { %17585 = vmatpush1.xpose.msra.mxu1 %v23516_v59  ;;  %17653 = vmatprep.mubr.f32.mxu1 %v17652_v53 }
 0xa1b   : > { %17669 = vmatprep.subr.mxu1 %v17652_v53  ;;  %22070 = vrsqrt.f32 %v11314_v30  ;;  %v11093_v30 = vadd.f32 %v11092_v61, %v11091_v36 }
 0xa1c   : > { %v22069_v46 = vpop.eup %22068 }
 0xa1d   : > { %v11379_v57 = vmul.f32 %v22069_v46, %v11283_v35  ;;  %v11086_v35 = vrot.slane %v11085_v52, 1 }
 0xa1f   : > { %v11411_v27 = vmul.f32 %v11379_v57, %v22196_v13 }
 0xa21   : > { %17659 = vmatmul.mubr.f32.vlgmr.msra.gmra.mrb[8].mxu1 %v17658_v51  ;;  %v11443_v12 = vadd.f32 %v11411_v27, %v22200_v3 }
 0xa22   : > { %17675 = vmatpush1.xpose.msra.mxu1 %v17658_v51  ;;  %17739 = vmatprep.mubr.f32.mxu1 %v23509_v10 }
 0xa23   : > { %17748 = vmatprep.subr.mxu1 %v17649_v43  ;;  %v23547_v55 = vand.u32 4294901760, %v11443_v12 }
 0xa25   : > { %v22071_v54 = vpop.eup %22070  ;;  %v18121_v58 = vsub.f32 %v11443_v12, %v23547_v55 }
 0xa26   : > { %v11378_v53 = vmul.f32 %v22071_v54, %v11282_v16 }
 0xa28   : > { %v11410_v34 = vmul.f32 %v11378_v53, %v22196_v13 }
 0xa29   : > { %17741 = vmatmul.mubr.f32.vlgmr.msra.gmra.mrb[8].mxu1 %v23516_v59 }
 0xa2a   : > { %17751 = vmatpush1.xpose.msra.mxu1 %v17655_v49  ;;  %17816 = vmatprep.mubr.f32.mxu1 %v17649_v43  ;;  %v10867_v43 = vadd.f32 %v10866_v62, %v10865_v17  ;;  %v18122_v17 = vand.u32 4294901760, %v18121_v58  ;;  %v11087_v62 = vadd.f32 %v11086_v35, %v11085_v52 }
 0xa2b   : > { %17825 = vmatprep.subr.mxu1 %v23509_v10 }
 0xa2c   : > { %v10868_v20 = vrot.slane %v10867_v43, 1  ;;  %v18123_v63 = vsub.f32 %v18121_v58, %v18122_v17  ;;  %v11156_v16 = vmul.f32 0.125, %v11087_v62 }
 0xa2e   : > { %v10869_v37 = vadd.f32 %v10868_v20, %v10867_v43  ;;  %v18124_v33 = vand.u32 4294901760, %v18123_v63 }
 0xa30   : > { %v11125_v21 = vmul.f32 0.125, %v10869_v37 }
 0xa31   : > { %17819 = vmatmul.mubr.f32.vlgmr.msra.gmra.mrb[8].mxu1 %v17655_v49  ;;  %v10861_v49 = vadd.f32 %v10860_v15, %v10859_v19 }
 0xa32   : > { %17827 = vmatpush1.xpose.msra.mxu1 %v23516_v59  ;;  %17893 = vmatprep.mubr.f32.mxu1 %v17650_v39  ;;  %v11189_v46 = vmul.f32 %v11125_v21, %v11125_v21 }
 0xa33   : > { %17905 = vmatprep.subr.mxu1 %v17650_v39  ;;  %v11442_v39 = vadd.f32 %v11410_v34, %v22200_v3  ;;  %v10862_v51 = vrot.slane %v10861_v49, 1 }
 0xa35   : > { %v23554_v48 = vand.u32 4294901760, %v11442_v39  ;;  %v10863_v0 = vadd.f32 %v10862_v51, %v10861_v49 }
 0xa37   : > { %v18127_v14 = vsub.f32 %v11442_v39, %v23554_v48  ;;  %v11124_v38 = vmul.f32 0.125, %v10863_v0 }
 0xa39   : > { %17897 = vmatmul.mubr.f32.vlgmr.msra.gmra.mrb[8].mxu1 %v17656_v8  ;;  %v18128_v19 = vand.u32 4294901760, %v18127_v14  ;;  %v11188_v43 = vmul.f32 %v11124_v38, %v11124_v38  ;;  %v11284_v36 = vsub.f32 %v23535_v50, %v11124_v38 }
 0xa3a   : > { %17909 = vmatpush1.xpose.msra.mxu1 %v17656_v8  ;;  %17973 = vmatprep.mubr.f32.mxu1 %v23509_v10  ;;  %v11157_v8 = vmul.f32 0.125, %v11093_v30 }
 0xa3b   : > { %17981 = vmatprep.subr.mxu1 %v23509_v10  ;;  %v11220_v54 = vsub.f32 %v11156_v16, %v11188_v43 }
 0xa3c   : > { %v11221_v57 = vsub.f32 %v11157_v8, %v11189_v46 }
 0xa3d   : > { %v11252_v15 = vmax.f32 %v11220_v54, 0.0 }
 0xa3e   : > { %v11253_v18 = vmax.f32 %v11221_v57, 0.0 }
 0xa3f   : > { %v11316_v41 = vadd.f32 1e-05, %v11252_v15 }
 0xa40   : > { %v11317_v27 = vadd.f32 1e-05, %v11253_v18 }
 0xa41   : > { %17975 = vmatmul.mubr.f32.vlgmr.msra.gmra.mrb[8].mxu1 %v23516_v59 }
 0xa42   : > { %17983 = vmatpush1.xpose.msra.mxu1 %v23516_v59  ;;  %18047 = vmatprep.mubr.f32.mxu1 %v23509_v10  ;;  %v18129_v10 = vsub.f32 %v18127_v14, %v18128_v19  ;;  %22072 = vrsqrt.f32 %v11317_v27 }
 0xa43   : > { %18055 = vmatprep.subr.mxu1 %v23547_v55  ;;  %22074 = vrsqrt.f32 %v11316_v41 }
 0xa44   : > { %v18130_v12 = vand.u32 4294901760, %v18129_v10 }
 0xa49   : > { %18049 = vmatmul.mubr.f32.vlgmr.msra.gmra.mrb[8].mxu1 %v23516_v59  ;;  %v11285_v59 = vsub.f32 %v23527_v42, %v11125_v21 }
 0xa4a   : > { %18057 = vmatpush1.xpose.msra.mxu1 %v23554_v48  ;;  %18125 = vmatprep.mubr.f32.mxu1 %v18124_v33 }
 0xa4b   : > { %18141 = vmatprep.subr.mxu1 %v18124_v33 }
 0xa4c   : > { %v22073_v53 = vpop.eup %22072 }
 0xa4d   : > { %v11381_v20 = vmul.f32 %v22073_v53, %v11285_v59  ;;  %v22075_v49 = vpop.eup %22074 }
 0xa4e   : > { %v11380_v37 = vmul.f32 %v22075_v49, %v11284_v36 }
 0xa4f   : > { %v11413_v6 = vmul.f32 %v11381_v20, %v22196_v13 }
 0xa50   : > { %v11412_v42 = vmul.f32 %v11380_v37, %v22196_v13 }
 0xa51   : > { %18131 = vmatmul.mubr.f32.vlgmr.msra.gmra.mrb[8].mxu1 %v18130_v12  ;;  %v11445_v34 = vadd.f32 %v11413_v6, %v22200_v3 }
 0xa52   : > { %18147 = vmatpush1.xpose.msra.mxu1 %v18130_v12  ;;  %18211 = vmatprep.mubr.f32.mxu1 %v23547_v55  ;;  %v11444_v50 = vadd.f32 %v11412_v42, %v22200_v3 }
 0xa53   : > { %18220 = vmatprep.subr.mxu1 %v18121_v58  ;;  %v18526_v61 = vand.u32 4294901760, %v11445_v34 }
 0xa55   : > { %v18593_v39 = vsub.f32 %v11445_v34, %v18526_v61 }
 0xa57   : > { %v18594_v51 = vand.u32 4294901760, %v18593_v39 }
 0xa59   : > { %18213 = vmatmul.mubr.f32.vlgmr.msra.gmra.mrb[8].mxu1 %v23554_v48  ;;  %v18595_v30 = vsub.f32 %v18593_v39, %v18594_v51 }
 0xa5a   : > { %18223 = vmatpush1.xpose.msra.mxu1 %v18127_v14  ;;  %18288 = vmatprep.mubr.f32.mxu1 %v18121_v58  ;;  %v18528_v58 = vand.u32 4294901760, %v11444_v50 }
 0xa5b   : > { %18297 = vmatprep.subr.mxu1 %v23547_v55  ;;  %v18596_v21 = vand.u32 4294901760, %v18595_v30 }
 0xa5c   : > { %v18599_v52 = vsub.f32 %v11444_v50, %v18528_v58 }
 0xa5e   : > { %v18600_v13 = vand.u32 4294901760, %v18599_v52 }
 0xa60   : > { %v18601_v3 = vsub.f32 %v18599_v52, %v18600_v13 }
 0xa61   : > { %18291 = vmatmul.mubr.f32.vlgmr.msra.gmra.mrb[8].mxu1 %v18127_v14 }
 0xa62   : > { %18299 = vmatpush1.xpose.msra.mxu1 %v23554_v48  ;;  %18365 = vmatprep.mubr.f32.mxu1 %v18122_v17 }
 0xa63   : > { %18377 = vmatprep.subr.mxu1 %v18122_v17  ;;  %v18602_v17 = vand.u32 4294901760, %v18601_v3 }
 0xa69   : > { %18369 = vmatmul.mubr.f32.vlgmr.msra.gmra.mrb[8].mxu1 %v18128_v19 }
 0xa6a   : > { %18381 = vmatpush1.xpose.msra.mxu1 %v18128_v19  ;;  %18445 = vmatprep.mubr.f32.mxu1 %v23547_v55 }
 0xa6b   : > { %18453 = vmatprep.subr.mxu1 %v23547_v55 }
 0xa71   : > { %18447 = vmatmul.mubr.f32.vlgmr.msra.gmra.mrb[8].mxu1 %v23554_v48 }
 0xa72   : > { %18455 = vmatpush1.xpose.msra.mxu1 %v23554_v48  ;;  %18519 = vmatprep.mubr.f32.mxu1 %v23547_v55 }
 0xa73   : > { %18527 = vmatprep.subr.mxu1 %v18526_v61 }
 0xa79   : > { %18521 = vmatmul.mubr.f32.vlgmr.msra.gmra.mrb[8].mxu1 %v23554_v48 }
 0xa7a   : > { %18529 = vmatpush1.xpose.msra.mxu1 %v18528_v58  ;;  %18597 = vmatprep.mubr.f32.mxu1 %v18596_v21 }
 0xa7b   : > { %18613 = vmatprep.subr.mxu1 %v18596_v21 }
 0xa81   : > { %18603 = vmatmul.mubr.f32.vlgmr.msra.gmra.mrb[8].mxu1 %v18602_v17 }
 0xa82   : > { %18619 = vmatpush1.xpose.msra.mxu1 %v18602_v17  ;;  %18683 = vmatprep.mubr.f32.mxu1 %v18526_v61 }
 0xa83   : > { %18692 = vmatprep.subr.mxu1 %v18593_v39 }
 0xa89   : > { %18685 = vmatmul.mubr.f32.vlgmr.msra.gmra.mrb[8].mxu1 %v18528_v58 }
 0xa8a   : > { %18695 = vmatpush1.xpose.msra.mxu1 %v18599_v52  ;;  %18760 = vmatprep.mubr.f32.mxu1 %v18593_v39  ;;  %v22101_v39 = vmov 3  }
 0xa8b   : > { %18769 = vmatprep.subr.mxu1 %v18526_v61 }
 0xa91   : > { %18763 = vmatmul.mubr.f32.vlgmr.msra.gmra.mrb[8].mxu1 %v18599_v52 }
 0xa92   : > { %18771 = vmatpush1.xpose.msra.mxu1 %v18528_v58  ;;  %18837 = vmatprep.mubr.f32.mxu1 %v18594_v51 }
 0xa93   : > { %18849 = vmatprep.subr.mxu1 %v18594_v51 }
 0xa99   : > { %18841 = vmatmul.mubr.f32.vlgmr.msra.gmra.mrb[8].mxu1 %v18600_v13 }
 0xa9a   : > { %18853 = vmatpush1.xpose.msra.mxu1 %v18600_v13  ;;  %18917 = vmatprep.mubr.f32.mxu1 %v18526_v61  ;;  %v22085_v13 = vld [vmem:[%s23718_s6] sm:$0xff] }
 0xa9b   : > { %18925 = vmatprep.subr.mxu1 %v18526_v61 }
 0xaa1   : > { %18919 = vmatmul.mubr.f32.vlgmr.msra.gmra.mrb[8].mxu1 %v18528_v58 }
 0xaa2   : > { %18927 = vmatpush1.xpose.msra.mxu1 %v18528_v58  ;;  %18991 = vmatprep.mubr.f32.mxu1 %v18526_v61 }
 0xaa9   : > { %18993 = vmatmul.mubr.f32.vlgmr.msra.gmra.mrb[8].mxu1 %v18528_v58  ;;  %v22102_v58 = vmov 2  }
 0xb7c   : > { %v18994_v55 = vpop.f32.mrb[8].mxu1 }
 0xb7d   : > { %v18999_v48 = vsel %vm8755_vm0, %v18994_v55, 0  ;;  %v18996_v0 = vpop.f32.mrb[9].mxu1  ;;  %v21031_v55 = vld [vmem:[%s364_s30 + $0x10] sm:$0xff] }
 0xb7e   : > { %v19067_v35 = vand.u32 4294901760, %v18999_v48  ;;  %v10598_v0 = vld [vmem:[%s357_s26] sm:$0xff] }
 0xb80   : > { %v19068_v8 = vsub.f32 %v18999_v48, %v19067_v35  ;;  %v21032_v48 = vld [vmem:[%s364_s30 + $0x18] sm:$0xff] }
 0xb82   : > { %v19069_v46 = vand.u32 4294901760, %v19068_v8 }
 0xb84   : > { %v19070_v14 = vsub.f32 %v19068_v8, %v19069_v46 }
 0xb86   : > { %v19071_v63 = vand.u32 4294901760, %v19070_v14  ;;  %v21030_v14 = vld [vmem:[%s357_s26 + $0x18] sm:$0xff] }
 0xb88   : > { %21290 = vmatmul.mubr.f32.vlgmr.msra.gmra.mrb[2].mxu0 %v19071_v63  ;;  %v21033_v63 = vld [vmem:[%s371_s10 + $0x10] sm:$0xff] }
 0xb89   : > { %21293 = vmatpush3.xpose.msra.mxu0 %v22798_v44  ;;  %21294 = vmatprep.mubr.msk.f32.mxu0 %vm22098_vm1, %v22097_v24 }
 0xb8a   : > { %21297 = vmatprep.subr.mxu0 %v22097_v24 }
 0xb90   : > { %21295 = vmatmul.mubr.f32.vlgmr.msra.gmra.mrb[2].mxu0 %v19067_v35 }
 0xb91   : > { %21298 = vmatpush3.xpose.msra.mxu0 %v22790_v7  ;;  %21299 = vmatprep.mubr.msk.f32.mxu0 %vm22098_vm1, %v22097_v24 }
 0xb92   : > { %21302 = vmatprep.subr.mxu0 %v22097_v24 }
 0xb98   : > { %21300 = vmatmul.mubr.f32.vlgmr.msra.gmra.mrb[2].mxu0 %v19068_v8  ;;  %v10608_v8 = vld [vmem:[%s364_s30 + $0x8] sm:$0xff] }
 0xb99   : > { %21303 = vmatpush3.xpose.msra.mxu0 %v22779_v28  ;;  %21304 = vmatprep.mubr.msk.f32.mxu0 %vm22098_vm1, %v22097_v24 }
 0xb9a   : > { %21307 = vmatprep.subr.mxu0 %v22097_v24 }
 0xba0   : > { %21305 = vmatmul.mubr.f32.vlgmr.msra.gmra.mrb[2].mxu0 %v19069_v46  ;;  %v21029_v46 = vld [vmem:[%s357_s26 + $0x10] sm:$0xff] }
 0xba1   : > { %21308 = vmatpush3.xpose.msra.mxu0 %v22794_v32  ;;  %21309 = vmatprep.mubr.msk.f32.mxu0 %vm22098_vm1, %v22097_v24 }
 0xba2   : > { %21312 = vmatprep.subr.mxu0 %v22097_v24 }
 0xba8   : > { %21310 = vmatmul.mubr.f32.vlgmr.msra.gmra.mrb[2].mxu0 %v19067_v35 }
 0xba9   : > { %21313 = vmatpush3.xpose.msra.mxu0 %v22779_v28  ;;  %21314 = vmatprep.mubr.msk.f32.mxu0 %vm22098_vm1, %v22097_v24 }
 0xbaa   : > { %21317 = vmatprep.subr.mxu0 %v22097_v24 }
 0xbb0   : > { %21315 = vmatmul.mubr.f32.vlgmr.msra.gmra.mrb[2].mxu0 %v19067_v35  ;;  %v10607_v35 = vld [vmem:[%s364_s30] sm:$0xff] }
 0xbb1   : > { %21319 = vmatprep.mubr.msk.f32.mxu0 %vm22098_vm1, %v22097_v24 }
 0xc83   : > { %v19443_v7 = vpop.f32.mrb[2].mxu0 }
 0xc84   : > { %v19448_v44 = vand.u32 4294901760, %v19443_v7  ;;  %v21316_v32 = vpop.f32.mrb[3].mxu0 }
 0xc86   : > { %v19525_v62 = vsub.f32 %v19443_v7, %v19448_v44  ;;  %21318 = vmatpush3.msra.mxu0 %v19448_v44  ;;  %v21034_v7 = vld [vmem:[%s371_s10 + $0x18] sm:$0xff] }
 0xc87   : > { %21320 = vmatmul.mubr.f32.vlgmr.msra.gmra.mrb[4].mxu0 %v22834_v60  ;;  %21322 = vmatprep.subr.mxu0 %v22097_v24 }
 0xc88   : > { %v19526_v38 = vand.u32 4294901760, %v19525_v62  ;;  %21324 = vmatprep.mubr.msk.f32.mxu0 %vm22098_vm1, %v22097_v24 }
 0xc8a   : > { %v19527_v28 = vsub.f32 %v19525_v62, %v19526_v38 }
 0xc8c   : > { %v19528_v57 = vand.u32 4294901760, %v19527_v28 }
 0xc8e   : > { %21323 = vmatpush3.msra.mxu0 %v19528_v57 }
 0xc8f   : > { %21325 = vmatmul.mubr.f32.vlgmr.msra.gmra.mrb[4].mxu0 %v22824_v4  ;;  %21327 = vmatprep.subr.mxu0 %v22097_v24 }
 0xc90   : > { %21328 = vmatpush3.msra.mxu0 %v19525_v62  ;;  %21329 = vmatprep.mubr.msk.f32.mxu0 %vm22098_vm1, %v22097_v24  ;;  %v10617_v62 = vld [vmem:[%s371_s10] sm:$0xff] }
 0xc91   : > { %21332 = vmatprep.subr.mxu0 %v22097_v24 }
 0xc97   : > { %21330 = vmatmul.mubr.f32.vlgmr.msra.gmra.mrb[4].mxu0 %v22827_v56 }
 0xc98   : > { %21333 = vmatpush3.msra.mxu0 %v19448_v44  ;;  %21334 = vmatprep.mubr.msk.f32.mxu0 %vm22098_vm1, %v22097_v24 }
 0xc99   : > { %21337 = vmatprep.subr.mxu0 %v22097_v24 }
 0xc9f   : > { %21335 = vmatmul.mubr.f32.vlgmr.msra.gmra.mrb[4].mxu0 %v22830_v23 }
 0xca0   : > { %21338 = vmatpush3.msra.mxu0 %v19526_v38  ;;  %21339 = vmatprep.mubr.msk.f32.mxu0 %vm22098_vm1, %v22097_v24  ;;  %v10618_v38 = vld [vmem:[%s371_s10 + $0x8] sm:$0xff] }
 0xca1   : > { %21342 = vmatprep.subr.mxu0 %v22097_v24 }
 0xca7   : > { %21340 = vmatmul.mubr.f32.vlgmr.msra.gmra.mrb[4].mxu0 %v22824_v4 }
 0xca8   : > { %21343 = vmatpush3.msra.mxu0 %v19448_v44  ;;  %21344 = vmatprep.mubr.msk.f32.mxu0 %vm22098_vm1, %v22097_v24  ;;  %v10599_v44 = vld [vmem:[%s357_s26 + $0x8] sm:$0xff] }
 0xca9   : > { %21347 = vmatprep.subr.mxu0 %v22097_v24 }
 0xcaf   : > { %21345 = vmatmul.mubr.f32.vlgmr.msra.gmra.mrb[4].mxu0 %v22824_v4 }
 0xcb0   : > { %21348 = vmatpush3.msra.mxu0 %v22863_v5  ;;  %21349 = vmatprep.mubr.msk.f32.mxu0 %vm22098_vm1, %v22097_v24 }
 0xcb1   : > { %21352 = vmatprep.subr.mxu0 %v22097_v24 }
 0xd82   : > { %v19889_v56 = vpop.f32.mrb[4].mxu0 }
 0xd83   : > { %v19893_v23 = vfloor.f32 %v19889_v56  ;;  %v21346_v60 = vpop.f32.mrb[5].mxu0 }
 0xd85   : > { %v19895_v19 = vsel %vm8755_vm0, %v19893_v23, 0 }
 0xd86   : > { %v19963_v33 = vand.u32 4294901760, %v19895_v19 }
 0xd88   : > { %v19964_v16 = vsub.f32 %v19895_v19, %v19963_v33  ;;  %v10627_v19 = vld [vmem:[%s378_s12] sm:$0xff] }
 0xd8a   : > { %v19965_v43 = vand.u32 4294901760, %v19964_v16 }
 0xd8c   : > { %v19966_v18 = vsub.f32 %v19964_v16, %v19965_v43 }
 0xd8e   : > { %v19967_v10 = vand.u32 4294901760, %v19966_v18 }
 0xd90   : > { %21350 = vmatmul.mubr.f32.vlgmr.msra.gmra.mrb[6].mxu0 %v19967_v10 }
 0xd91   : > { %21353 = vmatpush3.msra.mxu0 %v22883_v11  ;;  %21354 = vmatprep.mubr.msk.f32.mxu0 %vm22098_vm1, %v22097_v24 }
 0xd92   : > { %21357 = vmatprep.subr.mxu0 %v22097_v24 }
 0xd98   : > { %21355 = vmatmul.mubr.f32.vlgmr.msra.gmra.mrb[6].mxu0 %v19963_v33 }
 0xd99   : > { %21358 = vmatpush3.msra.mxu0 %v22875_v26  ;;  %21359 = vmatprep.mubr.msk.f32.mxu0 %vm22098_vm1, %v22097_v24  ;;  %v22084_v26 = vld [vmem:[%s23717_s5 + $0x10] ss:$0 sm:$0xff] }
 0xd9a   : > { %21362 = vmatprep.subr.mxu0 %v22097_v24 }
 0xda0   : > { %21360 = vmatmul.mubr.f32.vlgmr.msra.gmra.mrb[6].mxu0 %v19964_v16 }
 0xda1   : > { %21363 = vmatpush3.msra.mxu0 %v22863_v5  ;;  %21364 = vmatprep.mubr.msk.f32.mxu0 %vm22098_vm1, %v22097_v24 }
 0xda2   : > { %21367 = vmatprep.subr.mxu0 %v22097_v24 }
 0xda8   : > { %21365 = vmatmul.mubr.f32.vlgmr.msra.gmra.mrb[6].mxu0 %v19965_v43 }
 0xda9   : > { %21368 = vmatpush3.msra.mxu0 %v22879_v47  ;;  %21369 = vmatprep.mubr.msk.f32.mxu0 %vm22098_vm1, %v22097_v24 }
 0xdaa   : > { %21372 = vmatprep.subr.mxu0 %v22097_v24 }
 0xdb0   : > { %21370 = vmatmul.mubr.f32.vlgmr.msra.gmra.mrb[6].mxu0 %v19963_v33 }
 0xdb1   : > { %21373 = vmatpush3.msra.mxu0 %v22863_v5  ;;  %21374 = vmatprep.mubr.msk.f32.mxu0 %vm22098_vm1, %v22097_v24 }
 0xdb2   : > { %21437 = vmatprep.subr.bf16.mxu0 %v22100_v45 }
 0xdb8   : > { %21375 = vmatmul.mubr.f32.vlgmr.msra.gmra.mrb[6].mxu0 %v19963_v33  ;;  %v10628_v33 = vld [vmem:[%s378_s12 + $0x8] sm:$0xff] }
 0xdb9   : > { %21439 = vmatpush3.bf16.msra.mxu0 %v22907_v9  ;;  %21381 = vmatprep.mubr.msk.f32.mxu0 %vm22098_vm1, %v22097_v24 }
 0xdba   : > { %21440 = vmatprep.subr.bf16.mxu0 %v22100_v45 }
 0xe8b   : > { %v20339_v4 = vpop.f32.mrb[6].mxu0 }
 0xe8c   : > { %v21457_v47 = vadd.f32 %v22084_v26, %v20339_v4  ;;  %v21376_v5 = vpop.f32.mrb[7].mxu0 }
 0xe8e   : > { %vm20343_vm5 = vcmp.gt.f32.partialorder %v21457_v47, 0.0  ;;  %v20344_v11 = vmul.f32 0.01, %v21457_v47 }
 0xe90   : > { %v20345_v54 = vsel %vm20343_vm5, %v21457_v47, %v20344_v11  ;;  %v21035_v11 = vld [vmem:[%s378_s12 + $0x10] sm:$0xff] }
 0xe91   : > { %v20347_v27 = vsel %vm10123_vm3, %v20345_v54, 0  ;;  %v21036_v54 = vld [vmem:[%s378_s12 + $0x18] sm:$0xff] }
 0xe92   : > { %v20416_v12 = vand.u32 4294901760, %v20347_v27 }
 0xe94   : > { %v20417_v15 = vsub.f32 %v20347_v27, %v20416_v12 }
 0xe96   : > { %v20418_v41 = vand.u32 4294901760, %v20417_v15 }
 0xe98   : > { %v20419_v59 = vsub.f32 %v20417_v15, %v20418_v41 }
 0xe9a   : > { %v20420_v53 = vand.u32 4294901760, %v20419_v59 }
 0xe9c   : > { %21382 = vmatmul.mubr.f32.vlgmr.msra.gmra.mrb[8].mxu0 %v20420_v53 }
 0xe9d   : > { %21442 = vmatpush3.bf16.msra.mxu0 %v22953_v40  ;;  %21388 = vmatprep.mubr.msk.f32.mxu0 %vm22098_vm1, %v22097_v24  ;;  %v10589_v40 = vpop.xlane.xlu1 %10588 }
 0xe9e   : > { %21443 = vmatprep.subr.bf16.mxu0 %v22100_v45 }
 0xea4   : > { %21389 = vmatmul.mubr.f32.vlgmr.msra.gmra.mrb[8].mxu0 %v20416_v12 }
 0xea5   : > { %21445 = vmatpush3.bf16.msra.mxu0 %v22968_v29  ;;  %21395 = vmatprep.mubr.msk.f32.mxu0 %vm22098_vm1, %v22097_v24  ;;  %v10590_v29 = vsub.f32 %v23192_v25, %v10589_v40 }
 0xea6   : > { %21446 = vmatprep.subr.bf16.mxu0 %v22100_v45 }
 0xea7   : > { %v10591_v20 = vmul.f32 1.442695, %v10590_v29 }
 0xea9   : > { %22076 = vpow2.f32 %v10591_v20 }
 0xeac   : > { %21396 = vmatmul.mubr.f32.vlgmr.msra.gmra.mrb[8].mxu0 %v20417_v15 }
 0xead   : > { %21448 = vmatpush3.bf16.msra.mxu0 %v22907_v9  ;;  %21402 = vmatprep.mubr.msk.f32.mxu0 %vm22098_vm1, %v22097_v24 }
 0xeae   : > { %21449 = vmatprep.subr.bf16.mxu0 %v22100_v45 }
 0xeb3   : > { %v22077_v34 = vpop.eup %22076 }
 0xeb4   : > { %21403 = vmatmul.mubr.f32.vlgmr.msra.gmra.mrb[8].mxu0 %v20418_v41 }
 0xeb5   : > { %21451 = vmatpush3.bf16.msra.mxu0 %v22994_v22  ;;  %21409 = vmatprep.mubr.msk.f32.mxu0 %vm22098_vm1, %v22097_v24 }
 0xeb6   : > { %21452 = vmatprep.subr.bf16.mxu0 %v22100_v45  ;;  %v10593_v45 = vsel %vm10586_vm4, %v22077_v34, 0.0 }
 0xebc   : > { %21410 = vmatmul.mubr.f32.vlgmr.msra.gmra.mrb[8].mxu0 %v20416_v12 }
 0xebd   : > { %21454 = vmatpush3.bf16.msra.mxu0 %v22907_v9  ;;  %21416 = vmatprep.mubr.msk.f32.mxu0 %vm22098_vm1, %v22097_v24 }
 0xec4   : > { %21417 = vmatmul.mubr.f32.vlgmr.msra.gmra.mrb[8].mxu0 %v20416_v12 }
 0xf97   : > { %v20804_v36 = vpop.f32.mrb[8].mxu0 }
 0xf98   : > { %v21458_v22 = vadd.f32 %v20804_v36, %v23189_v31  ;;  %v21418_v49 = vpop.f32.mrb[9].mxu0 }
 0xf9a   : > { %v20808_v6 = vsel %vm10586_vm4, %v21458_v22, -inf }
 0xf9b   : > { %20809 = vmax.xlane.f32.xlu0 %v20808_v6 }
 0xf9f   : > { %10594 = vadd.xlane.f32.xlu0 %v10593_v45 }
0x1028   : > { %v20810_v9 = vpop.xlane.xlu0 %20809 }
0x1029   : > { %v20811_v37 = vsub.f32 %v21458_v22, %v20810_v9 }
0x102b   : > { %v20812_v24 = vmul.f32 1.442695, %v20811_v37 }
0x102c   : > { %v10595_v61 = vpop.xlane.xlu0 %10594 }
0x102d   : > { %22078 = vpow2.f32 %v20812_v24 }
0x102e   : > { %22080 = vrcp.f32 %v10595_v61 }
0x1037   : > { %v22079_v25 = vpop.eup %22078 }
0x1038   : > { %v22081_v42 = vpop.eup %22080  ;;  %v20814_v50 = vsel %vm10586_vm4, %v22079_v25, 0.0 }
0x1039   : > { %20815 = vadd.xlane.f32.xlu1 %v20814_v50  ;;  %v10597_v31 = vmul.f32 %v22081_v42, %v22077_v34 }
0x103b   : > { %10602 = vperm.xlu0 %21938, %v10597_v31  }
0x103f   : > { %21947 = vset.pattern.permute.xlu0 %v22101_v39 }
0x104a   : > { %10610 = vperm.xlu1 %21939, %v10597_v31  }
0x104e   : > { %21940 = vset.pattern.permute.xlu1 %v22102_v58 }
0x104f   : > { %10620 = vperm.xlu1 %21940, %v10597_v31  }
0x1053   : > { %21941 = vset.pattern.permute.xlu1 %v22101_v39 }
0x1054   : > { %10630 = vperm.xlu1 %21941, %v10597_v31  }
0x1058   : > { %21942 = vset.pattern.permute.xlu1 %v22094_v1 }
0x10ba   : > { %v10603_v32 = vpop.permute.xlu0 %10602 }
0x10bb   : > { %v10605_v4 = vmul.f32 %v10603_v32, %v10598_v0  ;;  %v10606_v26 = vmul.f32 %v10603_v32, %v10599_v44 }
0x10c6   : > { %v20816_v51 = vpop.xlane.xlu1 %20815 }
0x10c7   : > { %22082 = vrcp.f32 %v20816_v51 }
0x10ca   : > { %v10611_v1 = vpop.permute.xlu1 %10610 }
0x10cb   : > { %v10613_v23 = vmul.f32 %v10611_v1, %v10607_v35  ;;  %v10614_v60 = vmul.f32 %v10611_v1, %v10608_v8 }
0x10cd   : > { %v10615_v15 = vadd.f32 %v10613_v23, %v10605_v4  ;;  %v10616_v41 = vadd.f32 %v10614_v60, %v10606_v26 }
0x10ce   : > { %v10621_v21 = vpop.permute.xlu1 %10620 }
0x10cf   : > { %v10623_v47 = vmul.f32 %v10621_v21, %v10617_v62  ;;  %v10624_v5 = vmul.f32 %v10621_v21, %v10618_v38 }
0x10d1   : > { %v22083_v52 = vpop.eup %22082  ;;  %v10625_v49 = vadd.f32 %v10623_v47, %v10615_v15  ;;  %v10626_v6 = vadd.f32 %v10624_v5, %v10616_v41 }
0x10d2   : > { %v20818_v30 = vmul.f32 %v22083_v52, %v22079_v25 }
0x10d3   : > { %v10631_v3 = vpop.permute.xlu1 %10630 }
0x10d4   : > { %20824 = vperm.xlu1 %21942, %v20818_v30   ;;  %v10633_v59 = vmul.f32 %v10631_v3, %v10627_v19  ;;  %v10634_v53 = vmul.f32 %v10631_v3, %v10628_v33 }
0x10d6   : > { %v10635_v9 = vadd.f32 %v10633_v59, %v10625_v49  ;;  %v10636_v37 = vadd.f32 %v10634_v53, %v10626_v6 }
0x10d8   : > { %21943 = vset.pattern.permute.xlu1 %v22095_v2 }
0x10d9   : > { %20833 = vperm.xlu1 %21943, %v20818_v30  }
0x10dd   : > { %21944 = vset.pattern.permute.xlu1 %v22102_v58 }
0x10de   : > { %20844 = vperm.xlu1 %21944, %v20818_v30  }
0x10e2   : > { %21945 = vset.pattern.permute.xlu1 %v22101_v39 }
0x10e3   : > { %20855 = vperm.xlu1 %21945, %v20818_v30  }
0x10e7   : > { %21946 = vset.pattern.permute.xlu1 %v22102_v58 }
0x10e8   : > { %10638 = vperm.xlu1 %21946, %v22085_v13  }
0x1153   : > { %v20825_v17 = vpop.permute.xlu1 %20824 }
0x1154   : > { %v20827_v16 = vmul.f32 %v21029_v46, %v20825_v17  ;;  %v20828_v43 = vmul.f32 %v21030_v14, %v20825_v17 }
0x1158   : > { %v20834_v2 = vpop.permute.xlu1 %20833 }
0x1159   : > { %v20836_v28 = vmul.f32 %v21031_v55, %v20834_v2  ;;  %v20837_v57 = vmul.f32 %v21032_v48, %v20834_v2 }
0x115b   : > { %v20838_v27 = vadd.f32 %v20836_v28, %v20827_v16  ;;  %v20839_v12 = vadd.f32 %v20837_v57, %v20828_v43 }
0x115d   : > { %v20845_v56 = vpop.permute.xlu1 %20844 }
0x115e   : > { %v20847_v18 = vmul.f32 %v21033_v63, %v20845_v56  ;;  %v20848_v10 = vmul.f32 %v21034_v7, %v20845_v56 }
0x1160   : > { %v20849_v29 = vadd.f32 %v20847_v18, %v20838_v27  ;;  %v20850_v20 = vadd.f32 %v20848_v10, %v20839_v12 }
0x1162   : > { %v20856_v40 = vpop.permute.xlu1 %20855 }
0x1163   : > { %v20858_v36 = vmul.f32 %v21035_v11, %v20856_v40  ;;  %v20859_v22 = vmul.f32 %v21036_v54, %v20856_v40 }
0x1165   : > { %v20860_v34 = vadd.f32 %v20858_v36, %v20849_v29  ;;  %v20861_v45 = vadd.f32 %v20859_v22, %v20850_v20 }
0x1167   : > { %v10639_v24 = vpop.permute.xlu1 %10638 }
0x1168   : > { %v10641_v61 = vadd.f32 %v10639_v24, %v10635_v9  ;;  %v10642_v25 = vadd.f32 %v10639_v24, %v10636_v37  ;;  %v20862_v42 = vadd.f32 %v20860_v34, %v10639_v24  ;;  %v20863_v50 = vadd.f32 %v20861_v45, %v10639_v24 }
0x116a   : > { %10643 = vst [vmem:[%s385_s15] sm:$0xff] %v10641_v61  ;;  %10644 = vst [vmem:[%s385_s15 + $0x8] sm:$0xff] %v10642_v25 }
0x116b   : > { %21037 = vst [vmem:[%s385_s15 + $0x10] sm:$0xff] %v20862_v42  ;;  %21038 = vst [vmem:[%s385_s15 + $0x18] sm:$0xff] %v20863_v50 }
0x116c PF: > { %s17_s24 = sadd.s32 1, %s22092_s24  }
0x116d   : > { %p14_p4 = scmp.ge.s32.totalorder %s17_s24, 4  }
0x116f   :  { %16 = sbr.rel (!%p14_p4) target bundleno = 1 (0x1), region = 96 }

</bundles_post_ra>
